<compile_context>
chip_gen: v7x
topology: tpu7x:2x2x1
jax: 0.10.0
libtpu: 0.0.40
codegen_flags: <defaults>
</compile_context>

<pallas_src>
import functools

import jax
import jax.numpy as jnp
from jax import lax
from jax.experimental import pallas as pl
from jax.experimental.pallas import tpu as pltpu

NEG_SLOPE = 0.01   # nn.LeakyReLU default
EPS = 1e-5         # nn.GroupNorm default
GROUPS = 8


def _resblock_kernel(D, H, W, C,
                     x_ref, wb1_ref, b1_ref, g1_ref, bt1_ref,
                     wb2_ref, b2_ref, g2_ref, bt2_ref, q_ref,
                     out_ref, xp_ref, stats_ref):
    """Fused [pad + conv3x3x3 + GroupNorm + LeakyReLU] x2 + residual; one sample per grid step."""
    WC = W * C
    WPC = (W + 2) * C
    DH = D * H

    def pad_fill(xc):
        # ReplicationPad3d(1) of xc (D, H, W*C) into xp_ref (D+2, H+2, (W+2)*C).
        # 27 register-sourced stores (interior + faces + edges + corners); no xp_ref read-back.
        d_rng = [((0, 1), (0, 1)), ((1, D + 1), (0, D)), ((D + 1, D + 2), (D - 1, D))]
        h_rng = [((0, 1), (0, 1)), ((1, H + 1), (0, H)), ((H + 1, H + 2), (H - 1, H))]
        w_rng = [((0, C), (0, C)), ((C, (W + 1) * C), (0, WC)),
                 (((W + 1) * C, (W + 2) * C), (WC - C, WC))]
        for dd, ds in d_rng:
            for hd, hs in h_rng:
                for wd, ws in w_rng:
                    xp_ref[dd[0]:dd[1], hd[0]:hd[1], wd[0]:wd[1]] = \
                        xc[ds[0]:ds[1], hs[0]:hs[1], ws[0]:ws[1]]

    def conv_gn_lrelu(xc, wb_ref, bias_l, gamma_l, beta_l):
        # ---- ReplicationPad3d(1) into VMEM scratch ----
        pad_fill(xc)

        # ---- 3x3x3 conv as 9 lane-dense banded matmuls, bf16 MXU operands, f32 accum ----
        mxu_dt = wb_ref.dtype
        z = jnp.zeros((DH, WC), jnp.float32)
        for t in range(9):
            kd, kh = divmod(t, 3)
            lhs = xp_ref[kd:kd + D, kh:kh + H, :].reshape(DH, WPC).astype(mxu_dt)
            z = z + jnp.dot(lhs, wb_ref[t], preferred_element_type=jnp.float32)

        # ---- GroupNorm(8): conv bias folded analytically into sum / sum-of-squares ----
        sum_l = jnp.sum(z, axis=0, keepdims=True)                      # (1, W*C)
        ssq_l = jnp.sum(z * z, axis=0, keepdims=True)                  # (1, W*C)
        stats_ref[0:1, :] = sum_l + float(DH) * bias_l                 # stats of (z + bias)
        stats_ref[1:2, :] = ssq_l + 2.0 * bias_l * sum_l + float(DH) * (bias_l * bias_l)
        # one tiny fused dot: lane-dense group-averaging matrix broadcasts stats back per lane
        ms = jnp.dot(stats_ref[...], q_ref[...], preferred_element_type=jnp.float32)
        mean, ex2 = ms[0:1, :], ms[1:2, :]
        var = ex2 - mean * mean                                        # biased var (as PyTorch)

        # ---- bias + GN + gamma/beta folded into one lane-dense affine, then LeakyReLU ----
        a = gamma_l * lax.rsqrt(var + EPS)                             # (1, W*C)
        b = (bias_l - mean) * a + beta_l                               # (1, W*C)
        y = a * z + b
        return jnp.where(y >= 0, y, NEG_SLOPE * y)                     # (D*H, W*C) f32

    h1 = conv_gn_lrelu(x_ref[0], wb1_ref, b1_ref[...], g1_ref[...], bt1_ref[...])
    h2 = conv_gn_lrelu(h1.reshape(D, H, WC), wb2_ref, b2_ref[...], g2_ref[...], bt2_ref[...])
    # residual: re-read x from VMEM (x is never held live across the two stages)
    out = h2.reshape(1, D, H, WC) + x_ref[...]
    out_ref[...] = out.astype(out_ref.dtype)


def _to_banded(w_oidhw, Wd, C, dtype):
    """PyTorch OIDHW (C,C,3,3,3) -> (9, (Wd+2)*C, Wd*C) block-banded weight.

    Row index = w_in*C + ci over the W-padded input lanes, col index = w_out*C + co; band is
    nonzero iff w_in - w_out in {0,1,2}, carrying the kw tap — so the kw loop (and the im2col
    patch pack) disappears into the matmul.
    """
    WP = Wd + 2
    w_t = jnp.transpose(w_oidhw, (2, 3, 4, 1, 0))             # (kd, kh, kw, ci, co)
    win = jnp.arange(WP)[:, None]                              # padded input w position
    wout = jnp.arange(Wd)[None, :]                             # output w position
    kw = win - wout                                            # (WP, Wd)
    valid = (kw >= 0) & (kw <= 2)
    kw_c = jnp.clip(kw, 0, 2)
    banded = w_t[:, :, kw_c, :, :]                             # (3, 3, WP, Wd, Ci, Co)
    banded = banded * valid[None, None, :, :, None, None].astype(w_t.dtype)
    banded = jnp.transpose(banded, (0, 1, 2, 4, 3, 5))         # (3, 3, WP, Ci, Wd, Co)
    return banded.reshape(9, WP * C, Wd * C).astype(dtype)


def residual_block_forward(x_ncdhw, params, mxu_dtype=jnp.bfloat16):
    """x + conv_block(x), x in PyTorch NCDHW layout. MXU operands in `mxu_dtype` (f32 accum)."""
    W1, b1, g1, bt1, W2, b2, g2, bt2 = params
    N, C, D, H, Wd = x_ncdhw.shape
    assert C % GROUPS == 0, "GroupNorm(8) requires channels divisible by 8"
    WC = Wd * C
    WPC = (Wd + 2) * C
    S = D * H * Wd

    # NCDHW -> NDHWC -> lane-dense (N, D, H, W*C) view (pure reshape of the same layout)
    x = jnp.transpose(x_ncdhw, (0, 2, 3, 4, 1)).reshape(N, D, H, WC)

    wb1 = _to_banded(W1, Wd, C, mxu_dtype)                     # (9, (W+2)*C, W*C)
    wb2 = _to_banded(W2, Wd, C, mxu_dtype)

    # Lane-dense group-averaging matrix: Q[w*C+c, w'*C+c'] = 1/(S*cg) iff same GN group.
    cg = C // GROUPS
    gid = jnp.tile(jnp.arange(C) // cg, Wd)                    # (W*C,)
    Q = (gid[:, None] == gid[None, :]).astype(jnp.float32) / float(S * cg)

    def lane(v):                                               # (C,) -> lane-dense (1, W*C)
        return jnp.tile(v.astype(jnp.float32), Wd).reshape(1, WC)

    act_spec = pl.BlockSpec((1, D, H, WC), lambda n: (n, 0, 0, 0))
    wb_spec = pl.BlockSpec((9, WPC, WC), lambda n: (0, 0, 0))
    vec_spec = pl.BlockSpec((1, WC), lambda n: (0, 0))
    q_spec = pl.BlockSpec((WC, WC), lambda n: (0, 0))

    kernel = functools.partial(_resblock_kernel, D, H, Wd, C)
    out = pl.pallas_call(
        kernel,
        out_shape=jax.ShapeDtypeStruct((N, D, H, WC), jnp.float32),
        grid_spec=pltpu.PrefetchScalarGridSpec(
            num_scalar_prefetch=0,
            grid=(N,),
            in_specs=[act_spec,
                      wb_spec, vec_spec, vec_spec, vec_spec,
                      wb_spec, vec_spec, vec_spec, vec_spec,
                      q_spec],
            out_specs=act_spec,
            scratch_shapes=[
                pltpu.VMEM((D + 2, H + 2, WPC), jnp.float32),  # replication-padded sample
                pltpu.VMEM((2, WC), jnp.float32),              # fused GN stats (sum, sumsq)
            ],
        ),
        compiler_params=pltpu.CompilerParams(
            dimension_semantics=("parallel",),
            vmem_limit_bytes=32 * 1024 * 1024,
        ),
    )(x, wb1, lane(b1), lane(g1), lane(bt1), wb2, lane(b2), lane(g2), lane(bt2), Q)

    out = out.reshape(N, D, H, Wd, C)
    return jnp.transpose(out, (0, 4, 1, 2, 3))                 # -> NCDHW


# ------------------- deterministic parameter init (synthetic) -------------------
def init_params(key, C):
    ks = jax.random.split(key, 8)
    fan_in = C * 27
    bound = 1.0 / jnp.sqrt(fan_in)
    # Conv weights in PyTorch OIDHW layout (out, in, kd, kh, kw)
    W1 = jax.random.uniform(ks[0], (C, C, 3, 3, 3), jnp.float32, -bound, bound)
    b1 = jax.random.uniform(ks[1], (C,), jnp.float32, -bound, bound)
    W2 = jax.random.uniform(ks[2], (C, C, 3, 3, 3), jnp.float32, -bound, bound)
    b2 = jax.random.uniform(ks[3], (C,), jnp.float32, -bound, bound)
    # mildly randomized gamma/beta so the affine fold is actually exercised
    g1 = 1.0 + 0.1 * jax.random.normal(ks[4], (C,), jnp.float32)
    bt1 = 0.1 * jax.random.normal(ks[5], (C,), jnp.float32)
    g2 = 1.0 + 0.1 * jax.random.normal(ks[6], (C,), jnp.float32)
    bt2 = 0.1 * jax.random.normal(ks[7], (C,), jnp.float32)
    return W1, b1, g1, bt1, W2, b2, g2, bt2


# ------------------- pure-JAX reference (for verification) -------------------
def _ref_stage(x_ncdhw, Wt, b, gamma, beta):
    N, C, D, H, Wd = x_ncdhw.shape
    xp = jnp.pad(x_ncdhw, ((0, 0), (0, 0), (1, 1), (1, 1), (1, 1)), mode="edge")
    y = lax.conv_general_dilated(
        xp, Wt, window_strides=(1, 1, 1), padding="VALID",
        dimension_numbers=("NCDHW", "OIDHW", "NCDHW"),
        precision=lax.Precision.HIGHEST)
    y = y + b.reshape(1, C, 1, 1, 1)
    yg = y.reshape(N, GROUPS, C // GROUPS, D, H, Wd)
    mean = yg.mean(axis=(2, 3, 4, 5), keepdims=True)
    var = yg.var(axis=(2, 3, 4, 5), keepdims=True)
    yn = (yg - mean) / jnp.sqrt(var + EPS)
    yn = yn.reshape(N, C, D, H, Wd) * gamma.reshape(1, C, 1, 1, 1) + beta.reshape(1, C, 1, 1, 1)
    return jnp.where(yn >= 0, yn, NEG_SLOPE * yn)


if __name__ == "__main__":
    key = jax.random.PRNGKey(0)
    kx, kp = jax.random.split(key)

    # small shapes: batch=2, in_features=16 (divisible by 8 for GroupNorm(8)), spatial=8^3
    N, C, D, H, W = 2, 16, 8, 8, 8
    x = jax.random.normal(kx, (N, C, D, H, W), jnp.float32)
    params = init_params(kp, C)

    fwd = jax.jit(residual_block_forward)
    out = jax.block_until_ready(fwd(x, params))
    assert out.shape == x.shape and out.dtype == x.dtype

    # correctness check against a pure-JAX (f32, HIGHEST-precision) reference of the module.
    # Tolerance accounts for the intentional bf16 rounding of MXU operands in both conv stages
    # (accumulation stays f32).
    W1, b1, g1, bt1, W2, b2, g2, bt2 = params
    ref = x + _ref_stage(_ref_stage(x, W1, b1, g1, bt1), W2, b2, g2, bt2)
    err = float(jnp.max(jnp.abs(out - ref)))
    assert err < 6e-2, f"max abs err {err}"

    print("KERNEL_OK")
</pallas_src>

<mosaic_0001>
module attributes {stable_mosaic.version = 11 : i64} {
  func.func @_resblock_kernel(%arg0: i32, %arg1: memref<1x8x8x128xf32, #tpu.memory_space<vmem>>, %arg2: memref<9x160x128xbf16, #tpu.memory_space<vmem>>, %arg3: memref<1x128xf32, #tpu.memory_space<vmem>>, %arg4: memref<1x128xf32, #tpu.memory_space<vmem>>, %arg5: memref<1x128xf32, #tpu.memory_space<vmem>>, %arg6: memref<9x160x128xbf16, #tpu.memory_space<vmem>>, %arg7: memref<1x128xf32, #tpu.memory_space<vmem>>, %arg8: memref<1x128xf32, #tpu.memory_space<vmem>>, %arg9: memref<1x128xf32, #tpu.memory_space<vmem>>, %arg10: memref<128x128xf32, #tpu.memory_space<vmem>>, %arg11: memref<1x8x8x128xf32, #tpu.memory_space<vmem>>, %arg12: memref<10x10x160xf32, #tpu.memory_space<vmem>>, %arg13: memref<2x128xf32, #tpu.memory_space<vmem>>) attributes {dimension_semantics = [#tpu.dimension_semantics<parallel>], iteration_bounds = array<i64: 2>, scalar_prefetch = 0 : i64, scratch_operands = 2 : i64, tpu.core_type = #tpu.core_type<tc>, window_params = [{transform_indices = @transform_0, window_bounds = array<i64: 1, 8, 8, 128>}, {pipeline_mode = #tpu.pipeline_mode<synchronous>, transform_indices = @transform_1, window_bounds = array<i64: 9, 160, 128>}, {pipeline_mode = #tpu.pipeline_mode<synchronous>, transform_indices = @transform_2, window_bounds = array<i64: 1, 128>}, {pipeline_mode = #tpu.pipeline_mode<synchronous>, transform_indices = @transform_3, window_bounds = array<i64: 1, 128>}, {pipeline_mode = #tpu.pipeline_mode<synchronous>, transform_indices = @transform_4, window_bounds = array<i64: 1, 128>}, {pipeline_mode = #tpu.pipeline_mode<synchronous>, transform_indices = @transform_5, window_bounds = array<i64: 9, 160, 128>}, {pipeline_mode = #tpu.pipeline_mode<synchronous>, transform_indices = @transform_6, window_bounds = array<i64: 1, 128>}, {pipeline_mode = #tpu.pipeline_mode<synchronous>, transform_indices = @transform_7, window_bounds = array<i64: 1, 128>}, {pipeline_mode = #tpu.pipeline_mode<synchronous>, transform_indices = @transform_8, window_bounds = array<i64: 1, 128>}, {pipeline_mode = #tpu.pipeline_mode<synchronous>, transform_indices = @transform_9, window_bounds = array<i64: 128, 128>}, {transform_indices = @transform_10, window_bounds = array<i64: 1, 8, 8, 128>}]} {
    %c0 = arith.constant 0 : index
    %c0_0 = arith.constant 0 : index
    %c0_1 = arith.constant 0 : index
    %c0_2 = arith.constant 0 : index
    %0 = vector.load %arg1[%c0, %c0_0, %c0_1, %c0_2] : memref<1x8x8x128xf32, #tpu.memory_space<vmem>>, vector<1x8x8x128xf32>
    %1 = vector.shape_cast %0 : vector<1x8x8x128xf32> to vector<8x8x128xf32>
    %c0_3 = arith.constant 0 : index
    %c0_4 = arith.constant 0 : index
    %2 = vector.load %arg3[%c0_3, %c0_4] : memref<1x128xf32, #tpu.memory_space<vmem>>, vector<1x128xf32>
    %c0_5 = arith.constant 0 : index
    %c0_6 = arith.constant 0 : index
    %3 = vector.load %arg4[%c0_5, %c0_6] : memref<1x128xf32, #tpu.memory_space<vmem>>, vector<1x128xf32>
    %c0_7 = arith.constant 0 : index
    %c0_8 = arith.constant 0 : index
    %4 = vector.load %arg5[%c0_7, %c0_8] : memref<1x128xf32, #tpu.memory_space<vmem>>, vector<1x128xf32>
    %5 = vector.extract_strided_slice %1 {offsets = [0, 0, 0], sizes = [1, 1, 16], strides = [1, 1, 1]} : vector<8x8x128xf32> to vector<1x1x16xf32>
    %c0_9 = arith.constant 0 : index
    %c0_10 = arith.constant 0 : index
    %c0_11 = arith.constant 0 : index
    %6 = vector.load %arg12[%c0_9, %c0_10, %c0_11] : memref<10x10x160xf32, #tpu.memory_space<vmem>>, vector<1x1x16xf32>
    tpu.vector_store %arg12[%c0_9, %c0_10, %c0_11], %5 {strides = array<i32>} : memref<10x10x160xf32, #tpu.memory_space<vmem>>, vector<1x1x16xf32>,
    %7 = vector.extract_strided_slice %1 {offsets = [0, 0, 0], sizes = [1, 1, 128], strides = [1, 1, 1]} : vector<8x8x128xf32> to vector<1x1x128xf32>
    %c0_12 = arith.constant 0 : index
    %c0_13 = arith.constant 0 : index
    %c16 = arith.constant 16 : index
    %8 = vector.load %arg12[%c0_12, %c0_13, %c16] : memref<10x10x160xf32, #tpu.memory_space<vmem>>, vector<1x1x128xf32>
    tpu.vector_store %arg12[%c0_12, %c0_13, %c16], %7 {strides = array<i32>} : memref<10x10x160xf32, #tpu.memory_space<vmem>>, vector<1x1x128xf32>,
    %9 = vector.extract_strided_slice %1 {offsets = [0, 0, 112], sizes = [1, 1, 16], strides = [1, 1, 1]} : vector<8x8x128xf32> to vector<1x1x16xf32>
    %c0_14 = arith.constant 0 : index
    %c0_15 = arith.constant 0 : index
    %c144 = arith.constant 144 : index
    %10 = vector.load %arg12[%c0_14, %c0_15, %c144] : memref<10x10x160xf32, #tpu.memory_space<vmem>>, vector<1x1x16xf32>
    tpu.vector_store %arg12[%c0_14, %c0_15, %c144], %9 {strides = array<i32>} : memref<10x10x160xf32, #tpu.memory_space<vmem>>, vector<1x1x16xf32>,
    %11 = vector.extract_strided_slice %1 {offsets = [0, 0, 0], sizes = [1, 8, 16], strides = [1, 1, 1]} : vector<8x8x128xf32> to vector<1x8x16xf32>
    %c0_16 = arith.constant 0 : index
    %c1 = arith.constant 1 : index
    %c0_17 = arith.constant 0 : index
    %12 = vector.load %arg12[%c0_16, %c1, %c0_17] : memref<10x10x160xf32, #tpu.memory_space<vmem>>, vector<1x8x16xf32>
    tpu.vector_store %arg12[%c0_16, %c1, %c0_17], %11 {strides = array<i32>} : memref<10x10x160xf32, #tpu.memory_space<vmem>>, vector<1x8x16xf32>,
    %13 = vector.extract_strided_slice %1 {offsets = [0, 0, 0], sizes = [1, 8, 128], strides = [1, 1, 1]} : vector<8x8x128xf32> to vector<1x8x128xf32>
    %c0_18 = arith.constant 0 : index
    %c1_19 = arith.constant 1 : index
    %c16_20 = arith.constant 16 : index
    %14 = vector.load %arg12[%c0_18, %c1_19, %c16_20] : memref<10x10x160xf32, #tpu.memory_space<vmem>>, vector<1x8x128xf32>
    tpu.vector_store %arg12[%c0_18, %c1_19, %c16_20], %13 {strides = array<i32>} : memref<10x10x160xf32, #tpu.memory_space<vmem>>, vector<1x8x128xf32>,
    %15 = vector.extract_strided_slice %1 {offsets = [0, 0, 112], sizes = [1, 8, 16], strides = [1, 1, 1]} : vector<8x8x128xf32> to vector<1x8x16xf32>
    %c0_21 = arith.constant 0 : index
    %c1_22 = arith.constant 1 : index
    %c144_23 = arith.constant 144 : index
    %16 = vector.load %arg12[%c0_21, %c1_22, %c144_23] : memref<10x10x160xf32, #tpu.memory_space<vmem>>, vector<1x8x16xf32>
    tpu.vector_store %arg12[%c0_21, %c1_22, %c144_23], %15 {strides = array<i32>} : memref<10x10x160xf32, #tpu.memory_space<vmem>>, vector<1x8x16xf32>,
    %17 = vector.extract_strided_slice %1 {offsets = [0, 7, 0], sizes = [1, 1, 16], strides = [1, 1, 1]} : vector<8x8x128xf32> to vector<1x1x16xf32>
    %c0_24 = arith.constant 0 : index
    %c9 = arith.constant 9 : index
    %c0_25 = arith.constant 0 : index
    %18 = vector.load %arg12[%c0_24, %c9, %c0_25] : memref<10x10x160xf32, #tpu.memory_space<vmem>>, vector<1x1x16xf32>
    tpu.vector_store %arg12[%c0_24, %c9, %c0_25], %17 {strides = array<i32>} : memref<10x10x160xf32, #tpu.memory_space<vmem>>, vector<1x1x16xf32>,
    %19 = vector.extract_strided_slice %1 {offsets = [0, 7, 0], sizes = [1, 1, 128], strides = [1, 1, 1]} : vector<8x8x128xf32> to vector<1x1x128xf32>
    %c0_26 = arith.constant 0 : index
    %c9_27 = arith.constant 9 : index
    %c16_28 = arith.constant 16 : index
    %20 = vector.load %arg12[%c0_26, %c9_27, %c16_28] : memref<10x10x160xf32, #tpu.memory_space<vmem>>, vector<1x1x128xf32>
    tpu.vector_store %arg12[%c0_26, %c9_27, %c16_28], %19 {strides = array<i32>} : memref<10x10x160xf32, #tpu.memory_space<vmem>>, vector<1x1x128xf32>,
    %21 = vector.extract_strided_slice %1 {offsets = [0, 7, 112], sizes = [1, 1, 16], strides = [1, 1, 1]} : vector<8x8x128xf32> to vector<1x1x16xf32>
    %c0_29 = arith.constant 0 : index
    %c9_30 = arith.constant 9 : index
    %c144_31 = arith.constant 144 : index
    %22 = vector.load %arg12[%c0_29, %c9_30, %c144_31] : memref<10x10x160xf32, #tpu.memory_space<vmem>>, vector<1x1x16xf32>
    tpu.vector_store %arg12[%c0_29, %c9_30, %c144_31], %21 {strides = array<i32>} : memref<10x10x160xf32, #tpu.memory_space<vmem>>, vector<1x1x16xf32>,
    %23 = vector.extract_strided_slice %1 {offsets = [0, 0, 0], sizes = [8, 1, 16], strides = [1, 1, 1]} : vector<8x8x128xf32> to vector<8x1x16xf32>
    %c1_32 = arith.constant 1 : index
    %c0_33 = arith.constant 0 : index
    %c0_34 = arith.constant 0 : index
    %24 = vector.load %arg12[%c1_32, %c0_33, %c0_34] : memref<10x10x160xf32, #tpu.memory_space<vmem>>, vector<8x1x16xf32>
    tpu.vector_store %arg12[%c1_32, %c0_33, %c0_34], %23 {strides = array<i32>} : memref<10x10x160xf32, #tpu.memory_space<vmem>>, vector<8x1x16xf32>,
    %25 = vector.extract_strided_slice %1 {offsets = [0, 0, 0], sizes = [8, 1, 128], strides = [1, 1, 1]} : vector<8x8x128xf32> to vector<8x1x128xf32>
    %c1_35 = arith.constant 1 : index
    %c0_36 = arith.constant 0 : index
    %c16_37 = arith.constant 16 : index
    %26 = vector.load %arg12[%c1_35, %c0_36, %c16_37] : memref<10x10x160xf32, #tpu.memory_space<vmem>>, vector<8x1x128xf32>
    tpu.vector_store %arg12[%c1_35, %c0_36, %c16_37], %25 {strides = array<i32>} : memref<10x10x160xf32, #tpu.memory_space<vmem>>, vector<8x1x128xf32>,
    %27 = vector.extract_strided_slice %1 {offsets = [0, 0, 112], sizes = [8, 1, 16], strides = [1, 1, 1]} : vector<8x8x128xf32> to vector<8x1x16xf32>
    %c1_38 = arith.constant 1 : index
    %c0_39 = arith.constant 0 : index
    %c144_40 = arith.constant 144 : index
    %28 = vector.load %arg12[%c1_38, %c0_39, %c144_40] : memref<10x10x160xf32, #tpu.memory_space<vmem>>, vector<8x1x16xf32>
    tpu.vector_store %arg12[%c1_38, %c0_39, %c144_40], %27 {strides = array<i32>} : memref<10x10x160xf32, #tpu.memory_space<vmem>>, vector<8x1x16xf32>,
    %29 = vector.extract_strided_slice %1 {offsets = [0, 0, 0], sizes = [8, 8, 16], strides = [1, 1, 1]} : vector<8x8x128xf32> to vector<8x8x16xf32>
    %c1_41 = arith.constant 1 : index
    %c1_42 = arith.constant 1 : index
    %c0_43 = arith.constant 0 : index
    %30 = vector.load %arg12[%c1_41, %c1_42, %c0_43] : memref<10x10x160xf32, #tpu.memory_space<vmem>>, vector<8x8x16xf32>
    tpu.vector_store %arg12[%c1_41, %c1_42, %c0_43], %29 {strides = array<i32>} : memref<10x10x160xf32, #tpu.memory_space<vmem>>, vector<8x8x16xf32>,
    %c1_44 = arith.constant 1 : index
    %c1_45 = arith.constant 1 : index
    %c16_46 = arith.constant 16 : index
    %31 = vector.load %arg12[%c1_44, %c1_45, %c16_46] : memref<10x10x160xf32, #tpu.memory_space<vmem>>, vector<8x8x128xf32>
    tpu.vector_store %arg12[%c1_44, %c1_45, %c16_46], %1 {strides = array<i32>} : memref<10x10x160xf32, #tpu.memory_space<vmem>>, vector<8x8x128xf32>,
    %32 = vector.extract_strided_slice %1 {offsets = [0, 0, 112], sizes = [8, 8, 16], strides = [1, 1, 1]} : vector<8x8x128xf32> to vector<8x8x16xf32>
    %c1_47 = arith.constant 1 : index
    %c1_48 = arith.constant 1 : index
    %c144_49 = arith.constant 144 : index
    %33 = vector.load %arg12[%c1_47, %c1_48, %c144_49] : memref<10x10x160xf32, #tpu.memory_space<vmem>>, vector<8x8x16xf32>
    tpu.vector_store %arg12[%c1_47, %c1_48, %c144_49], %32 {strides = array<i32>} : memref<10x10x160xf32, #tpu.memory_space<vmem>>, vector<8x8x16xf32>,
    %34 = vector.extract_strided_slice %1 {offsets = [0, 7, 0], sizes = [8, 1, 16], strides = [1, 1, 1]} : vector<8x8x128xf32> to vector<8x1x16xf32>
    %c1_50 = arith.constant 1 : index
    %c9_51 = arith.constant 9 : index
    %c0_52 = arith.constant 0 : index
    %35 = vector.load %arg12[%c1_50, %c9_51, %c0_52] : memref<10x10x160xf32, #tpu.memory_space<vmem>>, vector<8x1x16xf32>
    tpu.vector_store %arg12[%c1_50, %c9_51, %c0_52], %34 {strides = array<i32>} : memref<10x10x160xf32, #tpu.memory_space<vmem>>, vector<8x1x16xf32>,
    %36 = vector.extract_strided_slice %1 {offsets = [0, 7, 0], sizes = [8, 1, 128], strides = [1, 1, 1]} : vector<8x8x128xf32> to vector<8x1x128xf32>
    %c1_53 = arith.constant 1 : index
    %c9_54 = arith.constant 9 : index
    %c16_55 = arith.constant 16 : index
    %37 = vector.load %arg12[%c1_53, %c9_54, %c16_55] : memref<10x10x160xf32, #tpu.memory_space<vmem>>, vector<8x1x128xf32>
    tpu.vector_store %arg12[%c1_53, %c9_54, %c16_55], %36 {strides = array<i32>} : memref<10x10x160xf32, #tpu.memory_space<vmem>>, vector<8x1x128xf32>,
    %38 = vector.extract_strided_slice %1 {offsets = [0, 7, 112], sizes = [8, 1, 16], strides = [1, 1, 1]} : vector<8x8x128xf32> to vector<8x1x16xf32>
    %c1_56 = arith.constant 1 : index
    %c9_57 = arith.constant 9 : index
    %c144_58 = arith.constant 144 : index
    %39 = vector.load %arg12[%c1_56, %c9_57, %c144_58] : memref<10x10x160xf32, #tpu.memory_space<vmem>>, vector<8x1x16xf32>
    tpu.vector_store %arg12[%c1_56, %c9_57, %c144_58], %38 {strides = array<i32>} : memref<10x10x160xf32, #tpu.memory_space<vmem>>, vector<8x1x16xf32>,
    %40 = vector.extract_strided_slice %1 {offsets = [7, 0, 0], sizes = [1, 1, 16], strides = [1, 1, 1]} : vector<8x8x128xf32> to vector<1x1x16xf32>
    %c9_59 = arith.constant 9 : index
    %c0_60 = arith.constant 0 : index
    %c0_61 = arith.constant 0 : index
    %41 = vector.load %arg12[%c9_59, %c0_60, %c0_61] : memref<10x10x160xf32, #tpu.memory_space<vmem>>, vector<1x1x16xf32>
    tpu.vector_store %arg12[%c9_59, %c0_60, %c0_61], %40 {strides = array<i32>} : memref<10x10x160xf32, #tpu.memory_space<vmem>>, vector<1x1x16xf32>,
    %42 = vector.extract_strided_slice %1 {offsets = [7, 0, 0], sizes = [1, 1, 128], strides = [1, 1, 1]} : vector<8x8x128xf32> to vector<1x1x128xf32>
    %c9_62 = arith.constant 9 : index
    %c0_63 = arith.constant 0 : index
    %c16_64 = arith.constant 16 : index
    %43 = vector.load %arg12[%c9_62, %c0_63, %c16_64] : memref<10x10x160xf32, #tpu.memory_space<vmem>>, vector<1x1x128xf32>
    tpu.vector_store %arg12[%c9_62, %c0_63, %c16_64], %42 {strides = array<i32>} : memref<10x10x160xf32, #tpu.memory_space<vmem>>, vector<1x1x128xf32>,
    %44 = vector.extract_strided_slice %1 {offsets = [7, 0, 112], sizes = [1, 1, 16], strides = [1, 1, 1]} : vector<8x8x128xf32> to vector<1x1x16xf32>
    %c9_65 = arith.constant 9 : index
    %c0_66 = arith.constant 0 : index
    %c144_67 = arith.constant 144 : index
    %45 = vector.load %arg12[%c9_65, %c0_66, %c144_67] : memref<10x10x160xf32, #tpu.memory_space<vmem>>, vector<1x1x16xf32>
    tpu.vector_store %arg12[%c9_65, %c0_66, %c144_67], %44 {strides = array<i32>} : memref<10x10x160xf32, #tpu.memory_space<vmem>>, vector<1x1x16xf32>,
    %46 = vector.extract_strided_slice %1 {offsets = [7, 0, 0], sizes = [1, 8, 16], strides = [1, 1, 1]} : vector<8x8x128xf32> to vector<1x8x16xf32>
    %c9_68 = arith.constant 9 : index
    %c1_69 = arith.constant 1 : index
    %c0_70 = arith.constant 0 : index
    %47 = vector.load %arg12[%c9_68, %c1_69, %c0_70] : memref<10x10x160xf32, #tpu.memory_space<vmem>>, vector<1x8x16xf32>
    tpu.vector_store %arg12[%c9_68, %c1_69, %c0_70], %46 {strides = array<i32>} : memref<10x10x160xf32, #tpu.memory_space<vmem>>, vector<1x8x16xf32>,
    %48 = vector.extract_strided_slice %1 {offsets = [7, 0, 0], sizes = [1, 8, 128], strides = [1, 1, 1]} : vector<8x8x128xf32> to vector<1x8x128xf32>
    %c9_71 = arith.constant 9 : index
    %c1_72 = arith.constant 1 : index
    %c16_73 = arith.constant 16 : index
    %49 = vector.load %arg12[%c9_71, %c1_72, %c16_73] : memref<10x10x160xf32, #tpu.memory_space<vmem>>, vector<1x8x128xf32>
    tpu.vector_store %arg12[%c9_71, %c1_72, %c16_73], %48 {strides = array<i32>} : memref<10x10x160xf32, #tpu.memory_space<vmem>>, vector<1x8x128xf32>,
    %50 = vector.extract_strided_slice %1 {offsets = [7, 0, 112], sizes = [1, 8, 16], strides = [1, 1, 1]} : vector<8x8x128xf32> to vector<1x8x16xf32>
    %c9_74 = arith.constant 9 : index
    %c1_75 = arith.constant 1 : index
    %c144_76 = arith.constant 144 : index
    %51 = vector.load %arg12[%c9_74, %c1_75, %c144_76] : memref<10x10x160xf32, #tpu.memory_space<vmem>>, vector<1x8x16xf32>
    tpu.vector_store %arg12[%c9_74, %c1_75, %c144_76], %50 {strides = array<i32>} : memref<10x10x160xf32, #tpu.memory_space<vmem>>, vector<1x8x16xf32>,
    %52 = vector.extract_strided_slice %1 {offsets = [7, 7, 0], sizes = [1, 1, 16], strides = [1, 1, 1]} : vector<8x8x128xf32> to vector<1x1x16xf32>
    %c9_77 = arith.constant 9 : index
    %c9_78 = arith.constant 9 : index
    %c0_79 = arith.constant 0 : index
    %53 = vector.load %arg12[%c9_77, %c9_78, %c0_79] : memref<10x10x160xf32, #tpu.memory_space<vmem>>, vector<1x1x16xf32>
    tpu.vector_store %arg12[%c9_77, %c9_78, %c0_79], %52 {strides = array<i32>} : memref<10x10x160xf32, #tpu.memory_space<vmem>>, vector<1x1x16xf32>,
    %54 = vector.extract_strided_slice %1 {offsets = [7, 7, 0], sizes = [1, 1, 128], strides = [1, 1, 1]} : vector<8x8x128xf32> to vector<1x1x128xf32>
    %c9_80 = arith.constant 9 : index
    %c9_81 = arith.constant 9 : index
    %c16_82 = arith.constant 16 : index
    %55 = vector.load %arg12[%c9_80, %c9_81, %c16_82] : memref<10x10x160xf32, #tpu.memory_space<vmem>>, vector<1x1x128xf32>
    tpu.vector_store %arg12[%c9_80, %c9_81, %c16_82], %54 {strides = array<i32>} : memref<10x10x160xf32, #tpu.memory_space<vmem>>, vector<1x1x128xf32>,
    %56 = vector.extract_strided_slice %1 {offsets = [7, 7, 112], sizes = [1, 1, 16], strides = [1, 1, 1]} : vector<8x8x128xf32> to vector<1x1x16xf32>
    %c9_83 = arith.constant 9 : index
    %c9_84 = arith.constant 9 : index
    %c144_85 = arith.constant 144 : index
    %57 = vector.load %arg12[%c9_83, %c9_84, %c144_85] : memref<10x10x160xf32, #tpu.memory_space<vmem>>, vector<1x1x16xf32>
    tpu.vector_store %arg12[%c9_83, %c9_84, %c144_85], %56 {strides = array<i32>} : memref<10x10x160xf32, #tpu.memory_space<vmem>>, vector<1x1x16xf32>,
    %cst = arith.constant 0.000000e+00 : f32
    %58 = vector.broadcast %cst : f32 to vector<64x128xf32>
    %c0_86 = arith.constant 0 : index
    %c0_87 = arith.constant 0 : index
    %c0_88 = arith.constant 0 : index
    %59 = vector.load %arg12[%c0_86, %c0_87, %c0_88] : memref<10x10x160xf32, #tpu.memory_space<vmem>>, vector<8x8x160xf32>
    %60 = vector.shape_cast %59 : vector<8x8x160xf32> to vector<64x160xf32>
    %61 = arith.truncf %60 : vector<64x160xf32> to vector<64x160xbf16>
    %c0_89 = arith.constant 0 : index
    %c0_90 = arith.constant 0 : index
    %c0_91 = arith.constant 0 : index
    %62 = vector.load %arg2[%c0_89, %c0_90, %c0_91] : memref<9x160x128xbf16, #tpu.memory_space<vmem>>, vector<1x160x128xbf16>
    %63 = vector.shape_cast %62 : vector<1x160x128xbf16> to vector<160x128xbf16>
    %cst_92 = arith.constant dense<0.000000e+00> : vector<64x128xf32>
    %64 = tpu.matmul %61, %63, %cst_92 {dimension_numbers = #tpu.dot_dimension_numbers<[1], [0], [0], [1], [0, 0, 1, 1], [], []>} : vector<64x160xbf16>, vector<160x128xbf16>, vector<64x128xf32> -> vector<64x128xf32>
    %65 = arith.addf %58, %64 : vector<64x128xf32>
    %c0_93 = arith.constant 0 : index
    %c1_94 = arith.constant 1 : index
    %c0_95 = arith.constant 0 : index
    %66 = vector.load %arg12[%c0_93, %c1_94, %c0_95] : memref<10x10x160xf32, #tpu.memory_space<vmem>>, vector<8x8x160xf32>
    %67 = vector.shape_cast %66 : vector<8x8x160xf32> to vector<64x160xf32>
    %68 = arith.truncf %67 : vector<64x160xf32> to vector<64x160xbf16>
    %c1_96 = arith.constant 1 : index
    %c0_97 = arith.constant 0 : index
    %c0_98 = arith.constant 0 : index
    %69 = vector.load %arg2[%c1_96, %c0_97, %c0_98] : memref<9x160x128xbf16, #tpu.memory_space<vmem>>, vector<1x160x128xbf16>
    %70 = vector.shape_cast %69 : vector<1x160x128xbf16> to vector<160x128xbf16>
    %cst_99 = arith.constant dense<0.000000e+00> : vector<64x128xf32>
    %71 = tpu.matmul %68, %70, %cst_99 {dimension_numbers = #tpu.dot_dimension_numbers<[1], [0], [0], [1], [0, 0, 1, 1], [], []>} : vector<64x160xbf16>, vector<160x128xbf16>, vector<64x128xf32> -> vector<64x128xf32>
    %72 = arith.addf %65, %71 : vector<64x128xf32>
    %c0_100 = arith.constant 0 : index
    %c2 = arith.constant 2 : index
    %c0_101 = arith.constant 0 : index
    %73 = vector.load %arg12[%c0_100, %c2, %c0_101] : memref<10x10x160xf32, #tpu.memory_space<vmem>>, vector<8x8x160xf32>
    %74 = vector.shape_cast %73 : vector<8x8x160xf32> to vector<64x160xf32>
    %75 = arith.truncf %74 : vector<64x160xf32> to vector<64x160xbf16>
    %c2_102 = arith.constant 2 : index
    %c0_103 = arith.constant 0 : index
    %c0_104 = arith.constant 0 : index
    %76 = vector.load %arg2[%c2_102, %c0_103, %c0_104] : memref<9x160x128xbf16, #tpu.memory_space<vmem>>, vector<1x160x128xbf16>
    %77 = vector.shape_cast %76 : vector<1x160x128xbf16> to vector<160x128xbf16>
    %cst_105 = arith.constant dense<0.000000e+00> : vector<64x128xf32>
    %78 = tpu.matmul %75, %77, %cst_105 {dimension_numbers = #tpu.dot_dimension_numbers<[1], [0], [0], [1], [0, 0, 1, 1], [], []>} : vector<64x160xbf16>, vector<160x128xbf16>, vector<64x128xf32> -> vector<64x128xf32>
    %79 = arith.addf %72, %78 : vector<64x128xf32>
    %c1_106 = arith.constant 1 : index
    %c0_107 = arith.constant 0 : index
    %c0_108 = arith.constant 0 : index
    %80 = vector.load %arg12[%c1_106, %c0_107, %c0_108] : memref<10x10x160xf32, #tpu.memory_space<vmem>>, vector<8x8x160xf32>
    %81 = vector.shape_cast %80 : vector<8x8x160xf32> to vector<64x160xf32>
    %82 = arith.truncf %81 : vector<64x160xf32> to vector<64x160xbf16>
    %c3 = arith.constant 3 : index
    %c0_109 = arith.constant 0 : index
    %c0_110 = arith.constant 0 : index
    %83 = vector.load %arg2[%c3, %c0_109, %c0_110] : memref<9x160x128xbf16, #tpu.memory_space<vmem>>, vector<1x160x128xbf16>
    %84 = vector.shape_cast %83 : vector<1x160x128xbf16> to vector<160x128xbf16>
    %cst_111 = arith.constant dense<0.000000e+00> : vector<64x128xf32>
    %85 = tpu.matmul %82, %84, %cst_111 {dimension_numbers = #tpu.dot_dimension_numbers<[1], [0], [0], [1], [0, 0, 1, 1], [], []>} : vector<64x160xbf16>, vector<160x128xbf16>, vector<64x128xf32> -> vector<64x128xf32>
    %86 = arith.addf %79, %85 : vector<64x128xf32>
    %c1_112 = arith.constant 1 : index
    %c1_113 = arith.constant 1 : index
    %c0_114 = arith.constant 0 : index
    %87 = vector.load %arg12[%c1_112, %c1_113, %c0_114] : memref<10x10x160xf32, #tpu.memory_space<vmem>>, vector<8x8x160xf32>
    %88 = vector.shape_cast %87 : vector<8x8x160xf32> to vector<64x160xf32>
    %89 = arith.truncf %88 : vector<64x160xf32> to vector<64x160xbf16>
    %c4 = arith.constant 4 : index
    %c0_115 = arith.constant 0 : index
    %c0_116 = arith.constant 0 : index
    %90 = vector.load %arg2[%c4, %c0_115, %c0_116] : memref<9x160x128xbf16, #tpu.memory_space<vmem>>, vector<1x160x128xbf16>
    %91 = vector.shape_cast %90 : vector<1x160x128xbf16> to vector<160x128xbf16>
    %cst_117 = arith.constant dense<0.000000e+00> : vector<64x128xf32>
    %92 = tpu.matmul %89, %91, %cst_117 {dimension_numbers = #tpu.dot_dimension_numbers<[1], [0], [0], [1], [0, 0, 1, 1], [], []>} : vector<64x160xbf16>, vector<160x128xbf16>, vector<64x128xf32> -> vector<64x128xf32>
    %93 = arith.addf %86, %92 : vector<64x128xf32>
    %c1_118 = arith.constant 1 : index
    %c2_119 = arith.constant 2 : index
    %c0_120 = arith.constant 0 : index
    %94 = vector.load %arg12[%c1_118, %c2_119, %c0_120] : memref<10x10x160xf32, #tpu.memory_space<vmem>>, vector<8x8x160xf32>
    %95 = vector.shape_cast %94 : vector<8x8x160xf32> to vector<64x160xf32>
    %96 = arith.truncf %95 : vector<64x160xf32> to vector<64x160xbf16>
    %c5 = arith.constant 5 : index
    %c0_121 = arith.constant 0 : index
    %c0_122 = arith.constant 0 : index
    %97 = vector.load %arg2[%c5, %c0_121, %c0_122] : memref<9x160x128xbf16, #tpu.memory_space<vmem>>, vector<1x160x128xbf16>
    %98 = vector.shape_cast %97 : vector<1x160x128xbf16> to vector<160x128xbf16>
    %cst_123 = arith.constant dense<0.000000e+00> : vector<64x128xf32>
    %99 = tpu.matmul %96, %98, %cst_123 {dimension_numbers = #tpu.dot_dimension_numbers<[1], [0], [0], [1], [0, 0, 1, 1], [], []>} : vector<64x160xbf16>, vector<160x128xbf16>, vector<64x128xf32> -> vector<64x128xf32>
    %100 = arith.addf %93, %99 : vector<64x128xf32>
    %c2_124 = arith.constant 2 : index
    %c0_125 = arith.constant 0 : index
    %c0_126 = arith.constant 0 : index
    %101 = vector.load %arg12[%c2_124, %c0_125, %c0_126] : memref<10x10x160xf32, #tpu.memory_space<vmem>>, vector<8x8x160xf32>
    %102 = vector.shape_cast %101 : vector<8x8x160xf32> to vector<64x160xf32>
    %103 = arith.truncf %102 : vector<64x160xf32> to vector<64x160xbf16>
    %c6 = arith.constant 6 : index
    %c0_127 = arith.constant 0 : index
    %c0_128 = arith.constant 0 : index
    %104 = vector.load %arg2[%c6, %c0_127, %c0_128] : memref<9x160x128xbf16, #tpu.memory_space<vmem>>, vector<1x160x128xbf16>
    %105 = vector.shape_cast %104 : vector<1x160x128xbf16> to vector<160x128xbf16>
    %cst_129 = arith.constant dense<0.000000e+00> : vector<64x128xf32>
    %106 = tpu.matmul %103, %105, %cst_129 {dimension_numbers = #tpu.dot_dimension_numbers<[1], [0], [0], [1], [0, 0, 1, 1], [], []>} : vector<64x160xbf16>, vector<160x128xbf16>, vector<64x128xf32> -> vector<64x128xf32>
    %107 = arith.addf %100, %106 : vector<64x128xf32>
    %c2_130 = arith.constant 2 : index
    %c1_131 = arith.constant 1 : index
    %c0_132 = arith.constant 0 : index
    %108 = vector.load %arg12[%c2_130, %c1_131, %c0_132] : memref<10x10x160xf32, #tpu.memory_space<vmem>>, vector<8x8x160xf32>
    %109 = vector.shape_cast %108 : vector<8x8x160xf32> to vector<64x160xf32>
    %110 = arith.truncf %109 : vector<64x160xf32> to vector<64x160xbf16>
    %c7 = arith.constant 7 : index
    %c0_133 = arith.constant 0 : index
    %c0_134 = arith.constant 0 : index
    %111 = vector.load %arg2[%c7, %c0_133, %c0_134] : memref<9x160x128xbf16, #tpu.memory_space<vmem>>, vector<1x160x128xbf16>
    %112 = vector.shape_cast %111 : vector<1x160x128xbf16> to vector<160x128xbf16>
    %cst_135 = arith.constant dense<0.000000e+00> : vector<64x128xf32>
    %113 = tpu.matmul %110, %112, %cst_135 {dimension_numbers = #tpu.dot_dimension_numbers<[1], [0], [0], [1], [0, 0, 1, 1], [], []>} : vector<64x160xbf16>, vector<160x128xbf16>, vector<64x128xf32> -> vector<64x128xf32>
    %114 = arith.addf %107, %113 : vector<64x128xf32>
    %c2_136 = arith.constant 2 : index
    %c2_137 = arith.constant 2 : index
    %c0_138 = arith.constant 0 : index
    %115 = vector.load %arg12[%c2_136, %c2_137, %c0_138] : memref<10x10x160xf32, #tpu.memory_space<vmem>>, vector<8x8x160xf32>
    %116 = vector.shape_cast %115 : vector<8x8x160xf32> to vector<64x160xf32>
    %117 = arith.truncf %116 : vector<64x160xf32> to vector<64x160xbf16>
    %c8 = arith.constant 8 : index
    %c0_139 = arith.constant 0 : index
    %c0_140 = arith.constant 0 : index
    %118 = vector.load %arg2[%c8, %c0_139, %c0_140] : memref<9x160x128xbf16, #tpu.memory_space<vmem>>, vector<1x160x128xbf16>
    %119 = vector.shape_cast %118 : vector<1x160x128xbf16> to vector<160x128xbf16>
    %cst_141 = arith.constant dense<0.000000e+00> : vector<64x128xf32>
    %120 = tpu.matmul %117, %119, %cst_141 {dimension_numbers = #tpu.dot_dimension_numbers<[1], [0], [0], [1], [0, 0, 1, 1], [], []>} : vector<64x160xbf16>, vector<160x128xbf16>, vector<64x128xf32> -> vector<64x128xf32>
    %121 = arith.addf %114, %120 : vector<64x128xf32>
    %cst_142 = arith.constant dense<0.000000e+00> : vector<128xf32>
    %122 = vector.multi_reduction <add>, %121, %cst_142 [0] : vector<64x128xf32> to vector<128xf32>
    %123 = vector.shape_cast %122 : vector<128xf32> to vector<1x128xf32>
    %124 = arith.mulf %121, %121 : vector<64x128xf32>
    %cst_143 = arith.constant dense<0.000000e+00> : vector<128xf32>
    %125 = vector.multi_reduction <add>, %124, %cst_143 [0] : vector<64x128xf32> to vector<128xf32>
    %126 = vector.shape_cast %125 : vector<128xf32> to vector<1x128xf32>
    %cst_144 = arith.constant 6.400000e+01 : f32
    %127 = vector.broadcast %cst_144 : f32 to vector<1x128xf32>
    %128 = arith.mulf %127, %2 : vector<1x128xf32>
    %129 = arith.addf %123, %128 : vector<1x128xf32>
    %c0_145 = arith.constant 0 : index
    %c0_146 = arith.constant 0 : index
    %130 = vector.load %arg13[%c0_145, %c0_146] : memref<2x128xf32, #tpu.memory_space<vmem>>, vector<1x128xf32>
    tpu.vector_store %arg13[%c0_145, %c0_146], %129 {strides = array<i32>} : memref<2x128xf32, #tpu.memory_space<vmem>>, vector<1x128xf32>,
    %cst_147 = arith.constant 2.000000e+00 : f32
    %131 = vector.broadcast %cst_147 : f32 to vector<1x128xf32>
    %132 = arith.mulf %131, %2 : vector<1x128xf32>
    %133 = arith.mulf %132, %123 : vector<1x128xf32>
    %134 = arith.addf %126, %133 : vector<1x128xf32>
    %135 = arith.mulf %2, %2 : vector<1x128xf32>
    %cst_148 = arith.constant 6.400000e+01 : f32
    %136 = vector.broadcast %cst_148 : f32 to vector<1x128xf32>
    %137 = arith.mulf %136, %135 : vector<1x128xf32>
    %138 = arith.addf %134, %137 : vector<1x128xf32>
    %c1_149 = arith.constant 1 : index
    %c0_150 = arith.constant 0 : index
    %139 = vector.load %arg13[%c1_149, %c0_150] : memref<2x128xf32, #tpu.memory_space<vmem>>, vector<1x128xf32>
    tpu.vector_store %arg13[%c1_149, %c0_150], %138 {strides = array<i32>} : memref<2x128xf32, #tpu.memory_space<vmem>>, vector<1x128xf32>,
    %c0_151 = arith.constant 0 : index
    %c0_152 = arith.constant 0 : index
    %140 = vector.load %arg13[%c0_151, %c0_152] : memref<2x128xf32, #tpu.memory_space<vmem>>, vector<2x128xf32>
    %c0_153 = arith.constant 0 : index
    %c0_154 = arith.constant 0 : index
    %141 = vector.load %arg10[%c0_153, %c0_154] : memref<128x128xf32, #tpu.memory_space<vmem>>, vector<128x128xf32>
    %cst_155 = arith.constant dense<0.000000e+00> : vector<2x128xf32>
    %142 = tpu.matmul %140, %141, %cst_155 {dimension_numbers = #tpu.dot_dimension_numbers<[1], [0], [0], [1], [0, 0, 1, 1], [], []>} : vector<2x128xf32>, vector<128x128xf32>, vector<2x128xf32> -> vector<2x128xf32>
    %143 = vector.extract_strided_slice %142 {offsets = [0, 0], sizes = [1, 128], strides = [1, 1]} : vector<2x128xf32> to vector<1x128xf32>
    %144 = vector.extract_strided_slice %142 {offsets = [1, 0], sizes = [1, 128], strides = [1, 1]} : vector<2x128xf32> to vector<1x128xf32>
    %145 = arith.mulf %143, %143 : vector<1x128xf32>
    %146 = arith.subf %144, %145 : vector<1x128xf32>
    %cst_156 = arith.constant 9.99999974E-6 : f32
    %147 = vector.broadcast %cst_156 : f32 to vector<1x128xf32>
    %148 = arith.addf %146, %147 : vector<1x128xf32>
    %149 = math.rsqrt %148 : vector<1x128xf32>
    %150 = arith.mulf %3, %149 : vector<1x128xf32>
    %151 = arith.subf %2, %143 : vector<1x128xf32>
    %152 = arith.mulf %151, %150 : vector<1x128xf32>
    %153 = arith.addf %152, %4 : vector<1x128xf32>
    %154 = vector.broadcast %150 : vector<1x128xf32> to vector<64x128xf32>
    %155 = arith.mulf %154, %121 : vector<64x128xf32>
    %156 = vector.broadcast %153 : vector<1x128xf32> to vector<64x128xf32>
    %157 = arith.addf %155, %156 : vector<64x128xf32>
    %cst_157 = arith.constant 0.000000e+00 : f32
    %158 = vector.broadcast %cst_157 : f32 to vector<64x128xf32>
    %159 = arith.cmpf oge, %157, %158 : vector<64x128xf32>
    %cst_158 = arith.constant 0.00999999977 : f32
    %160 = vector.broadcast %cst_158 : f32 to vector<64x128xf32>
    %161 = arith.mulf %160, %157 : vector<64x128xf32>
    %162 = arith.select %159, %157, %161 : vector<64x128xi1>, vector<64x128xf32>
    %163 = vector.shape_cast %162 : vector<64x128xf32> to vector<8x8x128xf32>
    %c0_159 = arith.constant 0 : index
    %c0_160 = arith.constant 0 : index
    %164 = vector.load %arg7[%c0_159, %c0_160] : memref<1x128xf32, #tpu.memory_space<vmem>>, vector<1x128xf32>
    %c0_161 = arith.constant 0 : index
    %c0_162 = arith.constant 0 : index
    %165 = vector.load %arg8[%c0_161, %c0_162] : memref<1x128xf32, #tpu.memory_space<vmem>>, vector<1x128xf32>
    %c0_163 = arith.constant 0 : index
    %c0_164 = arith.constant 0 : index
    %166 = vector.load %arg9[%c0_163, %c0_164] : memref<1x128xf32, #tpu.memory_space<vmem>>, vector<1x128xf32>
    %167 = vector.extract_strided_slice %163 {offsets = [0, 0, 0], sizes = [1, 1, 16], strides = [1, 1, 1]} : vector<8x8x128xf32> to vector<1x1x16xf32>
    %c0_165 = arith.constant 0 : index
    %c0_166 = arith.constant 0 : index
    %c0_167 = arith.constant 0 : index
    %168 = vector.load %arg12[%c0_165, %c0_166, %c0_167] : memref<10x10x160xf32, #tpu.memory_space<vmem>>, vector<1x1x16xf32>
    tpu.vector_store %arg12[%c0_165, %c0_166, %c0_167], %167 {strides = array<i32>} : memref<10x10x160xf32, #tpu.memory_space<vmem>>, vector<1x1x16xf32>,
    %169 = vector.extract_strided_slice %163 {offsets = [0, 0, 0], sizes = [1, 1, 128], strides = [1, 1, 1]} : vector<8x8x128xf32> to vector<1x1x128xf32>
    %c0_168 = arith.constant 0 : index
    %c0_169 = arith.constant 0 : index
    %c16_170 = arith.constant 16 : index
    %170 = vector.load %arg12[%c0_168, %c0_169, %c16_170] : memref<10x10x160xf32, #tpu.memory_space<vmem>>, vector<1x1x128xf32>
    tpu.vector_store %arg12[%c0_168, %c0_169, %c16_170], %169 {strides = array<i32>} : memref<10x10x160xf32, #tpu.memory_space<vmem>>, vector<1x1x128xf32>,
    %171 = vector.extract_strided_slice %163 {offsets = [0, 0, 112], sizes = [1, 1, 16], strides = [1, 1, 1]} : vector<8x8x128xf32> to vector<1x1x16xf32>
    %c0_171 = arith.constant 0 : index
    %c0_172 = arith.constant 0 : index
    %c144_173 = arith.constant 144 : index
    %172 = vector.load %arg12[%c0_171, %c0_172, %c144_173] : memref<10x10x160xf32, #tpu.memory_space<vmem>>, vector<1x1x16xf32>
    tpu.vector_store %arg12[%c0_171, %c0_172, %c144_173], %171 {strides = array<i32>} : memref<10x10x160xf32, #tpu.memory_space<vmem>>, vector<1x1x16xf32>,
    %173 = vector.extract_strided_slice %163 {offsets = [0, 0, 0], sizes = [1, 8, 16], strides = [1, 1, 1]} : vector<8x8x128xf32> to vector<1x8x16xf32>
    %c0_174 = arith.constant 0 : index
    %c1_175 = arith.constant 1 : index
    %c0_176 = arith.constant 0 : index
    %174 = vector.load %arg12[%c0_174, %c1_175, %c0_176] : memref<10x10x160xf32, #tpu.memory_space<vmem>>, vector<1x8x16xf32>
    tpu.vector_store %arg12[%c0_174, %c1_175, %c0_176], %173 {strides = array<i32>} : memref<10x10x160xf32, #tpu.memory_space<vmem>>, vector<1x8x16xf32>,
    %175 = vector.extract_strided_slice %163 {offsets = [0, 0, 0], sizes = [1, 8, 128], strides = [1, 1, 1]} : vector<8x8x128xf32> to vector<1x8x128xf32>
    %c0_177 = arith.constant 0 : index
    %c1_178 = arith.constant 1 : index
    %c16_179 = arith.constant 16 : index
    %176 = vector.load %arg12[%c0_177, %c1_178, %c16_179] : memref<10x10x160xf32, #tpu.memory_space<vmem>>, vector<1x8x128xf32>
    tpu.vector_store %arg12[%c0_177, %c1_178, %c16_179], %175 {strides = array<i32>} : memref<10x10x160xf32, #tpu.memory_space<vmem>>, vector<1x8x128xf32>,
    %177 = vector.extract_strided_slice %163 {offsets = [0, 0, 112], sizes = [1, 8, 16], strides = [1, 1, 1]} : vector<8x8x128xf32> to vector<1x8x16xf32>
    %c0_180 = arith.constant 0 : index
    %c1_181 = arith.constant 1 : index
    %c144_182 = arith.constant 144 : index
    %178 = vector.load %arg12[%c0_180, %c1_181, %c144_182] : memref<10x10x160xf32, #tpu.memory_space<vmem>>, vector<1x8x16xf32>
    tpu.vector_store %arg12[%c0_180, %c1_181, %c144_182], %177 {strides = array<i32>} : memref<10x10x160xf32, #tpu.memory_space<vmem>>, vector<1x8x16xf32>,
    %179 = vector.extract_strided_slice %163 {offsets = [0, 7, 0], sizes = [1, 1, 16], strides = [1, 1, 1]} : vector<8x8x128xf32> to vector<1x1x16xf32>
    %c0_183 = arith.constant 0 : index
    %c9_184 = arith.constant 9 : index
    %c0_185 = arith.constant 0 : index
    %180 = vector.load %arg12[%c0_183, %c9_184, %c0_185] : memref<10x10x160xf32, #tpu.memory_space<vmem>>, vector<1x1x16xf32>
    tpu.vector_store %arg12[%c0_183, %c9_184, %c0_185], %179 {strides = array<i32>} : memref<10x10x160xf32, #tpu.memory_space<vmem>>, vector<1x1x16xf32>,
    %181 = vector.extract_strided_slice %163 {offsets = [0, 7, 0], sizes = [1, 1, 128], strides = [1, 1, 1]} : vector<8x8x128xf32> to vector<1x1x128xf32>
    %c0_186 = arith.constant 0 : index
    %c9_187 = arith.constant 9 : index
    %c16_188 = arith.constant 16 : index
    %182 = vector.load %arg12[%c0_186, %c9_187, %c16_188] : memref<10x10x160xf32, #tpu.memory_space<vmem>>, vector<1x1x128xf32>
    tpu.vector_store %arg12[%c0_186, %c9_187, %c16_188], %181 {strides = array<i32>} : memref<10x10x160xf32, #tpu.memory_space<vmem>>, vector<1x1x128xf32>,
    %183 = vector.extract_strided_slice %163 {offsets = [0, 7, 112], sizes = [1, 1, 16], strides = [1, 1, 1]} : vector<8x8x128xf32> to vector<1x1x16xf32>
    %c0_189 = arith.constant 0 : index
    %c9_190 = arith.constant 9 : index
    %c144_191 = arith.constant 144 : index
    %184 = vector.load %arg12[%c0_189, %c9_190, %c144_191] : memref<10x10x160xf32, #tpu.memory_space<vmem>>, vector<1x1x16xf32>
    tpu.vector_store %arg12[%c0_189, %c9_190, %c144_191], %183 {strides = array<i32>} : memref<10x10x160xf32, #tpu.memory_space<vmem>>, vector<1x1x16xf32>,
    %185 = vector.extract_strided_slice %163 {offsets = [0, 0, 0], sizes = [8, 1, 16], strides = [1, 1, 1]} : vector<8x8x128xf32> to vector<8x1x16xf32>
    %c1_192 = arith.constant 1 : index
    %c0_193 = arith.constant 0 : index
    %c0_194 = arith.constant 0 : index
    %186 = vector.load %arg12[%c1_192, %c0_193, %c0_194] : memref<10x10x160xf32, #tpu.memory_space<vmem>>, vector<8x1x16xf32>
    tpu.vector_store %arg12[%c1_192, %c0_193, %c0_194], %185 {strides = array<i32>} : memref<10x10x160xf32, #tpu.memory_space<vmem>>, vector<8x1x16xf32>,
    %187 = vector.extract_strided_slice %163 {offsets = [0, 0, 0], sizes = [8, 1, 128], strides = [1, 1, 1]} : vector<8x8x128xf32> to vector<8x1x128xf32>
    %c1_195 = arith.constant 1 : index
    %c0_196 = arith.constant 0 : index
    %c16_197 = arith.constant 16 : index
    %188 = vector.load %arg12[%c1_195, %c0_196, %c16_197] : memref<10x10x160xf32, #tpu.memory_space<vmem>>, vector<8x1x128xf32>
    tpu.vector_store %arg12[%c1_195, %c0_196, %c16_197], %187 {strides = array<i32>} : memref<10x10x160xf32, #tpu.memory_space<vmem>>, vector<8x1x128xf32>,
    %189 = vector.extract_strided_slice %163 {offsets = [0, 0, 112], sizes = [8, 1, 16], strides = [1, 1, 1]} : vector<8x8x128xf32> to vector<8x1x16xf32>
    %c1_198 = arith.constant 1 : index
    %c0_199 = arith.constant 0 : index
    %c144_200 = arith.constant 144 : index
    %190 = vector.load %arg12[%c1_198, %c0_199, %c144_200] : memref<10x10x160xf32, #tpu.memory_space<vmem>>, vector<8x1x16xf32>
    tpu.vector_store %arg12[%c1_198, %c0_199, %c144_200], %189 {strides = array<i32>} : memref<10x10x160xf32, #tpu.memory_space<vmem>>, vector<8x1x16xf32>,
    %191 = vector.extract_strided_slice %163 {offsets = [0, 0, 0], sizes = [8, 8, 16], strides = [1, 1, 1]} : vector<8x8x128xf32> to vector<8x8x16xf32>
    %c1_201 = arith.constant 1 : index
    %c1_202 = arith.constant 1 : index
    %c0_203 = arith.constant 0 : index
    %192 = vector.load %arg12[%c1_201, %c1_202, %c0_203] : memref<10x10x160xf32, #tpu.memory_space<vmem>>, vector<8x8x16xf32>
    tpu.vector_store %arg12[%c1_201, %c1_202, %c0_203], %191 {strides = array<i32>} : memref<10x10x160xf32, #tpu.memory_space<vmem>>, vector<8x8x16xf32>,
    %c1_204 = arith.constant 1 : index
    %c1_205 = arith.constant 1 : index
    %c16_206 = arith.constant 16 : index
    %193 = vector.load %arg12[%c1_204, %c1_205, %c16_206] : memref<10x10x160xf32, #tpu.memory_space<vmem>>, vector<8x8x128xf32>
    tpu.vector_store %arg12[%c1_204, %c1_205, %c16_206], %163 {strides = array<i32>} : memref<10x10x160xf32, #tpu.memory_space<vmem>>, vector<8x8x128xf32>,
    %194 = vector.extract_strided_slice %163 {offsets = [0, 0, 112], sizes = [8, 8, 16], strides = [1, 1, 1]} : vector<8x8x128xf32> to vector<8x8x16xf32>
    %c1_207 = arith.constant 1 : index
    %c1_208 = arith.constant 1 : index
    %c144_209 = arith.constant 144 : index
    %195 = vector.load %arg12[%c1_207, %c1_208, %c144_209] : memref<10x10x160xf32, #tpu.memory_space<vmem>>, vector<8x8x16xf32>
    tpu.vector_store %arg12[%c1_207, %c1_208, %c144_209], %194 {strides = array<i32>} : memref<10x10x160xf32, #tpu.memory_space<vmem>>, vector<8x8x16xf32>,
    %196 = vector.extract_strided_slice %163 {offsets = [0, 7, 0], sizes = [8, 1, 16], strides = [1, 1, 1]} : vector<8x8x128xf32> to vector<8x1x16xf32>
    %c1_210 = arith.constant 1 : index
    %c9_211 = arith.constant 9 : index
    %c0_212 = arith.constant 0 : index
    %197 = vector.load %arg12[%c1_210, %c9_211, %c0_212] : memref<10x10x160xf32, #tpu.memory_space<vmem>>, vector<8x1x16xf32>
    tpu.vector_store %arg12[%c1_210, %c9_211, %c0_212], %196 {strides = array<i32>} : memref<10x10x160xf32, #tpu.memory_space<vmem>>, vector<8x1x16xf32>,
    %198 = vector.extract_strided_slice %163 {offsets = [0, 7, 0], sizes = [8, 1, 128], strides = [1, 1, 1]} : vector<8x8x128xf32> to vector<8x1x128xf32>
    %c1_213 = arith.constant 1 : index
    %c9_214 = arith.constant 9 : index
    %c16_215 = arith.constant 16 : index
    %199 = vector.load %arg12[%c1_213, %c9_214, %c16_215] : memref<10x10x160xf32, #tpu.memory_space<vmem>>, vector<8x1x128xf32>
    tpu.vector_store %arg12[%c1_213, %c9_214, %c16_215], %198 {strides = array<i32>} : memref<10x10x160xf32, #tpu.memory_space<vmem>>, vector<8x1x128xf32>,
    %200 = vector.extract_strided_slice %163 {offsets = [0, 7, 112], sizes = [8, 1, 16], strides = [1, 1, 1]} : vector<8x8x128xf32> to vector<8x1x16xf32>
    %c1_216 = arith.constant 1 : index
    %c9_217 = arith.constant 9 : index
    %c144_218 = arith.constant 144 : index
    %201 = vector.load %arg12[%c1_216, %c9_217, %c144_218] : memref<10x10x160xf32, #tpu.memory_space<vmem>>, vector<8x1x16xf32>
    tpu.vector_store %arg12[%c1_216, %c9_217, %c144_218], %200 {strides = array<i32>} : memref<10x10x160xf32, #tpu.memory_space<vmem>>, vector<8x1x16xf32>,
    %202 = vector.extract_strided_slice %163 {offsets = [7, 0, 0], sizes = [1, 1, 16], strides = [1, 1, 1]} : vector<8x8x128xf32> to vector<1x1x16xf32>
    %c9_219 = arith.constant 9 : index
    %c0_220 = arith.constant 0 : index
    %c0_221 = arith.constant 0 : index
    %203 = vector.load %arg12[%c9_219, %c0_220, %c0_221] : memref<10x10x160xf32, #tpu.memory_space<vmem>>, vector<1x1x16xf32>
    tpu.vector_store %arg12[%c9_219, %c0_220, %c0_221], %202 {strides = array<i32>} : memref<10x10x160xf32, #tpu.memory_space<vmem>>, vector<1x1x16xf32>,
    %204 = vector.extract_strided_slice %163 {offsets = [7, 0, 0], sizes = [1, 1, 128], strides = [1, 1, 1]} : vector<8x8x128xf32> to vector<1x1x128xf32>
    %c9_222 = arith.constant 9 : index
    %c0_223 = arith.constant 0 : index
    %c16_224 = arith.constant 16 : index
    %205 = vector.load %arg12[%c9_222, %c0_223, %c16_224] : memref<10x10x160xf32, #tpu.memory_space<vmem>>, vector<1x1x128xf32>
    tpu.vector_store %arg12[%c9_222, %c0_223, %c16_224], %204 {strides = array<i32>} : memref<10x10x160xf32, #tpu.memory_space<vmem>>, vector<1x1x128xf32>,
    %206 = vector.extract_strided_slice %163 {offsets = [7, 0, 112], sizes = [1, 1, 16], strides = [1, 1, 1]} : vector<8x8x128xf32> to vector<1x1x16xf32>
    %c9_225 = arith.constant 9 : index
    %c0_226 = arith.constant 0 : index
    %c144_227 = arith.constant 144 : index
    %207 = vector.load %arg12[%c9_225, %c0_226, %c144_227] : memref<10x10x160xf32, #tpu.memory_space<vmem>>, vector<1x1x16xf32>
    tpu.vector_store %arg12[%c9_225, %c0_226, %c144_227], %206 {strides = array<i32>} : memref<10x10x160xf32, #tpu.memory_space<vmem>>, vector<1x1x16xf32>,
    %208 = vector.extract_strided_slice %163 {offsets = [7, 0, 0], sizes = [1, 8, 16], strides = [1, 1, 1]} : vector<8x8x128xf32> to vector<1x8x16xf32>
    %c9_228 = arith.constant 9 : index
    %c1_229 = arith.constant 1 : index
    %c0_230 = arith.constant 0 : index
    %209 = vector.load %arg12[%c9_228, %c1_229, %c0_230] : memref<10x10x160xf32, #tpu.memory_space<vmem>>, vector<1x8x16xf32>
    tpu.vector_store %arg12[%c9_228, %c1_229, %c0_230], %208 {strides = array<i32>} : memref<10x10x160xf32, #tpu.memory_space<vmem>>, vector<1x8x16xf32>,
    %210 = vector.extract_strided_slice %163 {offsets = [7, 0, 0], sizes = [1, 8, 128], strides = [1, 1, 1]} : vector<8x8x128xf32> to vector<1x8x128xf32>
    %c9_231 = arith.constant 9 : index
    %c1_232 = arith.constant 1 : index
    %c16_233 = arith.constant 16 : index
    %211 = vector.load %arg12[%c9_231, %c1_232, %c16_233] : memref<10x10x160xf32, #tpu.memory_space<vmem>>, vector<1x8x128xf32>
    tpu.vector_store %arg12[%c9_231, %c1_232, %c16_233], %210 {strides = array<i32>} : memref<10x10x160xf32, #tpu.memory_space<vmem>>, vector<1x8x128xf32>,
    %212 = vector.extract_strided_slice %163 {offsets = [7, 0, 112], sizes = [1, 8, 16], strides = [1, 1, 1]} : vector<8x8x128xf32> to vector<1x8x16xf32>
    %c9_234 = arith.constant 9 : index
    %c1_235 = arith.constant 1 : index
    %c144_236 = arith.constant 144 : index
    %213 = vector.load %arg12[%c9_234, %c1_235, %c144_236] : memref<10x10x160xf32, #tpu.memory_space<vmem>>, vector<1x8x16xf32>
    tpu.vector_store %arg12[%c9_234, %c1_235, %c144_236], %212 {strides = array<i32>} : memref<10x10x160xf32, #tpu.memory_space<vmem>>, vector<1x8x16xf32>,
    %214 = vector.extract_strided_slice %163 {offsets = [7, 7, 0], sizes = [1, 1, 16], strides = [1, 1, 1]} : vector<8x8x128xf32> to vector<1x1x16xf32>
    %c9_237 = arith.constant 9 : index
    %c9_238 = arith.constant 9 : index
    %c0_239 = arith.constant 0 : index
    %215 = vector.load %arg12[%c9_237, %c9_238, %c0_239] : memref<10x10x160xf32, #tpu.memory_space<vmem>>, vector<1x1x16xf32>
    tpu.vector_store %arg12[%c9_237, %c9_238, %c0_239], %214 {strides = array<i32>} : memref<10x10x160xf32, #tpu.memory_space<vmem>>, vector<1x1x16xf32>,
    %216 = vector.extract_strided_slice %163 {offsets = [7, 7, 0], sizes = [1, 1, 128], strides = [1, 1, 1]} : vector<8x8x128xf32> to vector<1x1x128xf32>
    %c9_240 = arith.constant 9 : index
    %c9_241 = arith.constant 9 : index
    %c16_242 = arith.constant 16 : index
    %217 = vector.load %arg12[%c9_240, %c9_241, %c16_242] : memref<10x10x160xf32, #tpu.memory_space<vmem>>, vector<1x1x128xf32>
    tpu.vector_store %arg12[%c9_240, %c9_241, %c16_242], %216 {strides = array<i32>} : memref<10x10x160xf32, #tpu.memory_space<vmem>>, vector<1x1x128xf32>,
    %218 = vector.extract_strided_slice %163 {offsets = [7, 7, 112], sizes = [1, 1, 16], strides = [1, 1, 1]} : vector<8x8x128xf32> to vector<1x1x16xf32>
    %c9_243 = arith.constant 9 : index
    %c9_244 = arith.constant 9 : index
    %c144_245 = arith.constant 144 : index
    %219 = vector.load %arg12[%c9_243, %c9_244, %c144_245] : memref<10x10x160xf32, #tpu.memory_space<vmem>>, vector<1x1x16xf32>
    tpu.vector_store %arg12[%c9_243, %c9_244, %c144_245], %218 {strides = array<i32>} : memref<10x10x160xf32, #tpu.memory_space<vmem>>, vector<1x1x16xf32>,
    %cst_246 = arith.constant 0.000000e+00 : f32
    %220 = vector.broadcast %cst_246 : f32 to vector<64x128xf32>
    %c0_247 = arith.constant 0 : index
    %c0_248 = arith.constant 0 : index
    %c0_249 = arith.constant 0 : index
    %221 = vector.load %arg12[%c0_247, %c0_248, %c0_249] : memref<10x10x160xf32, #tpu.memory_space<vmem>>, vector<8x8x160xf32>
    %222 = vector.shape_cast %221 : vector<8x8x160xf32> to vector<64x160xf32>
    %223 = arith.truncf %222 : vector<64x160xf32> to vector<64x160xbf16>
    %c0_250 = arith.constant 0 : index
    %c0_251 = arith.constant 0 : index
    %c0_252 = arith.constant 0 : index
    %224 = vector.load %arg6[%c0_250, %c0_251, %c0_252] : memref<9x160x128xbf16, #tpu.memory_space<vmem>>, vector<1x160x128xbf16>
    %225 = vector.shape_cast %224 : vector<1x160x128xbf16> to vector<160x128xbf16>
    %cst_253 = arith.constant dense<0.000000e+00> : vector<64x128xf32>
    %226 = tpu.matmul %223, %225, %cst_253 {dimension_numbers = #tpu.dot_dimension_numbers<[1], [0], [0], [1], [0, 0, 1, 1], [], []>} : vector<64x160xbf16>, vector<160x128xbf16>, vector<64x128xf32> -> vector<64x128xf32>
    %227 = arith.addf %220, %226 : vector<64x128xf32>
    %c0_254 = arith.constant 0 : index
    %c1_255 = arith.constant 1 : index
    %c0_256 = arith.constant 0 : index
    %228 = vector.load %arg12[%c0_254, %c1_255, %c0_256] : memref<10x10x160xf32, #tpu.memory_space<vmem>>, vector<8x8x160xf32>
    %229 = vector.shape_cast %228 : vector<8x8x160xf32> to vector<64x160xf32>
    %230 = arith.truncf %229 : vector<64x160xf32> to vector<64x160xbf16>
    %c1_257 = arith.constant 1 : index
    %c0_258 = arith.constant 0 : index
    %c0_259 = arith.constant 0 : index
    %231 = vector.load %arg6[%c1_257, %c0_258, %c0_259] : memref<9x160x128xbf16, #tpu.memory_space<vmem>>, vector<1x160x128xbf16>
    %232 = vector.shape_cast %231 : vector<1x160x128xbf16> to vector<160x128xbf16>
    %cst_260 = arith.constant dense<0.000000e+00> : vector<64x128xf32>
    %233 = tpu.matmul %230, %232, %cst_260 {dimension_numbers = #tpu.dot_dimension_numbers<[1], [0], [0], [1], [0, 0, 1, 1], [], []>} : vector<64x160xbf16>, vector<160x128xbf16>, vector<64x128xf32> -> vector<64x128xf32>
    %234 = arith.addf %227, %233 : vector<64x128xf32>
    %c0_261 = arith.constant 0 : index
    %c2_262 = arith.constant 2 : index
    %c0_263 = arith.constant 0 : index
    %235 = vector.load %arg12[%c0_261, %c2_262, %c0_263] : memref<10x10x160xf32, #tpu.memory_space<vmem>>, vector<8x8x160xf32>
    %236 = vector.shape_cast %235 : vector<8x8x160xf32> to vector<64x160xf32>
    %237 = arith.truncf %236 : vector<64x160xf32> to vector<64x160xbf16>
    %c2_264 = arith.constant 2 : index
    %c0_265 = arith.constant 0 : index
    %c0_266 = arith.constant 0 : index
    %238 = vector.load %arg6[%c2_264, %c0_265, %c0_266] : memref<9x160x128xbf16, #tpu.memory_space<vmem>>, vector<1x160x128xbf16>
    %239 = vector.shape_cast %238 : vector<1x160x128xbf16> to vector<160x128xbf16>
    %cst_267 = arith.constant dense<0.000000e+00> : vector<64x128xf32>
    %240 = tpu.matmul %237, %239, %cst_267 {dimension_numbers = #tpu.dot_dimension_numbers<[1], [0], [0], [1], [0, 0, 1, 1], [], []>} : vector<64x160xbf16>, vector<160x128xbf16>, vector<64x128xf32> -> vector<64x128xf32>
    %241 = arith.addf %234, %240 : vector<64x128xf32>
    %c1_268 = arith.constant 1 : index
    %c0_269 = arith.constant 0 : index
    %c0_270 = arith.constant 0 : index
    %242 = vector.load %arg12[%c1_268, %c0_269, %c0_270] : memref<10x10x160xf32, #tpu.memory_space<vmem>>, vector<8x8x160xf32>
    %243 = vector.shape_cast %242 : vector<8x8x160xf32> to vector<64x160xf32>
    %244 = arith.truncf %243 : vector<64x160xf32> to vector<64x160xbf16>
    %c3_271 = arith.constant 3 : index
    %c0_272 = arith.constant 0 : index
    %c0_273 = arith.constant 0 : index
    %245 = vector.load %arg6[%c3_271, %c0_272, %c0_273] : memref<9x160x128xbf16, #tpu.memory_space<vmem>>, vector<1x160x128xbf16>
    %246 = vector.shape_cast %245 : vector<1x160x128xbf16> to vector<160x128xbf16>
    %cst_274 = arith.constant dense<0.000000e+00> : vector<64x128xf32>
    %247 = tpu.matmul %244, %246, %cst_274 {dimension_numbers = #tpu.dot_dimension_numbers<[1], [0], [0], [1], [0, 0, 1, 1], [], []>} : vector<64x160xbf16>, vector<160x128xbf16>, vector<64x128xf32> -> vector<64x128xf32>
    %248 = arith.addf %241, %247 : vector<64x128xf32>
    %c1_275 = arith.constant 1 : index
    %c1_276 = arith.constant 1 : index
    %c0_277 = arith.constant 0 : index
    %249 = vector.load %arg12[%c1_275, %c1_276, %c0_277] : memref<10x10x160xf32, #tpu.memory_space<vmem>>, vector<8x8x160xf32>
    %250 = vector.shape_cast %249 : vector<8x8x160xf32> to vector<64x160xf32>
    %251 = arith.truncf %250 : vector<64x160xf32> to vector<64x160xbf16>
    %c4_278 = arith.constant 4 : index
    %c0_279 = arith.constant 0 : index
    %c0_280 = arith.constant 0 : index
    %252 = vector.load %arg6[%c4_278, %c0_279, %c0_280] : memref<9x160x128xbf16, #tpu.memory_space<vmem>>, vector<1x160x128xbf16>
    %253 = vector.shape_cast %252 : vector<1x160x128xbf16> to vector<160x128xbf16>
    %cst_281 = arith.constant dense<0.000000e+00> : vector<64x128xf32>
    %254 = tpu.matmul %251, %253, %cst_281 {dimension_numbers = #tpu.dot_dimension_numbers<[1], [0], [0], [1], [0, 0, 1, 1], [], []>} : vector<64x160xbf16>, vector<160x128xbf16>, vector<64x128xf32> -> vector<64x128xf32>
    %255 = arith.addf %248, %254 : vector<64x128xf32>
    %c1_282 = arith.constant 1 : index
    %c2_283 = arith.constant 2 : index
    %c0_284 = arith.constant 0 : index
    %256 = vector.load %arg12[%c1_282, %c2_283, %c0_284] : memref<10x10x160xf32, #tpu.memory_space<vmem>>, vector<8x8x160xf32>
    %257 = vector.shape_cast %256 : vector<8x8x160xf32> to vector<64x160xf32>
    %258 = arith.truncf %257 : vector<64x160xf32> to vector<64x160xbf16>
    %c5_285 = arith.constant 5 : index
    %c0_286 = arith.constant 0 : index
    %c0_287 = arith.constant 0 : index
    %259 = vector.load %arg6[%c5_285, %c0_286, %c0_287] : memref<9x160x128xbf16, #tpu.memory_space<vmem>>, vector<1x160x128xbf16>
    %260 = vector.shape_cast %259 : vector<1x160x128xbf16> to vector<160x128xbf16>
    %cst_288 = arith.constant dense<0.000000e+00> : vector<64x128xf32>
    %261 = tpu.matmul %258, %260, %cst_288 {dimension_numbers = #tpu.dot_dimension_numbers<[1], [0], [0], [1], [0, 0, 1, 1], [], []>} : vector<64x160xbf16>, vector<160x128xbf16>, vector<64x128xf32> -> vector<64x128xf32>
    %262 = arith.addf %255, %261 : vector<64x128xf32>
    %c2_289 = arith.constant 2 : index
    %c0_290 = arith.constant 0 : index
    %c0_291 = arith.constant 0 : index
    %263 = vector.load %arg12[%c2_289, %c0_290, %c0_291] : memref<10x10x160xf32, #tpu.memory_space<vmem>>, vector<8x8x160xf32>
    %264 = vector.shape_cast %263 : vector<8x8x160xf32> to vector<64x160xf32>
    %265 = arith.truncf %264 : vector<64x160xf32> to vector<64x160xbf16>
    %c6_292 = arith.constant 6 : index
    %c0_293 = arith.constant 0 : index
    %c0_294 = arith.constant 0 : index
    %266 = vector.load %arg6[%c6_292, %c0_293, %c0_294] : memref<9x160x128xbf16, #tpu.memory_space<vmem>>, vector<1x160x128xbf16>
    %267 = vector.shape_cast %266 : vector<1x160x128xbf16> to vector<160x128xbf16>
    %cst_295 = arith.constant dense<0.000000e+00> : vector<64x128xf32>
    %268 = tpu.matmul %265, %267, %cst_295 {dimension_numbers = #tpu.dot_dimension_numbers<[1], [0], [0], [1], [0, 0, 1, 1], [], []>} : vector<64x160xbf16>, vector<160x128xbf16>, vector<64x128xf32> -> vector<64x128xf32>
    %269 = arith.addf %262, %268 : vector<64x128xf32>
    %c2_296 = arith.constant 2 : index
    %c1_297 = arith.constant 1 : index
    %c0_298 = arith.constant 0 : index
    %270 = vector.load %arg12[%c2_296, %c1_297, %c0_298] : memref<10x10x160xf32, #tpu.memory_space<vmem>>, vector<8x8x160xf32>
    %271 = vector.shape_cast %270 : vector<8x8x160xf32> to vector<64x160xf32>
    %272 = arith.truncf %271 : vector<64x160xf32> to vector<64x160xbf16>
    %c7_299 = arith.constant 7 : index
    %c0_300 = arith.constant 0 : index
    %c0_301 = arith.constant 0 : index
    %273 = vector.load %arg6[%c7_299, %c0_300, %c0_301] : memref<9x160x128xbf16, #tpu.memory_space<vmem>>, vector<1x160x128xbf16>
    %274 = vector.shape_cast %273 : vector<1x160x128xbf16> to vector<160x128xbf16>
    %cst_302 = arith.constant dense<0.000000e+00> : vector<64x128xf32>
    %275 = tpu.matmul %272, %274, %cst_302 {dimension_numbers = #tpu.dot_dimension_numbers<[1], [0], [0], [1], [0, 0, 1, 1], [], []>} : vector<64x160xbf16>, vector<160x128xbf16>, vector<64x128xf32> -> vector<64x128xf32>
    %276 = arith.addf %269, %275 : vector<64x128xf32>
    %c2_303 = arith.constant 2 : index
    %c2_304 = arith.constant 2 : index
    %c0_305 = arith.constant 0 : index
    %277 = vector.load %arg12[%c2_303, %c2_304, %c0_305] : memref<10x10x160xf32, #tpu.memory_space<vmem>>, vector<8x8x160xf32>
    %278 = vector.shape_cast %277 : vector<8x8x160xf32> to vector<64x160xf32>
    %279 = arith.truncf %278 : vector<64x160xf32> to vector<64x160xbf16>
    %c8_306 = arith.constant 8 : index
    %c0_307 = arith.constant 0 : index
    %c0_308 = arith.constant 0 : index
    %280 = vector.load %arg6[%c8_306, %c0_307, %c0_308] : memref<9x160x128xbf16, #tpu.memory_space<vmem>>, vector<1x160x128xbf16>
    %281 = vector.shape_cast %280 : vector<1x160x128xbf16> to vector<160x128xbf16>
    %cst_309 = arith.constant dense<0.000000e+00> : vector<64x128xf32>
    %282 = tpu.matmul %279, %281, %cst_309 {dimension_numbers = #tpu.dot_dimension_numbers<[1], [0], [0], [1], [0, 0, 1, 1], [], []>} : vector<64x160xbf16>, vector<160x128xbf16>, vector<64x128xf32> -> vector<64x128xf32>
    %283 = arith.addf %276, %282 : vector<64x128xf32>
    %cst_310 = arith.constant dense<0.000000e+00> : vector<128xf32>
    %284 = vector.multi_reduction <add>, %283, %cst_310 [0] : vector<64x128xf32> to vector<128xf32>
    %285 = vector.shape_cast %284 : vector<128xf32> to vector<1x128xf32>
    %286 = arith.mulf %283, %283 : vector<64x128xf32>
    %cst_311 = arith.constant dense<0.000000e+00> : vector<128xf32>
    %287 = vector.multi_reduction <add>, %286, %cst_311 [0] : vector<64x128xf32> to vector<128xf32>
    %288 = vector.shape_cast %287 : vector<128xf32> to vector<1x128xf32>
    %cst_312 = arith.constant 6.400000e+01 : f32
    %289 = vector.broadcast %cst_312 : f32 to vector<1x128xf32>
    %290 = arith.mulf %289, %164 : vector<1x128xf32>
    %291 = arith.addf %285, %290 : vector<1x128xf32>
    %c0_313 = arith.constant 0 : index
    %c0_314 = arith.constant 0 : index
    %292 = vector.load %arg13[%c0_313, %c0_314] : memref<2x128xf32, #tpu.memory_space<vmem>>, vector<1x128xf32>
    tpu.vector_store %arg13[%c0_313, %c0_314], %291 {strides = array<i32>} : memref<2x128xf32, #tpu.memory_space<vmem>>, vector<1x128xf32>,
    %cst_315 = arith.constant 2.000000e+00 : f32
    %293 = vector.broadcast %cst_315 : f32 to vector<1x128xf32>
    %294 = arith.mulf %293, %164 : vector<1x128xf32>
    %295 = arith.mulf %294, %285 : vector<1x128xf32>
    %296 = arith.addf %288, %295 : vector<1x128xf32>
    %297 = arith.mulf %164, %164 : vector<1x128xf32>
    %cst_316 = arith.constant 6.400000e+01 : f32
    %298 = vector.broadcast %cst_316 : f32 to vector<1x128xf32>
    %299 = arith.mulf %298, %297 : vector<1x128xf32>
    %300 = arith.addf %296, %299 : vector<1x128xf32>
    %c1_317 = arith.constant 1 : index
    %c0_318 = arith.constant 0 : index
    %301 = vector.load %arg13[%c1_317, %c0_318] : memref<2x128xf32, #tpu.memory_space<vmem>>, vector<1x128xf32>
    tpu.vector_store %arg13[%c1_317, %c0_318], %300 {strides = array<i32>} : memref<2x128xf32, #tpu.memory_space<vmem>>, vector<1x128xf32>,
    %c0_319 = arith.constant 0 : index
    %c0_320 = arith.constant 0 : index
    %302 = vector.load %arg13[%c0_319, %c0_320] : memref<2x128xf32, #tpu.memory_space<vmem>>, vector<2x128xf32>
    %c0_321 = arith.constant 0 : index
    %c0_322 = arith.constant 0 : index
    %303 = vector.load %arg10[%c0_321, %c0_322] : memref<128x128xf32, #tpu.memory_space<vmem>>, vector<128x128xf32>
    %cst_323 = arith.constant dense<0.000000e+00> : vector<2x128xf32>
    %304 = tpu.matmul %302, %303, %cst_323 {dimension_numbers = #tpu.dot_dimension_numbers<[1], [0], [0], [1], [0, 0, 1, 1], [], []>} : vector<2x128xf32>, vector<128x128xf32>, vector<2x128xf32> -> vector<2x128xf32>
    %305 = vector.extract_strided_slice %304 {offsets = [0, 0], sizes = [1, 128], strides = [1, 1]} : vector<2x128xf32> to vector<1x128xf32>
    %306 = vector.extract_strided_slice %304 {offsets = [1, 0], sizes = [1, 128], strides = [1, 1]} : vector<2x128xf32> to vector<1x128xf32>
    %307 = arith.mulf %305, %305 : vector<1x128xf32>
    %308 = arith.subf %306, %307 : vector<1x128xf32>
    %cst_324 = arith.constant 9.99999974E-6 : f32
    %309 = vector.broadcast %cst_324 : f32 to vector<1x128xf32>
    %310 = arith.addf %308, %309 : vector<1x128xf32>
    %311 = math.rsqrt %310 : vector<1x128xf32>
    %312 = arith.mulf %165, %311 : vector<1x128xf32>
    %313 = arith.subf %164, %305 : vector<1x128xf32>
    %314 = arith.mulf %313, %312 : vector<1x128xf32>
    %315 = arith.addf %314, %166 : vector<1x128xf32>
    %316 = vector.broadcast %312 : vector<1x128xf32> to vector<64x128xf32>
    %317 = arith.mulf %316, %283 : vector<64x128xf32>
    %318 = vector.broadcast %315 : vector<1x128xf32> to vector<64x128xf32>
    %319 = arith.addf %317, %318 : vector<64x128xf32>
    %cst_325 = arith.constant 0.000000e+00 : f32
    %320 = vector.broadcast %cst_325 : f32 to vector<64x128xf32>
    %321 = arith.cmpf oge, %319, %320 : vector<64x128xf32>
    %cst_326 = arith.constant 0.00999999977 : f32
    %322 = vector.broadcast %cst_326 : f32 to vector<64x128xf32>
    %323 = arith.mulf %322, %319 : vector<64x128xf32>
    %324 = arith.select %321, %319, %323 : vector<64x128xi1>, vector<64x128xf32>
    %325 = vector.shape_cast %324 : vector<64x128xf32> to vector<1x8x8x128xf32>
    %c0_327 = arith.constant 0 : index
    %c0_328 = arith.constant 0 : index
    %c0_329 = arith.constant 0 : index
    %c0_330 = arith.constant 0 : index
    %326 = vector.load %arg1[%c0_327, %c0_328, %c0_329, %c0_330] : memref<1x8x8x128xf32, #tpu.memory_space<vmem>>, vector<1x8x8x128xf32>
    %327 = arith.addf %325, %326 : vector<1x8x8x128xf32>
    %c0_331 = arith.constant 0 : index
    %c0_332 = arith.constant 0 : index
    %c0_333 = arith.constant 0 : index
    %c0_334 = arith.constant 0 : index
    %328 = vector.load %arg11[%c0_331, %c0_332, %c0_333, %c0_334] : memref<1x8x8x128xf32, #tpu.memory_space<vmem>>, vector<1x8x8x128xf32>
    tpu.vector_store %arg11[%c0_331, %c0_332, %c0_333, %c0_334], %327 {strides = array<i32>} : memref<1x8x8x128xf32, #tpu.memory_space<vmem>>, vector<1x8x8x128xf32>,
    return
  }
  func.func @transform_0(%arg0: i32) -> (i32, i32, i32, i32) {
    %c0_i32 = arith.constant 0 : i32
    %c0_i32_0 = arith.constant 0 : i32
    %c0_i32_1 = arith.constant 0 : i32
    %c0_i32_2 = arith.constant 0 : i32
    return %arg0, %c0_i32, %c0_i32_0, %c0_i32_1 : i32, i32, i32, i32
  }
  func.func @transform_1(%arg0: i32) -> (i32, i32, i32) {
    %c0_i32 = arith.constant 0 : i32
    %c0_i32_0 = arith.constant 0 : i32
    %c0_i32_1 = arith.constant 0 : i32
    %c0_i32_2 = arith.constant 0 : i32
    return %c0_i32, %c0_i32_0, %c0_i32_1 : i32, i32, i32
  }
  func.func @transform_2(%arg0: i32) -> (i32, i32) {
    %c0_i32 = arith.constant 0 : i32
    %c0_i32_0 = arith.constant 0 : i32
    %c0_i32_1 = arith.constant 0 : i32
    return %c0_i32, %c0_i32_0 : i32, i32
  }
  func.func @transform_3(%arg0: i32) -> (i32, i32) {
    %c0_i32 = arith.constant 0 : i32
    %c0_i32_0 = arith.constant 0 : i32
    %c0_i32_1 = arith.constant 0 : i32
    return %c0_i32, %c0_i32_0 : i32, i32
  }
  func.func @transform_4(%arg0: i32) -> (i32, i32) {
    %c0_i32 = arith.constant 0 : i32
    %c0_i32_0 = arith.constant 0 : i32
    %c0_i32_1 = arith.constant 0 : i32
    return %c0_i32, %c0_i32_0 : i32, i32
  }
  func.func @transform_5(%arg0: i32) -> (i32, i32, i32) {
    %c0_i32 = arith.constant 0 : i32
    %c0_i32_0 = arith.constant 0 : i32
    %c0_i32_1 = arith.constant 0 : i32
    %c0_i32_2 = arith.constant 0 : i32
    return %c0_i32, %c0_i32_0, %c0_i32_1 : i32, i32, i32
  }
  func.func @transform_6(%arg0: i32) -> (i32, i32) {
    %c0_i32 = arith.constant 0 : i32
    %c0_i32_0 = arith.constant 0 : i32
    %c0_i32_1 = arith.constant 0 : i32
    return %c0_i32, %c0_i32_0 : i32, i32
  }
  func.func @transform_7(%arg0: i32) -> (i32, i32) {
    %c0_i32 = arith.constant 0 : i32
    %c0_i32_0 = arith.constant 0 : i32
    %c0_i32_1 = arith.constant 0 : i32
    return %c0_i32, %c0_i32_0 : i32, i32
  }
  func.func @transform_8(%arg0: i32) -> (i32, i32) {
    %c0_i32 = arith.constant 0 : i32
    %c0_i32_0 = arith.constant 0 : i32
    %c0_i32_1 = arith.constant 0 : i32
    return %c0_i32, %c0_i32_0 : i32, i32
  }
  func.func @transform_9(%arg0: i32) -> (i32, i32) {
    %c0_i32 = arith.constant 0 : i32
    %c0_i32_0 = arith.constant 0 : i32
    %c0_i32_1 = arith.constant 0 : i32
    return %c0_i32, %c0_i32_0 : i32, i32
  }
  func.func @transform_10(%arg0: i32) -> (i32, i32, i32, i32) {
    %c0_i32 = arith.constant 0 : i32
    %c0_i32_0 = arith.constant 0 : i32
    %c0_i32_1 = arith.constant 0 : i32
    %c0_i32_2 = arith.constant 0 : i32
    return %arg0, %c0_i32, %c0_i32_0, %c0_i32_1 : i32, i32, i32, i32
  }
}

</mosaic_0001>

<bundles_post_ra>
// kernel: tile.39
= control target key start
LH: loop header
LB: loop body
LE: loop exit
PB: predicated region body
PF: predicated region fallthrough
CT: control target
= control target key end

     0   :  { %s22_s0 = inlined_call_operand.vmem [shape: s32[16], index: 0, kind: input, shape index: {}]   ;;  %s23_s1 = inlined_call_operand.vmem [shape: s32[8,16], index: 1, kind: output, shape index: {}]  }
   0x1   :  { %v4_v0 = vld [vmem:[%s22_s0] ss:$0 sm:$0xff] }
   0x2   :  { %5 = vst [vmem:[%s23_s1] sm:$0xff] %v4_v0 }

// kernel: eq.8
= control target key start
LH: loop header
LB: loop body
LE: loop exit
PB: predicated region body
PF: predicated region fallthrough
CT: control target
= control target key end

     0   :  { %s67_s10 = smov 112   ;;  %s68_s11 = smov 80   ;;  %vm3_vm0 = vcmask 130048   ;;  %vm9_vm1 = vcmask 1048448   ;;  %vm15_vm2 = vcmask 917248   ;;  %vm21_vm3 = vcmask 786048   ;;  %s111_s0 = inlined_call_operand.vmem [shape: s32[8,16], index: 0, kind: input, shape index: {}]   ;;  %s112_s1 = inlined_call_operand.vmem [shape: s32[128], index: 1, kind: output, shape index: {}]  }
   0x1   :  { %v53_v0 = vld [vmem:[%s111_s0 + $0x7] sm:$0x1]   ;;  %v55_v1 = vld [vmem:[%s111_s0 + $0x5] sm:$0x1]   ;;  %v54_v2 = vld [vmem:[%s111_s0 + $0x6] sm:$0x1]  }
   0x2   :  { %7 = vrot.lane.b32.xlu0 %v53_v0, %s67_s10  ;;  %19 = vrot.lane.b32.xlu1 %v55_v1, %s68_s11  ;;  %v56_v3 = vld [vmem:[%s111_s0 + $0x4] sm:$0x1]   ;;  %v2_v4 = vld [vmem:[%s111_s0] sm:$0x1]   ;;  %s69_s18 = smov 96   ;;  %s70_s19 = smov 64  }
   0x3   :  { %4 = vst.msk [vmem:[#allocation0] sm:$0x1] %vm3_vm0, %v2_v4   ;;  %v57_v5 = vld [vmem:[%s111_s0 + $0x3] sm:$0x1]   ;;  %v58_v6 = vld [vmem:[%s111_s0 + $0x2] sm:$0x1]  }
   0x4   :  { %s71_s24 = smov 48   ;;  %s72_s25 = smov 32   ;;  %v59_v7 = vld [vmem:[%s111_s0 + $0x1] sm:$0x1]   ;;  %vm27_vm4 = vcmask 654848   ;;  %vm33_vm5 = vcmask 523648  }
   0x5   :  { %s73_s0 = smov 16   ;;  %vm39_vm6 = vcmask 392448   ;;  %vm45_vm7 = vcmask 261248  }
   0x6   :  { %13 = vrot.lane.b32.xlu0 %v54_v2, %s69_s18  ;;  %25 = vrot.lane.b32.xlu1 %v56_v3, %s70_s19 }
   0xa   :  { %31 = vrot.lane.b32.xlu0 %v57_v5, %s71_s24  ;;  %37 = vrot.lane.b32.xlu1 %v58_v6, %s72_s25 }
   0xe   :  { %43 = vrot.lane.b32.xlu0 %v59_v7, %s73_s0 }
  0x74   :  { %v8_v8 = vpop.permute.xlu0 %7   ;;  %v20_v9 = vpop.permute.xlu1 %19  }
  0x75   :  { %10 = vst.msk [vmem:[#allocation0] sm:$0x1] %vm9_vm1, %v8_v8  }
  0x78   :  { %v14_v10 = vpop.permute.xlu0 %13   ;;  %v26_v11 = vpop.permute.xlu1 %25  }
  0x79   :  { %16 = vst.msk [vmem:[#allocation0] sm:$0x1] %vm15_vm2, %v14_v10  }
  0x7a   :  { %22 = vst.msk [vmem:[#allocation0] sm:$0x1] %vm21_vm3, %v20_v9  }
  0x7b   :  { %28 = vst.msk [vmem:[#allocation0] sm:$0x1] %vm27_vm4, %v26_v11  }
  0x7c   :  { %v32_v12 = vpop.permute.xlu0 %31   ;;  %v38_v13 = vpop.permute.xlu1 %37  }
  0x7d   :  { %34 = vst.msk [vmem:[#allocation0] sm:$0x1] %vm33_vm5, %v32_v12  }
  0x7e   :  { %40 = vst.msk [vmem:[#allocation0] sm:$0x1] %vm39_vm6, %v38_v13  }
  0x80   :  { %v44_v14 = vpop.permute.xlu0 %43  }
  0x81   :  { %46 = vst.msk [vmem:[#allocation0] sm:$0x1] %vm45_vm7, %v44_v14  }
  0x88   :  { %v50_v15 = vld [vmem:[#allocation0] sm:$0x1] }
  0x89   :  { %52 = vst [vmem:[%s112_s1] sm:$0x1] %v50_v15 }

// kernel: tile.45
= control target key start
LH: loop header
LB: loop body
LE: loop exit
PB: predicated region body
PF: predicated region fallthrough
CT: control target
= control target key end

     0   :  { %s22_s0 = inlined_call_operand.vmem [shape: f32[16], index: 0, kind: input, shape index: {}]   ;;  %s23_s1 = inlined_call_operand.vmem [shape: f32[8,16], index: 1, kind: output, shape index: {}]  }
   0x1   :  { %v4_v0 = vld [vmem:[%s22_s0] ss:$0 sm:$0xff] }
   0x2   :  { %5 = vst [vmem:[%s23_s1] sm:$0xff] %v4_v0 }

// kernel: tile.46
= control target key start
LH: loop header
LB: loop body
LE: loop exit
PB: predicated region body
PF: predicated region fallthrough
CT: control target
= control target key end

     0   :  { %s67_s10 = smov 112   ;;  %s68_s11 = smov 80   ;;  %vm3_vm0 = vcmask 130048   ;;  %vm9_vm1 = vcmask 1048448   ;;  %vm15_vm2 = vcmask 917248   ;;  %vm21_vm3 = vcmask 786048   ;;  %s111_s0 = inlined_call_operand.vmem [shape: f32[8,16], index: 0, kind: input, shape index: {}]   ;;  %s112_s1 = inlined_call_operand.vmem [shape: f32[1,128], index: 1, kind: output, shape index: {}]  }
   0x1   :  { %v53_v0 = vld [vmem:[%s111_s0 + $0x7] sm:$0x1]   ;;  %v55_v1 = vld [vmem:[%s111_s0 + $0x5] sm:$0x1]   ;;  %v54_v2 = vld [vmem:[%s111_s0 + $0x6] sm:$0x1]  }
   0x2   :  { %7 = vrot.lane.b32.xlu0 %v53_v0, %s67_s10  ;;  %19 = vrot.lane.b32.xlu1 %v55_v1, %s68_s11  ;;  %v56_v3 = vld [vmem:[%s111_s0 + $0x4] sm:$0x1]   ;;  %v2_v4 = vld [vmem:[%s111_s0] sm:$0x1]   ;;  %s69_s18 = smov 96   ;;  %s70_s19 = smov 64  }
   0x3   :  { %4 = vst.msk [vmem:[#allocation0] sm:$0x1] %vm3_vm0, %v2_v4   ;;  %v57_v5 = vld [vmem:[%s111_s0 + $0x3] sm:$0x1]   ;;  %v58_v6 = vld [vmem:[%s111_s0 + $0x2] sm:$0x1]  }
   0x4   :  { %s71_s24 = smov 48   ;;  %s72_s25 = smov 32   ;;  %v59_v7 = vld [vmem:[%s111_s0 + $0x1] sm:$0x1]   ;;  %vm27_vm4 = vcmask 654848   ;;  %vm33_vm5 = vcmask 523648  }
   0x5   :  { %s73_s0 = smov 16   ;;  %vm39_vm6 = vcmask 392448   ;;  %vm45_vm7 = vcmask 261248  }
   0x6   :  { %13 = vrot.lane.b32.xlu0 %v54_v2, %s69_s18  ;;  %25 = vrot.lane.b32.xlu1 %v56_v3, %s70_s19 }
   0xa   :  { %31 = vrot.lane.b32.xlu0 %v57_v5, %s71_s24  ;;  %37 = vrot.lane.b32.xlu1 %v58_v6, %s72_s25 }
   0xe   :  { %43 = vrot.lane.b32.xlu0 %v59_v7, %s73_s0 }
  0x74   :  { %v8_v8 = vpop.permute.xlu0 %7   ;;  %v20_v9 = vpop.permute.xlu1 %19  }
  0x75   :  { %10 = vst.msk [vmem:[#allocation0] sm:$0x1] %vm9_vm1, %v8_v8  }
  0x78   :  { %v14_v10 = vpop.permute.xlu0 %13   ;;  %v26_v11 = vpop.permute.xlu1 %25  }
  0x79   :  { %16 = vst.msk [vmem:[#allocation0] sm:$0x1] %vm15_vm2, %v14_v10  }
  0x7a   :  { %22 = vst.msk [vmem:[#allocation0] sm:$0x1] %vm21_vm3, %v20_v9  }
  0x7b   :  { %28 = vst.msk [vmem:[#allocation0] sm:$0x1] %vm27_vm4, %v26_v11  }
  0x7c   :  { %v32_v12 = vpop.permute.xlu0 %31   ;;  %v38_v13 = vpop.permute.xlu1 %37  }
  0x7d   :  { %34 = vst.msk [vmem:[#allocation0] sm:$0x1] %vm33_vm5, %v32_v12  }
  0x7e   :  { %40 = vst.msk [vmem:[#allocation0] sm:$0x1] %vm39_vm6, %v38_v13  }
  0x80   :  { %v44_v14 = vpop.permute.xlu0 %43  }
  0x81   :  { %46 = vst.msk [vmem:[#allocation0] sm:$0x1] %vm45_vm7, %v44_v14  }
  0x88   :  { %v50_v15 = vld [vmem:[#allocation0] sm:$0x1] }
  0x89   :  { %52 = vst [vmem:[%s112_s1] sm:$0x1] %v50_v15 }

// kernel: residual_block_forward.1
= control target key start
LH: loop header
LB: loop body
LE: loop exit
PB: predicated region body
PF: predicated region fallthrough
CT: control target
= control target key end

     0   :  { %s7440_s13 = smov 0   ;;  %s9398_s0 = inlined_call_operand.vmem [shape: f32[2,8,8,128], index: 0, kind: input, shape index: {}]   ;;  %s9399_s1 = inlined_call_operand.vmem [shape: bf16[9,160,128], index: 1, kind: input, shape index: {}]   ;;  %s9400_s2 = inlined_call_operand.vmem [shape: f32[1,128], index: 2, kind: input, shape index: {}]   ;;  %s9401_s3 = inlined_call_operand.vmem [shape: f32[1,128], index: 3, kind: input, shape index: {}]   ;;  %s9402_s4 = inlined_call_operand.vmem [shape: f32[1,128], index: 4, kind: input, shape index: {}]   ;;  %s9403_s5 = inlined_call_operand.vmem [shape: bf16[9,160,128], index: 5, kind: input, shape index: {}]   ;;  %s9404_s6 = inlined_call_operand.vmem [shape: f32[1,128], index: 6, kind: input, shape index: {}]   ;;  %s9405_s7 = inlined_call_operand.vmem [shape: f32[1,128], index: 7, kind: input, shape index: {}]   ;;  %s9406_s8 = inlined_call_operand.vmem [shape: f32[1,128], index: 8, kind: input, shape index: {}]   ;;  %s9407_s9 = inlined_call_operand.vmem [shape: f32[128,128], index: 9, kind: input, shape index: {}]   ;;  %s9408_s10 = inlined_call_operand.vmem [shape: f32[2,8,8,128], index: 10, kind: output, shape index: {}]  }
   0x1 LB: > { %s6178_s14 = sadd.s32 4294967295, %s7376_s13   ;;  %p6182_p0 = scmp.ge.s32.totalorder %s7376_s13, 1  ;;  %s7376_s13 = sphi %s7440_s13, %s20_s13  }
   0x2   : > { %p312_p1 = scmp.lt.s32.totalorder %s7376_s13, 3 }
   0x4   : > { %p313_p2 = pnand %p6182_p0, %p312_p1 }
   0x5   : > { %p350_p3 = scmp.lt.s32.totalorder (!%p313_p2), %s6178_s14, 1  ;;  %v7186_v0 = vld [vmem:[%s9399_s1 + $0x50] sm:$0xff] (!%p313_p2)   ;;  %v7378_v1 = vmov (!%p313_p2), 0   ;;  %v7187_v2 = vld [vmem:[%s9399_s1 + $0x58] sm:$0xff] (!%p313_p2)   ;;  %v7188_v3 = vld [vmem:[%s9399_s1 + $0x60] sm:$0xff] (!%p313_p2)   ;;  %vm372_vm0 = vcmask (!%p313_p2), 122880  }
   0x6   : > { %316 = sbr.rel (%p313_p2) target bundleno = 1988 (0x7c4), region = 60  ;;  %935 = vmatprep.subr.bf16.mxu0 (!%p313_p2), %v7378_v1  ;;  %vm388_vm1 = vcmask (!%p313_p2), 130049   ;;  %s7379_s25 = smov (!%p313_p2), 16   ;;  %v7189_v20 = vld [vmem:[%s9399_s1 + $0x68] sm:$0xff] (!%p313_p2)   ;;  %v7190_v21 = vld [vmem:[%s9399_s1 + $0x70] sm:$0xff] (!%p313_p2)   ;;  %v7191_v22 = vld [vmem:[%s9399_s1 + $0x78] sm:$0xff] (!%p313_p2)  }
   0x7   : > { %936 = vmatpush1.bf16.msra.mxu0 (!%p313_p2), %v7186_v0  ;;  %s7380_s28 = smov (!%p313_p2), 32   ;;  %v7192_v23 = vld [vmem:[%s9399_s1 + $0x80] sm:$0xff] (!%p313_p2)   ;;  %v7193_v24 = vld [vmem:[%s9399_s1 + $0x88] sm:$0xff] (!%p313_p2)   ;;  %v7194_v25 = vld [vmem:[%s9399_s1 + $0x90] sm:$0xff] (!%p313_p2)   ;;  %vm378_vm2 = vcmask (!%p313_p2), 1040512   ;;  %vm394_vm3 = vcmask (!%p313_p2), 1047681  }
   0x8   : > { %937 = vmatprep.subr.bf16.mxu0 (!%p313_p2), %v7378_v1  ;;  %v7195_v26 = vld [vmem:[%s9399_s1 + $0x98] sm:$0xff] (!%p313_p2)   ;;  %vm384_vm4 = vcmask (!%p313_p2), 254080   ;;  %vm402_vm5 = vcmask (!%p313_p2), 261249   ;;  %vm768_vm6 = vcmask (!%p313_p2), 1046528   ;;  %vm922_vm7 = vcmask (!%p313_p2), 261120  }
   0x9   : > { %vm1201_vm8 = vcmask (!%p313_p2), 1045504   ;;  %vm7382_vm9 = vmmov (!%p313_p2), 0  }
   0xb   : > { %938 = vmatpush1.bf16.msra.mxu0 (!%p313_p2), %v7187_v2 }
   0xc   : > { %939 = vmatprep.subr.bf16.mxu0 (!%p313_p2), %v7378_v1 }
   0xd   : > { %s9410_s14 = smov (!%p350_p3, %s6178_s14), 1 }
   0xe   : > { %s6761_s19 = sshll.u32 %s9410_s14, 6 }
   0xf   : > { %s7464_s22 = scalar_lea.vmem %s9398_s0, %s6761_s19  ;;  %940 = vmatpush1.bf16.msra.mxu0 %v7188_v3  ;;  %s359_s26 = scalar_lea.vmem %s9408_s10, %s6761_s19 }
  0x10   : > { %v7470_v4 = vld [vmem:[%s7464_s22 + $0x8] sm:$0xff]  ;;  %v7473_v5 = vld [vmem:[%s7464_s22] sm:$0xff]  ;;  %v7476_v6 = vld [vmem:[%s7464_s22 + $0x10] sm:$0xff]  ;;  %941 = vmatprep.subr.bf16.mxu0 %v7378_v1 }
  0x11   : > { %v7479_v7 = vrot.slane %v7470_v4, 7  ;;  %v386_v8 = vrot.slane %v7473_v5, 7  ;;  %v7483_v9 = vrot.slane %v7476_v6, 7  ;;  %v7486_v10 = vld [vmem:[%s7464_s22 + $0x20] sm:$0xff]  ;;  %v7489_v11 = vld [vmem:[%s7464_s22 + $0x18] sm:$0xff]  ;;  %v7492_v12 = vld [vmem:[%s7464_s22 + $0x30] sm:$0xff] }
  0x12   : > { %373 = vst.msk [vmem:[#allocation2] sm:$0x1] %vm372_vm0, %v7473_v5  ;;  %410 = vst.msk [vmem:[#allocation2 + $0x20] sm:$0x1] %vm372_vm0, %v7473_v5  ;;  %v7504_v13 = vrot.slane %v7486_v10, 7  ;;  %v7507_v14 = vrot.slane %v7489_v11, 7 }
  0x13   : > { %411 = vst.msk [vmem:[#allocation2 + $0x40] sm:$0x1] %vm372_vm0, %v7470_v4  ;;  %412 = vst.msk [vmem:[#allocation2 + $0x60] sm:$0x1] %vm372_vm0, %v7476_v6  ;;  %v7510_v15 = vrot.slane %v7492_v12, 7  ;;  %v7513_v16 = vld [vmem:[%s7464_s22 + $0x28] sm:$0xff]  ;;  %521 = vrot.lane.b32.xlu1 %v7479_v7, %s7379_s25  ;;  %391 = vrot.lane.b32.xlu0 %v386_v8, %s7379_s25 }
  0x14   : > { %v7516_v17 = vld [vmem:[%s7464_s22 + $0x38] sm:$0xff]  ;;  %413 = vst.msk [vmem:[#allocation2 + $0x80] sm:$0x1] %vm372_vm0, %v7489_v11  ;;  %414 = vst.msk [vmem:[#allocation2 + $0xa0] sm:$0x1] %vm372_vm0, %v7486_v10  ;;  %v7528_v18 = vrot.slane %v7513_v16, 7  ;;  %942 = vmatpush1.bf16.msra.mxu0 %v7189_v20 }
  0x15   : > { %416 = vst.msk [vmem:[#allocation2 + $0xe0] sm:$0x1] %vm372_vm0, %v7492_v12  ;;  %v7531_v19 = vrot.slane %v7516_v17, 7  ;;  %508 = vst.msk [vmem:[#allocation2 + $0x50] sm:$0x1] %vm372_vm0, %v7479_v7  ;;  %943 = vmatprep.subr.bf16.mxu0 %v7378_v1  ;;  %v7197_v20 = vld [vmem:[%s9399_s1 + $0x8] sm:$0xff]  }
  0x16   : > { %507 = vst.msk [vmem:[#allocation2 + $0x40] sm:$0xfe] %vm388_vm1, %v7479_v7  ;;  %389 = vst.msk [vmem:[#allocation2] sm:$0xfe] %vm388_vm1, %v386_v8 }
  0x17   : > { %612 = vst.msk [vmem:[#allocation2 + $0x51] sm:$0x1] %vm372_vm0, %v7479_v7  ;;  %390 = vst.msk [vmem:[#allocation2 + $0x10] sm:$0x1] %vm372_vm0, %v386_v8  ;;  %523 = vrot.lane.b32.xlu1 %v7483_v9, %s7379_s25  ;;  %399 = vrot.lane.b32.xlu0 %v386_v8, %s7380_s28 }
  0x18   : > { %405 = vst.msk [vmem:[#allocation2 + $0x11] sm:$0x1] %vm372_vm0, %v386_v8  ;;  %415 = vst.msk [vmem:[#allocation2 + $0xc0] sm:$0x1] %vm372_vm0, %v7513_v16  ;;  %944 = vmatpush1.bf16.msra.mxu0 %v7190_v21 }
  0x19   : > { %417 = vst.msk [vmem:[#allocation2 + $0x100] sm:$0x1] %vm372_vm0, %v7516_v17  ;;  %506 = vst.msk [vmem:[#allocation2 + $0x30] sm:$0x1] %vm372_vm0, %v386_v8  ;;  %945 = vmatprep.subr.bf16.mxu0 %v7378_v1 }
  0x1a   : > { %505 = vst.msk [vmem:[#allocation2 + $0x20] sm:$0xfe] %vm388_vm1, %v386_v8  ;;  %509 = vst.msk [vmem:[#allocation2 + $0x60] sm:$0xfe] %vm388_vm1, %v7483_v9 }
  0x1b   : > { %510 = vst.msk [vmem:[#allocation2 + $0x70] sm:$0x1] %vm372_vm0, %v7483_v9  ;;  %611 = vst.msk [vmem:[#allocation2 + $0x31] sm:$0x1] %vm372_vm0, %v386_v8  ;;  %576 = vrot.lane.b32.xlu1 %v7483_v9, %s7380_s28  ;;  %574 = vrot.lane.b32.xlu0 %v7479_v7, %s7380_s28 }
  0x1c   : > { %613 = vst.msk [vmem:[#allocation2 + $0x71] sm:$0x1] %vm372_vm0, %v7483_v9  ;;  %644 = vst.msk [vmem:[#allocation2 + $0x120] sm:$0x1] %vm372_vm0, %v7516_v17  ;;  %946 = vmatpush1.bf16.msra.mxu0 %v7191_v22 }
  0x1d   : > { %511 = vst.msk [vmem:[#allocation2 + $0x80] sm:$0xfe] %vm388_vm1, %v7507_v14  ;;  %513 = vst.msk [vmem:[#allocation2 + $0xa0] sm:$0xfe] %vm388_vm1, %v7504_v13  ;;  %947 = vmatprep.subr.bf16.mxu0 %v7378_v1 }
  0x1e   : > { %512 = vst.msk [vmem:[#allocation2 + $0x90] sm:$0x1] %vm372_vm0, %v7507_v14  ;;  %514 = vst.msk [vmem:[#allocation2 + $0xb0] sm:$0x1] %vm372_vm0, %v7504_v13 }
  0x1f   : > { %517 = vst.msk [vmem:[#allocation2 + $0xe0] sm:$0xfe] %vm388_vm1, %v7510_v15  ;;  %515 = vst.msk [vmem:[#allocation2 + $0xc0] sm:$0xfe] %vm388_vm1, %v7528_v18  ;;  %527 = vrot.lane.b32.xlu1 %v7504_v13, %s7379_s25  ;;  %525 = vrot.lane.b32.xlu0 %v7507_v14, %s7379_s25 }
  0x20   : > { %518 = vst.msk [vmem:[#allocation2 + $0xf0] sm:$0x1] %vm372_vm0, %v7510_v15  ;;  %614 = vst.msk [vmem:[#allocation2 + $0x91] sm:$0x1] %vm372_vm0, %v7507_v14  ;;  %948 = vmatpush1.bf16.msra.mxu0 %v7192_v23 }
  0x21   : > { %615 = vst.msk [vmem:[#allocation2 + $0xb1] sm:$0x1] %vm372_vm0, %v7504_v13  ;;  %617 = vst.msk [vmem:[#allocation2 + $0xf1] sm:$0x1] %vm372_vm0, %v7510_v15  ;;  %949 = vmatprep.subr.bf16.mxu0 %v7378_v1 }
  0x22   : > { %516 = vst.msk [vmem:[#allocation2 + $0xd0] sm:$0x1] %vm372_vm0, %v7528_v18  ;;  %520 = vst.msk [vmem:[#allocation2 + $0x110] sm:$0x1] %vm372_vm0, %v7531_v19 }
  0x23   : > { %519 = vst.msk [vmem:[#allocation2 + $0x100] sm:$0xfe] %vm388_vm1, %v7531_v19  ;;  %648 = vst.msk [vmem:[#allocation2 + $0x120] sm:$0xfe] %vm388_vm1, %v7531_v19  ;;  %580 = vrot.lane.b32.xlu1 %v7504_v13, %s7380_s28  ;;  %578 = vrot.lane.b32.xlu0 %v7507_v14, %s7380_s28 }
  0x24   : > { %616 = vst.msk [vmem:[#allocation2 + $0xd1] sm:$0x1] %vm372_vm0, %v7528_v18  ;;  %618 = vst.msk [vmem:[#allocation2 + $0x111] sm:$0x1] %vm372_vm0, %v7531_v19  ;;  %950 = vmatpush1.bf16.msra.mxu0 %v7193_v24 }
  0x25   : > { %649 = vst.msk [vmem:[#allocation2 + $0x130] sm:$0x1] %vm372_vm0, %v7531_v19  ;;  %656 = vst.msk [vmem:[#allocation2 + $0x131] sm:$0x1] %vm372_vm0, %v7531_v19  ;;  %951 = vmatprep.subr.bf16.mxu0 %v7378_v1 }
  0x27   : > { %531 = vrot.lane.b32.xlu1 %v7510_v15, %s7379_s25  ;;  %529 = vrot.lane.b32.xlu0 %v7528_v18, %s7379_s25 }
  0x28   : > { %952 = vmatpush1.bf16.msra.mxu0 %v7194_v25  ;;  %v7198_v25 = vld [vmem:[%s9399_s1 + $0x10] sm:$0xff]  }
  0x29   : > { %953 = vmatprep.subr.bf16.mxu0 %v7378_v1 }
  0x2b   : > { %584 = vrot.lane.b32.xlu1 %v7510_v15, %s7380_s28  ;;  %582 = vrot.lane.b32.xlu0 %v7528_v18, %s7380_s28 }
  0x2c   : > { %954 = vmatpush1.bf16.msra.mxu0 %v7195_v26 }
  0x2d   : > { %1072 = vmatprep.subr.bf16.mxu0 %v7378_v1 }
  0x2f   : > { %381 = vrot.lane.b32.xlu1 %v7473_v5, %s7380_s28  ;;  %375 = vrot.lane.b32.xlu0 %v7473_v5, %s7379_s25 }
  0x33   : > { %427 = vrot.lane.b32.xlu1 %v7476_v6, %s7379_s25  ;;  %425 = vrot.lane.b32.xlu0 %v7470_v4, %s7379_s25 }
  0x37   : > { %464 = vrot.lane.b32.xlu1 %v7476_v6, %s7380_s28  ;;  %462 = vrot.lane.b32.xlu0 %v7470_v4, %s7380_s28  ;;  %v7196_v6 = vld [vmem:[%s9399_s1] sm:$0xff]  }
  0x3b   : > { %431 = vrot.lane.b32.xlu1 %v7486_v10, %s7379_s25  ;;  %429 = vrot.lane.b32.xlu0 %v7489_v11, %s7379_s25 }
  0x3f   : > { %468 = vrot.lane.b32.xlu1 %v7486_v10, %s7380_s28  ;;  %466 = vrot.lane.b32.xlu0 %v7489_v11, %s7380_s28 }
  0x43   : > { %435 = vrot.lane.b32.xlu1 %v7492_v12, %s7379_s25  ;;  %433 = vrot.lane.b32.xlu0 %v7513_v16, %s7379_s25 }
  0x47   : > { %472 = vrot.lane.b32.xlu1 %v7492_v12, %s7380_s28  ;;  %470 = vrot.lane.b32.xlu0 %v7513_v16, %s7380_s28 }
  0x4b   : > { %533 = vrot.lane.b32.xlu1 %v7531_v19, %s7379_s25  ;;  %437 = vrot.lane.b32.xlu0 %v7516_v17, %s7379_s25 }
  0x4f   : > { %586 = vrot.lane.b32.xlu1 %v7531_v19, %s7380_s28  ;;  %474 = vrot.lane.b32.xlu0 %v7516_v17, %s7380_s28 }
  0x85   : > { %v522_v27 = vpop.permute.xlu1 %521  ;;  %v392_v28 = vpop.permute.xlu0 %391 }
  0x86   : > { %546 = vst.msk [vmem:[#allocation2 + $0x40] sm:$0xfe] %vm394_vm3, %v522_v27  ;;  %395 = vst.msk [vmem:[#allocation2] sm:$0xfe] %vm394_vm3, %v392_v28 }
  0x87   : > { %548 = vst.msk [vmem:[#allocation2 + $0x50] sm:$0x1] %vm378_vm2, %v522_v27  ;;  %621 = vst.msk [vmem:[#allocation2 + $0x51] sm:$0x1] %vm378_vm2, %v522_v27 }
  0x88   : > { %547 = vst.msk [vmem:[#allocation2 + $0x48] sm:$0xfe] %vm388_vm1, %v522_v27  ;;  %396 = vst.msk [vmem:[#allocation2 + $0x8] sm:$0xfe] %vm388_vm1, %v392_v28 }
  0x89   : > { %549 = vst.msk [vmem:[#allocation2 + $0x58] sm:$0x1] %vm372_vm0, %v522_v27  ;;  %622 = vst.msk [vmem:[#allocation2 + $0x59] sm:$0x1] %vm372_vm0, %v522_v27  ;;  %v524_v29 = vpop.permute.xlu1 %523  ;;  %v400_v30 = vpop.permute.xlu0 %399 }
  0x8a   : > { %397 = vst.msk [vmem:[#allocation2 + $0x10] sm:$0x1] %vm378_vm2, %v392_v28  ;;  %406 = vst.msk [vmem:[#allocation2 + $0x11] sm:$0x1] %vm378_vm2, %v392_v28 }
  0x8b   : > { %542 = vst.msk [vmem:[#allocation2 + $0x20] sm:$0xfe] %vm394_vm3, %v392_v28  ;;  %550 = vst.msk [vmem:[#allocation2 + $0x60] sm:$0xfe] %vm394_vm3, %v524_v29 }
  0x8c   : > { %544 = vst.msk [vmem:[#allocation2 + $0x30] sm:$0x1] %vm378_vm2, %v392_v28  ;;  %619 = vst.msk [vmem:[#allocation2 + $0x31] sm:$0x1] %vm378_vm2, %v392_v28 }
  0x8d   : > { %398 = vst.msk [vmem:[#allocation2 + $0x18] sm:$0x1] %vm372_vm0, %v392_v28  ;;  %407 = vst.msk [vmem:[#allocation2 + $0x19] sm:$0x1] %vm372_vm0, %v392_v28  ;;  %v577_v31 = vpop.permute.xlu1 %576  ;;  %v575_v32 = vpop.permute.xlu0 %574  ;;  %v704_v33 = vld [vmem:[#allocation2] sm:$0xfe] }
  0x8e   : > { %543 = vst.msk [vmem:[#allocation2 + $0x28] sm:$0xfe] %vm388_vm1, %v392_v28  ;;  %551 = vst.msk [vmem:[#allocation2 + $0x68] sm:$0xfe] %vm388_vm1, %v524_v29  ;;  %v769_v37 = vrot.slane %v704_v33, 1 }
  0x8f   : > { %545 = vst.msk [vmem:[#allocation2 + $0x38] sm:$0x1] %vm372_vm0, %v392_v28  ;;  %620 = vst.msk [vmem:[#allocation2 + $0x39] sm:$0x1] %vm372_vm0, %v392_v28  ;;  %v7717_v39 = vld [vmem:[#allocation2 + $0x40] sm:$0xfe] }
  0x90   : > { %552 = vst.msk [vmem:[#allocation2 + $0x70] sm:$0x1] %vm378_vm2, %v524_v29  ;;  %623 = vst.msk [vmem:[#allocation2 + $0x71] sm:$0x1] %vm378_vm2, %v524_v29  ;;  %v7719_v42 = vld [vmem:[#allocation2 + $0x50] sm:$0x1] }
  0x91   : > { %553 = vst.msk [vmem:[#allocation2 + $0x78] sm:$0x1] %vm372_vm0, %v524_v29  ;;  %624 = vst.msk [vmem:[#allocation2 + $0x79] sm:$0x1] %vm372_vm0, %v524_v29  ;;  %v706_v34 = vld [vmem:[#allocation2 + $0x10] sm:$0x1]  ;;  %v528_v43 = vpop.permute.xlu1 %527  ;;  %v526_v44 = vpop.permute.xlu0 %525 }
  0x92   : > { %403 = vst.msk [vmem:[#allocation2 + $0x8] sm:$0xfe] %vm402_vm5, %v400_v30  ;;  %595 = vst.msk [vmem:[#allocation2 + $0x28] sm:$0xfe] %vm402_vm5, %v400_v30  ;;  %v708_v35 = vld [vmem:[#allocation2 + $0x20] sm:$0xfe] }
  0x93   : > { %404 = vst.msk [vmem:[#allocation2 + $0x18] sm:$0x1] %vm384_vm4, %v400_v30  ;;  %408 = vst.msk [vmem:[#allocation2 + $0x19] sm:$0x1] %vm384_vm4, %v400_v30  ;;  %v710_v36 = vld [vmem:[#allocation2 + $0x30] sm:$0x1] }
  0x94   : > { %596 = vst.msk [vmem:[#allocation2 + $0x38] sm:$0x1] %vm384_vm4, %v400_v30  ;;  %635 = vst.msk [vmem:[#allocation2 + $0x39] sm:$0x1] %vm384_vm4, %v400_v30  ;;  %v770_v38 = vrot.slane %v706_v34, 1  ;;  %v775_v40 = vrot.slane %v708_v35, 1 }
  0x95   : > { %599 = vst.msk [vmem:[#allocation2 + $0x68] sm:$0xfe] %vm402_vm5, %v577_v31  ;;  %597 = vst.msk [vmem:[#allocation2 + $0x48] sm:$0xfe] %vm402_vm5, %v575_v32  ;;  %v776_v41 = vrot.slane %v710_v36, 1  ;;  %v781_v52 = vrot.slane %v7717_v39, 1  ;;  %v581_v62 = vpop.permute.xlu1 %580  ;;  %v579_v63 = vpop.permute.xlu0 %578 }
  0x96   : > { %600 = vst.msk [vmem:[#allocation2 + $0x78] sm:$0x1] %vm384_vm4, %v577_v31  ;;  %637 = vst.msk [vmem:[#allocation2 + $0x79] sm:$0x1] %vm384_vm4, %v577_v31  ;;  %v771_v54 = vsel %vm768_vm6, %v769_v37, %v770_v38  ;;  %v716_v55 = vld [vmem:[#allocation2 + $0x60] sm:$0xfe] }
  0x97   : > { %598 = vst.msk [vmem:[#allocation2 + $0x58] sm:$0x1] %vm384_vm4, %v575_v32  ;;  %636 = vst.msk [vmem:[#allocation2 + $0x59] sm:$0x1] %vm384_vm4, %v575_v32  ;;  %v718_v56 = vld [vmem:[#allocation2 + $0x70] sm:$0x1]  ;;  %v777_v59 = vsel %vm768_vm6, %v775_v40, %v776_v41 }
  0x98   : > { %558 = vst.msk [vmem:[#allocation2 + $0xa0] sm:$0xfe] %vm394_vm3, %v528_v43  ;;  %554 = vst.msk [vmem:[#allocation2 + $0x80] sm:$0xfe] %vm394_vm3, %v526_v44  ;;  %v782_v57 = vrot.slane %v7719_v42, 1  ;;  %v787_v60 = vrot.slane %v716_v55, 1  ;;  %v833_v11 = vpack.c.bf16 %v777_v59, %v771_v54 }
  0x99   : > { %v705_v45 = vld [vmem:[#allocation2 + $0x8] sm:$0xfe]  ;;  %560 = vst.msk [vmem:[#allocation2 + $0xb0] sm:$0x1] %vm378_vm2, %v528_v43  ;;  %627 = vst.msk [vmem:[#allocation2 + $0xb1] sm:$0x1] %vm378_vm2, %v528_v43  ;;  %v532_v14 = vpop.permute.xlu1 %531  ;;  %v530_v15 = vpop.permute.xlu0 %529 }
  0x9a   : > { %v707_v46 = vld [vmem:[#allocation2 + $0x18] sm:$0x1]  ;;  %v709_v47 = vld [vmem:[#allocation2 + $0x28] sm:$0xfe]  ;;  %559 = vst.msk [vmem:[#allocation2 + $0xa8] sm:$0xfe] %vm388_vm1, %v528_v43  ;;  %v783_v22 = vsel %vm768_vm6, %v781_v52, %v782_v57 }
  0x9b   : > { %561 = vst.msk [vmem:[#allocation2 + $0xb8] sm:$0x1] %vm372_vm0, %v528_v43  ;;  %628 = vst.msk [vmem:[#allocation2 + $0xb9] sm:$0x1] %vm372_vm0, %v528_v43  ;;  %v711_v48 = vld [vmem:[#allocation2 + $0x38] sm:$0x1] }
  0x9c   : > { %556 = vst.msk [vmem:[#allocation2 + $0x90] sm:$0x1] %vm378_vm2, %v526_v44  ;;  %625 = vst.msk [vmem:[#allocation2 + $0x91] sm:$0x1] %vm378_vm2, %v526_v44  ;;  %v772_v49 = vrot.slane %v705_v45, 1  ;;  %v773_v50 = vrot.slane %v707_v46, 1 }
  0x9d   : > { %555 = vst.msk [vmem:[#allocation2 + $0x88] sm:$0xfe] %vm388_vm1, %v526_v44  ;;  %v778_v51 = vrot.slane %v709_v47, 1  ;;  %v779_v53 = vrot.slane %v711_v48, 1  ;;  %v788_v61 = vrot.slane %v718_v56, 1  ;;  %v585_v29 = vpop.permute.xlu1 %584  ;;  %v583_v30 = vpop.permute.xlu0 %582  ;;  %v7199_v48 = vld [vmem:[%s9399_s1 + $0x18] sm:$0xff]  }
  0x9e   : > { %557 = vst.msk [vmem:[#allocation2 + $0x98] sm:$0x1] %vm372_vm0, %v526_v44  ;;  %626 = vst.msk [vmem:[#allocation2 + $0x99] sm:$0x1] %vm372_vm0, %v526_v44  ;;  %v774_v58 = vsel %vm768_vm6, %v772_v49, %v773_v50  ;;  %v713_v2 = vld [vmem:[#allocation2 + $0x48] sm:$0xfe] }
  0x9f   : > { %v780_v0 = vsel %vm768_vm6, %v778_v51, %v779_v53  ;;  %v715_v3 = vld [vmem:[#allocation2 + $0x58] sm:$0x1]  ;;  %v717_v4 = vld [vmem:[#allocation2 + $0x68] sm:$0xfe]  ;;  %603 = vst.msk [vmem:[#allocation2 + $0xa8] sm:$0xfe] %vm402_vm5, %v581_v62  ;;  %v789_v23 = vsel %vm768_vm6, %v787_v60, %v788_v61 }
  0xa0   : > { %604 = vst.msk [vmem:[#allocation2 + $0xb8] sm:$0x1] %vm384_vm4, %v581_v62  ;;  %639 = vst.msk [vmem:[#allocation2 + $0xb9] sm:$0x1] %vm384_vm4, %v581_v62  ;;  %v834_v5 = vpack.c.bf16 %v780_v0, %v774_v58  ;;  %v719_v7 = vld [vmem:[#allocation2 + $0x78] sm:$0x1]  ;;  %v835_v31 = vpack.c.bf16 %v789_v23, %v783_v22 }
  0xa1   : > { %601 = vst.msk [vmem:[#allocation2 + $0x88] sm:$0xfe] %vm402_vm5, %v579_v63  ;;  %v784_v8 = vrot.slane %v713_v2, 1  ;;  %v785_v9 = vrot.slane %v715_v3, 1  ;;  %v790_v10 = vrot.slane %v717_v4, 1  ;;  %v791_v12 = vrot.slane %v719_v7, 1  ;;  %v382_v42 = vpop.permute.xlu1 %381  ;;  %v376_v43 = vpop.permute.xlu0 %375 }
  0xa2   : > { %602 = vst.msk [vmem:[#allocation2 + $0x98] sm:$0x1] %vm384_vm4, %v579_v63  ;;  %638 = vst.msk [vmem:[#allocation2 + $0x99] sm:$0x1] %vm384_vm4, %v579_v63  ;;  %6217 = vmatprep.mubr.msk.bf16.mxu0 %vm922_vm7, %v834_v5  ;;  %v7751_v17 = vld [vmem:[#allocation2 + $0x80] sm:$0xfe] }
  0xa3   : > { %v786_v13 = vsel %vm768_vm6, %v784_v8, %v785_v9  ;;  %968 = vmatmul.mubr.bf16.vlgmr.msra.gmra.mrb[0].mxu0 %v833_v11  ;;  %v792_v16 = vsel %vm768_vm6, %v790_v10, %v791_v12  ;;  %v7753_v18 = vld [vmem:[#allocation2 + $0x90] sm:$0x1]  ;;  %v7755_v19 = vld [vmem:[#allocation2 + $0xa0] sm:$0xfe]  ;;  %566 = vst.msk [vmem:[#allocation2 + $0xe0] sm:$0xfe] %vm394_vm3, %v532_v14 }
  0xa4   : > { %1073 = vmatpush1.bf16.msra.mxu0 %v7196_v6  ;;  %568 = vst.msk [vmem:[#allocation2 + $0xf0] sm:$0x1] %vm378_vm2, %v532_v14  ;;  %631 = vst.msk [vmem:[#allocation2 + $0xf1] sm:$0x1] %vm378_vm2, %v532_v14  ;;  %v836_v21 = vpack.c.bf16 %v792_v16, %v786_v13  ;;  %v726_v24 = vld [vmem:[#allocation2 + $0xb0] sm:$0x1] }
  0xa5   : > { %567 = vst.msk [vmem:[#allocation2 + $0xe8] sm:$0xfe] %vm388_vm1, %v532_v14  ;;  %563 = vst.msk [vmem:[#allocation2 + $0xc8] sm:$0xfe] %vm388_vm1, %v530_v15  ;;  %1074 = vmatprep.subr.bf16.mxu0 %v7378_v1  ;;  %v793_v26 = vrot.slane %v7751_v17, 1  ;;  %v794_v27 = vrot.slane %v7753_v18, 1  ;;  %v428_v57 = vpop.permute.xlu1 %427  ;;  %v426_v58 = vpop.permute.xlu0 %425 }
  0xa6   : > { %569 = vst.msk [vmem:[#allocation2 + $0xf8] sm:$0x1] %vm372_vm0, %v532_v14  ;;  %632 = vst.msk [vmem:[#allocation2 + $0xf9] sm:$0x1] %vm372_vm0, %v532_v14  ;;  %6218 = vmatprep.mubr.msk.bf16.mxu0 %vm922_vm7, %v836_v21  ;;  %v799_v28 = vrot.slane %v7755_v19, 1  ;;  %v800_v39 = vrot.slane %v726_v24, 1 }
  0xa7   : > { %562 = vst.msk [vmem:[#allocation2 + $0xc0] sm:$0xfe] %vm394_vm3, %v530_v15  ;;  %v725_v34 = vld [vmem:[#allocation2 + $0xa8] sm:$0xfe]  ;;  %v727_v35 = vld [vmem:[#allocation2 + $0xb8] sm:$0x1]  ;;  %v795_v50 = vsel %vm768_vm6, %v793_v26, %v794_v27 }
  0xa8   : > { %564 = vst.msk [vmem:[#allocation2 + $0xd0] sm:$0x1] %vm378_vm2, %v530_v15  ;;  %629 = vst.msk [vmem:[#allocation2 + $0xd1] sm:$0x1] %vm378_vm2, %v530_v15  ;;  %v721_v32 = vld [vmem:[#allocation2 + $0x88] sm:$0xfe]  ;;  %1075 = vmatpush1.bf16.msra.mxu0 %v7197_v20  ;;  %v801_v51 = vsel %vm768_vm6, %v799_v28, %v800_v39 }
  0xa9   : > { %565 = vst.msk [vmem:[#allocation2 + $0xd8] sm:$0x1] %vm372_vm0, %v530_v15  ;;  %630 = vst.msk [vmem:[#allocation2 + $0xd9] sm:$0x1] %vm372_vm0, %v530_v15  ;;  %v723_v33 = vld [vmem:[#allocation2 + $0x98] sm:$0x1]  ;;  %1076 = vmatprep.subr.bf16.mxu0 %v7378_v1  ;;  %v837_v59 = vpack.c.bf16 %v801_v51, %v795_v50  ;;  %v465_v7 = vpop.permute.xlu1 %464  ;;  %v463_v8 = vpop.permute.xlu0 %462 }
  0xaa   : > { %607 = vst.msk [vmem:[#allocation2 + $0xe8] sm:$0xfe] %vm402_vm5, %v585_v29  ;;  %605 = vst.msk [vmem:[#allocation2 + $0xc8] sm:$0xfe] %vm402_vm5, %v583_v30  ;;  %v796_v36 = vrot.slane %v721_v32, 1  ;;  %v797_v37 = vrot.slane %v723_v33, 1 }
  0xab   : > { %608 = vst.msk [vmem:[#allocation2 + $0xf8] sm:$0x1] %vm384_vm4, %v585_v29  ;;  %641 = vst.msk [vmem:[#allocation2 + $0xf9] sm:$0x1] %vm384_vm4, %v585_v29  ;;  %v802_v38 = vrot.slane %v725_v34, 1  ;;  %v803_v40 = vrot.slane %v727_v35, 1  ;;  %976 = vmatmul.mubr.bf16.gmra.mrb[4].mxu0 %v835_v31 }
  0xac   : > { %606 = vst.msk [vmem:[#allocation2 + $0xd8] sm:$0x1] %vm384_vm4, %v583_v30  ;;  %640 = vst.msk [vmem:[#allocation2 + $0xd9] sm:$0x1] %vm384_vm4, %v583_v30  ;;  %v798_v41 = vsel %vm768_vm6, %v796_v36, %v797_v37  ;;  %v732_v47 = vld [vmem:[#allocation2 + $0xe0] sm:$0xfe]  ;;  %1077 = vmatpush1.bf16.msra.mxu0 %v7198_v25 }
  0xad   : > { %v804_v44 = vsel %vm768_vm6, %v802_v38, %v803_v40  ;;  %379 = vst.msk [vmem:[#allocation2] sm:$0x1] %vm378_vm2, %v376_v43  ;;  %446 = vst.msk [vmem:[#allocation2 + $0x20] sm:$0x1] %vm378_vm2, %v376_v43  ;;  %1078 = vmatprep.subr.bf16.mxu0 %v7378_v1  ;;  %v734_v52 = vld [vmem:[#allocation2 + $0xf0] sm:$0x1]  ;;  %v432_v14 = vpop.permute.xlu1 %431  ;;  %v430_v15 = vpop.permute.xlu0 %429 }
  0xae   : > { %v728_v45 = vld [vmem:[#allocation2 + $0xc0] sm:$0xfe]  ;;  %380 = vst.msk [vmem:[#allocation2 + $0x8] sm:$0x1] %vm372_vm0, %v376_v43  ;;  %447 = vst.msk [vmem:[#allocation2 + $0x28] sm:$0x1] %vm372_vm0, %v376_v43  ;;  %v838_v49 = vpack.c.bf16 %v804_v44, %v798_v41 }
  0xaf   : > { %v730_v46 = vld [vmem:[#allocation2 + $0xd0] sm:$0x1]  ;;  %385 = vst.msk [vmem:[#allocation2 + $0x8] sm:$0x1] %vm384_vm4, %v382_v42  ;;  %483 = vst.msk [vmem:[#allocation2 + $0x28] sm:$0x1] %vm384_vm4, %v382_v42 }
  0xb0   : > { %6219 = vmatprep.mubr.msk.bf16.mxu0 %vm922_vm7, %v838_v49  ;;  %v7200_v53 = vld [vmem:[%s9399_s1 + $0x20] sm:$0xff]   ;;  %v805_v54 = vrot.slane %v728_v45, 1  ;;  %v806_v55 = vrot.slane %v730_v46, 1  ;;  %v811_v56 = vrot.slane %v732_v47, 1  ;;  %1079 = vmatpush1.bf16.msra.mxu0 %v7199_v48  ;;  %450 = vst.msk [vmem:[#allocation2 + $0x60] sm:$0x1] %vm378_vm2, %v428_v57 }
  0xb1   : > { %v729_v60 = vld [vmem:[#allocation2 + $0xc8] sm:$0xfe]  ;;  %451 = vst.msk [vmem:[#allocation2 + $0x68] sm:$0x1] %vm372_vm0, %v428_v57  ;;  %449 = vst.msk [vmem:[#allocation2 + $0x48] sm:$0x1] %vm372_vm0, %v426_v58  ;;  %1080 = vmatprep.subr.bf16.mxu0 %v7378_v1  ;;  %v469_v21 = vpop.permute.xlu1 %468  ;;  %v467_v22 = vpop.permute.xlu0 %466 }
  0xb2   : > { %v733_v62 = vld [vmem:[#allocation2 + $0xe8] sm:$0xfe]  ;;  %448 = vst.msk [vmem:[#allocation2 + $0x40] sm:$0x1] %vm378_vm2, %v426_v58  ;;  %v735_v63 = vld [vmem:[#allocation2 + $0xf8] sm:$0x1]  ;;  %v807_v12 = vsel %vm768_vm6, %v805_v54, %v806_v55 }
  0xb3   : > { %v731_v61 = vld [vmem:[#allocation2 + $0xd8] sm:$0x1]  ;;  %v808_v0 = vrot.slane %v729_v60, 1  ;;  %v814_v3 = vrot.slane %v733_v62, 1  ;;  %v812_v4 = vrot.slane %v734_v52, 1  ;;  %v815_v5 = vrot.slane %v735_v63, 1  ;;  %984 = vmatmul.mubr.bf16.gmra.mrb[8].mxu0 %v837_v59 }
  0xb4   : > { %v809_v2 = vrot.slane %v731_v61, 1  ;;  %1081 = vmatpush1.bf16.msra.mxu0 %v7200_v53  ;;  %485 = vst.msk [vmem:[#allocation2 + $0x68] sm:$0x1] %vm384_vm4, %v465_v7  ;;  %484 = vst.msk [vmem:[#allocation2 + $0x48] sm:$0x1] %vm384_vm4, %v463_v8  ;;  %v7201_v10 = vld [vmem:[%s9399_s1 + $0x28] sm:$0xff]  }
  0xb5   : > { %v816_v9 = vsel %vm768_vm6, %v814_v3, %v815_v5  ;;  %v813_v13 = vsel %vm768_vm6, %v811_v56, %v812_v4  ;;  %1082 = vmatprep.subr.bf16.mxu0 %v7378_v1  ;;  %454 = vst.msk [vmem:[#allocation2 + $0xa0] sm:$0x1] %vm378_vm2, %v432_v14  ;;  %452 = vst.msk [vmem:[#allocation2 + $0x80] sm:$0x1] %vm378_vm2, %v430_v15  ;;  %v7202_v19 = vld [vmem:[%s9399_s1 + $0x30] sm:$0xff]   ;;  %v7203_v23 = vld [vmem:[%s9399_s1 + $0x38] sm:$0xff]   ;;  %v436_v24 = vpop.permute.xlu1 %435  ;;  %v434_v25 = vpop.permute.xlu0 %433 }
  0xb6   : > { %v810_v6 = vsel %vm768_vm6, %v808_v0, %v809_v2  ;;  %v839_v16 = vpack.c.bf16 %v813_v13, %v807_v12  ;;  %v661_v17 = vld [vmem:[#allocation2 + $0x8] sm:$0xff]  ;;  %455 = vst.msk [vmem:[#allocation2 + $0xa8] sm:$0x1] %vm372_vm0, %v432_v14  ;;  %453 = vst.msk [vmem:[#allocation2 + $0x88] sm:$0x1] %vm372_vm0, %v430_v15  ;;  %v7204_v26 = vld [vmem:[%s9399_s1 + $0x40] sm:$0xff]  }
  0xb7   : > { %v840_v11 = vpack.c.bf16 %v816_v9, %v810_v6  ;;  %v7823_v18 = vld [vmem:[#allocation2 + $0x28] sm:$0xff]  ;;  %487 = vst.msk [vmem:[#allocation2 + $0xa8] sm:$0x1] %vm384_vm4, %v469_v21  ;;  %486 = vst.msk [vmem:[#allocation2 + $0x88] sm:$0x1] %vm384_vm4, %v467_v22  ;;  %v660_v30 = vld [vmem:[#allocation2] sm:$0xff] }
  0xb8   : > { %1083 = vmatpush1.bf16.msra.mxu0 %v7201_v10  ;;  %v677_v20 = vpack.c.bf16 %v7823_v18, %v661_v17  ;;  %458 = vst.msk [vmem:[#allocation2 + $0xe0] sm:$0x1] %vm378_vm2, %v436_v24  ;;  %456 = vst.msk [vmem:[#allocation2 + $0xc0] sm:$0x1] %vm378_vm2, %v434_v25  ;;  %v7205_v29 = vld [vmem:[%s9399_s1 + $0x48] sm:$0xff]   ;;  %v7855_v31 = vld [vmem:[#allocation2 + $0x20] sm:$0xff] }
  0xb9   : > { %6220 = vmatprep.mubr.msk.bf16.mxu0 %vm922_vm7, %v840_v11  ;;  %1084 = vmatprep.subr.bf16.mxu0 %v7378_v1  ;;  %459 = vst.msk [vmem:[#allocation2 + $0xe8] sm:$0x1] %vm372_vm0, %v436_v24  ;;  %457 = vst.msk [vmem:[#allocation2 + $0xc8] sm:$0x1] %vm372_vm0, %v434_v25  ;;  %v473_v27 = vpop.permute.xlu1 %472  ;;  %v471_v28 = vpop.permute.xlu0 %470  ;;  %v7206_v36 = vld [vmem:[%s9399_s1 + $0xa0] sm:$0xff]   ;;  %v676_v37 = vpack.c.bf16 %v7855_v31, %v660_v30  ;;  %v7207_v41 = vld [vmem:[%s9399_s1 + $0xa8] sm:$0xff]  }
  0xba   : > { %489 = vst.msk [vmem:[#allocation2 + $0xe8] sm:$0x1] %vm384_vm4, %v473_v27  ;;  %488 = vst.msk [vmem:[#allocation2 + $0xc8] sm:$0x1] %vm384_vm4, %v471_v28  ;;  %v7897_v42 = vld [vmem:[#allocation2 + $0x40] sm:$0xff]  ;;  %v7208_v46 = vld [vmem:[%s9399_s1 + $0xb0] sm:$0xff]  }
  0xbb   : > { %992 = vmatmul.mubr.bf16.gmra.mrb[12].mxu0 %v839_v16  ;;  %v7857_v34 = vld [vmem:[#allocation2 + $0x48] sm:$0xff]  ;;  %v7899_v43 = vld [vmem:[#allocation2 + $0x60] sm:$0xff]  ;;  %v7209_v49 = vld [vmem:[%s9399_s1 + $0xb8] sm:$0xff]  }
  0xbc   : > { %1085 = vmatpush1.bf16.msra.mxu0 %v7202_v19  ;;  %6231 = vmatprep.mubr.msk.bf16.mxu0 %vm922_vm7, %v677_v20  ;;  %v7859_v35 = vld [vmem:[#allocation2 + $0x68] sm:$0xff]  ;;  %v678_v47 = vpack.c.bf16 %v7899_v43, %v7897_v42  ;;  %v7918_v50 = vld [vmem:[#allocation2 + $0x80] sm:$0xff]  ;;  %v1140_v56 = vld [vmem:[#allocation2 + $0x18] sm:$0x3] }
  0xbd   : > { %1086 = vmatprep.subr.bf16.mxu0 %v7378_v1  ;;  %v534_v32 = vpop.permute.xlu1 %533  ;;  %v438_v33 = vpop.permute.xlu0 %437  ;;  %v679_v38 = vpack.c.bf16 %v7859_v35, %v7857_v34  ;;  %v7920_v51 = vld [vmem:[#allocation2 + $0xa0] sm:$0xff]  ;;  %v1138_v55 = vld [vmem:[#allocation2 + $0x8] sm:$0xfc]  ;;  %v1144_v58 = vld [vmem:[#allocation2 + $0x38] sm:$0x3]  ;;  %v1206_v62 = vrot.slane %v1140_v56, 2 }
  0xbe   : > { %570 = vst.msk [vmem:[#allocation2 + $0x100] sm:$0xfe] %vm394_vm3, %v534_v32  ;;  %650 = vst.msk [vmem:[#allocation2 + $0x120] sm:$0xfe] %vm394_vm3, %v534_v32  ;;  %v7901_v44 = vld [vmem:[#allocation2 + $0x88] sm:$0xff]  ;;  %v7210_v52 = vld [vmem:[%s9399_s1 + $0xc0] sm:$0xff]   ;;  %v680_v59 = vpack.c.bf16 %v7920_v51, %v7918_v50 }
  0xbf   : > { %572 = vst.msk [vmem:[#allocation2 + $0x110] sm:$0x1] %vm378_vm2, %v534_v32  ;;  %633 = vst.msk [vmem:[#allocation2 + $0x111] sm:$0x1] %vm378_vm2, %v534_v32  ;;  %v7903_v45 = vld [vmem:[#allocation2 + $0xa8] sm:$0xff]  ;;  %v1205_v61 = vrot.slane %v1138_v55, 2 }
  0xc0   : > { %1087 = vmatpush1.bf16.msra.mxu0 %v7203_v23  ;;  %652 = vst.msk [vmem:[#allocation2 + $0x130] sm:$0x1] %vm378_vm2, %v534_v32  ;;  %657 = vst.msk [vmem:[#allocation2 + $0x131] sm:$0x1] %vm378_vm2, %v534_v32  ;;  %v681_v48 = vpack.c.bf16 %v7903_v45, %v7901_v44  ;;  %v1142_v57 = vld [vmem:[#allocation2 + $0x28] sm:$0xfc] }
  0xc1   : > { %1088 = vmatprep.subr.bf16.mxu0 %v7378_v1  ;;  %571 = vst.msk [vmem:[#allocation2 + $0x108] sm:$0xfe] %vm388_vm1, %v534_v32  ;;  %651 = vst.msk [vmem:[#allocation2 + $0x128] sm:$0xfe] %vm388_vm1, %v534_v32  ;;  %v587_v39 = vpop.permute.xlu1 %586  ;;  %v475_v40 = vpop.permute.xlu0 %474  ;;  %v7925_v53 = vld [vmem:[#allocation2 + $0xc8] sm:$0xff]  ;;  %v1211_v63 = vrot.slane %v1142_v57, 2  ;;  %v1207_v5 = vsel %vm1201_vm8, %v1205_v61, %v1206_v62 }
  0xc2   : > { %573 = vst.msk [vmem:[#allocation2 + $0x118] sm:$0x1] %vm372_vm0, %v534_v32  ;;  %634 = vst.msk [vmem:[#allocation2 + $0x119] sm:$0x1] %vm372_vm0, %v534_v32  ;;  %v7927_v54 = vld [vmem:[#allocation2 + $0xe8] sm:$0xff]  ;;  %v1212_v0 = vrot.slane %v1144_v58, 2 }
  0xc3   : > { %653 = vst.msk [vmem:[#allocation2 + $0x138] sm:$0x1] %vm372_vm0, %v534_v32  ;;  %658 = vst.msk [vmem:[#allocation2 + $0x139] sm:$0x1] %vm372_vm0, %v534_v32  ;;  %v683_v60 = vpack.c.bf16 %v7927_v54, %v7925_v53  ;;  %v7211_v2 = vld [vmem:[%s9399_s1 + $0xc8] sm:$0xff]   ;;  %v7939_v3 = vld [vmem:[#allocation2 + $0xc0] sm:$0xff] }
  0xc4   : > { %1089 = vmatpush1.bf16.msra.mxu0 %v7204_v26  ;;  %460 = vst.msk [vmem:[#allocation2 + $0x100] sm:$0x1] %vm378_vm2, %v438_v33  ;;  %645 = vst.msk [vmem:[#allocation2 + $0x120] sm:$0x1] %vm378_vm2, %v438_v33  ;;  %v7941_v4 = vld [vmem:[#allocation2 + $0xe0] sm:$0xff]  ;;  %v1213_v6 = vsel %vm1201_vm8, %v1211_v63, %v1212_v0  ;;  %v7212_v7 = vld [vmem:[%s9399_s1 + $0xd0] sm:$0xff]  }
  0xc5   : > { %1090 = vmatprep.subr.bf16.mxu0 %v7378_v1  ;;  %461 = vst.msk [vmem:[#allocation2 + $0x108] sm:$0x1] %vm372_vm0, %v438_v33  ;;  %646 = vst.msk [vmem:[#allocation2 + $0x128] sm:$0x1] %vm372_vm0, %v438_v33  ;;  %v682_v8 = vpack.c.bf16 %v7941_v4, %v7939_v3  ;;  %v1267_v9 = vpack.c.bf16 %v1213_v6, %v1207_v5  ;;  %v7213_v10 = vld [vmem:[%s9399_s1 + $0xd8] sm:$0xff]   ;;  %v7214_v11 = vld [vmem:[%s9399_s1 + $0xe0] sm:$0xff]  }
  0xc6   : > { %609 = vst.msk [vmem:[#allocation2 + $0x108] sm:$0xfe] %vm402_vm5, %v587_v39  ;;  %654 = vst.msk [vmem:[#allocation2 + $0x128] sm:$0xfe] %vm402_vm5, %v587_v39  ;;  %v1137_v12 = vld [vmem:[#allocation2] sm:$0xfc] }
  0xc7   : > { %610 = vst.msk [vmem:[#allocation2 + $0x118] sm:$0x1] %vm384_vm4, %v587_v39  ;;  %642 = vst.msk [vmem:[#allocation2 + $0x119] sm:$0x1] %vm384_vm4, %v587_v39  ;;  %v1139_v13 = vld [vmem:[#allocation2 + $0x10] sm:$0x3] }
  0xc8   : > { %1091 = vmatpush1.bf16.msra.mxu0 %v7205_v29  ;;  %655 = vst.msk [vmem:[#allocation2 + $0x138] sm:$0x1] %vm384_vm4, %v587_v39  ;;  %659 = vst.msk [vmem:[#allocation2 + $0x139] sm:$0x1] %vm384_vm4, %v587_v39  ;;  %v1141_v14 = vld [vmem:[#allocation2 + $0x20] sm:$0xfc] }
  0xc9   : > { %1367 = vmatprep.subr.bf16.mxu0 %v7378_v1  ;;  %490 = vst.msk [vmem:[#allocation2 + $0x108] sm:$0x1] %vm384_vm4, %v475_v40  ;;  %647 = vst.msk [vmem:[#allocation2 + $0x128] sm:$0x1] %vm384_vm4, %v475_v40  ;;  %v1143_v15 = vld [vmem:[#allocation2 + $0x30] sm:$0x3] }
  0xca   : > { %v1146_v16 = vld [vmem:[#allocation2 + $0x48] sm:$0xfc]  ;;  %v1148_v17 = vld [vmem:[#allocation2 + $0x58] sm:$0x3]  ;;  %v1202_v21 = vrot.slane %v1137_v12, 2  ;;  %v1203_v22 = vrot.slane %v1139_v13, 2 }
  0xcb   : > { %1105 = vmatmul.mubr.bf16.vlgmr.msra.gmra.mrb[0].mxu0 %v676_v37  ;;  %v1150_v19 = vld [vmem:[#allocation2 + $0x68] sm:$0xfc]  ;;  %v1152_v20 = vld [vmem:[#allocation2 + $0x78] sm:$0x3]  ;;  %v1208_v23 = vrot.slane %v1141_v14, 2  ;;  %v1209_v24 = vrot.slane %v1143_v15, 2 }
  0xcc   : > { %6232 = vmatprep.mubr.msk.bf16.mxu0 %vm922_vm7, %v679_v38  ;;  %1368 = vmatpush1.bf16.msra.mxu0 %v7206_v36  ;;  %v1217_v25 = vrot.slane %v1146_v16, 2  ;;  %v1218_v26 = vrot.slane %v1148_v17, 2  ;;  %v1223_v27 = vrot.slane %v1150_v19, 2  ;;  %v1224_v28 = vrot.slane %v1152_v20, 2  ;;  %v7215_v29 = vld [vmem:[%s9399_s1 + $0xe8] sm:$0xff]   ;;  %v7216_v33 = vld [vmem:[%s9399_s1 + $0xf0] sm:$0xff]  }
  0xcd   : > { %1369 = vmatprep.subr.bf16.mxu0 %v7378_v1  ;;  %v1204_v30 = vsel %vm1201_vm8, %v1202_v21, %v1203_v22  ;;  %v1210_v32 = vsel %vm1201_vm8, %v1208_v23, %v1209_v24  ;;  %v1145_v36 = vld [vmem:[#allocation2 + $0x40] sm:$0xfc]  ;;  %v1147_v37 = vld [vmem:[#allocation2 + $0x50] sm:$0x3]  ;;  %v7217_v0 = vld [vmem:[%s9399_s1 + $0xf8] sm:$0xff]  }
  0xce   : > { %v1219_v38 = vsel %vm1201_vm8, %v1217_v25, %v1218_v26  ;;  %v1225_v39 = vsel %vm1201_vm8, %v1223_v27, %v1224_v28  ;;  %v1149_v40 = vld [vmem:[#allocation2 + $0x60] sm:$0xfc]  ;;  %v1214_v55 = vrot.slane %v1145_v36, 2  ;;  %v1215_v57 = vrot.slane %v1147_v37, 2  ;;  %v1159_v12 = vld [vmem:[#allocation2 + $0xb0] sm:$0x3] }
  0xcf   : > { %v1269_v56 = vpack.c.bf16 %v1225_v39, %v1219_v38  ;;  %v1220_v58 = vrot.slane %v1149_v40, 2  ;;  %v7218_v6 = vld [vmem:[%s9399_s1 + $0x100] sm:$0xff]   ;;  %v1162_v13 = vld [vmem:[#allocation2 + $0xc8] sm:$0xfc]  ;;  %v1164_v14 = vld [vmem:[#allocation2 + $0xd8] sm:$0x3] }
  0xd0   : > { %1370 = vmatpush1.bf16.msra.mxu0 %v7207_v41  ;;  %v1151_v41 = vld [vmem:[#allocation2 + $0x70] sm:$0x3]  ;;  %v1166_v15 = vld [vmem:[#allocation2 + $0xe8] sm:$0xfc]  ;;  %v1168_v16 = vld [vmem:[#allocation2 + $0xf8] sm:$0x3] }
  0xd1   : > { %1371 = vmatprep.subr.bf16.mxu0 %v7378_v1  ;;  %v1233_v23 = vrot.slane %v1159_v12, 2  ;;  %v1241_v24 = vrot.slane %v1162_v13, 2  ;;  %v1242_v25 = vrot.slane %v1164_v14, 2  ;;  %v1247_v26 = vrot.slane %v1166_v15, 2  ;;  %v7219_v28 = vld [vmem:[%s9399_s1 + $0x108] sm:$0xff]   ;;  %v7220_v40 = vld [vmem:[%s9399_s1 + $0x110] sm:$0xff]  }
  0xd2   : > { %v1248_v27 = vrot.slane %v1168_v16, 2  ;;  %v1165_v36 = vld [vmem:[#allocation2 + $0xe0] sm:$0xfc]  ;;  %v1167_v39 = vld [vmem:[#allocation2 + $0xf0] sm:$0x3] }
  0xd3   : > { %1113 = vmatmul.mubr.bf16.gmra.mrb[4].mxu0 %v678_v47  ;;  %v1156_v47 = vld [vmem:[#allocation2 + $0x98] sm:$0x3]  ;;  %v1243_v37 = vsel %vm1201_vm8, %v1241_v24, %v1242_v25  ;;  %v8065_v12 = vld [vmem:[#allocation2 + $0x100] sm:$0xff]  ;;  %v7232_v13 = vld [vmem:[%s9399_s1 + $0x170] sm:$0xff]  }
  0xd4   : > { %6233 = vmatprep.mubr.msk.bf16.mxu0 %vm922_vm7, %v681_v48  ;;  %1372 = vmatpush1.bf16.msra.mxu0 %v7208_v46  ;;  %v1154_v46 = vld [vmem:[#allocation2 + $0x88] sm:$0xfc]  ;;  %v1230_v61 = vrot.slane %v1156_v47, 2  ;;  %v1249_v38 = vsel %vm1201_vm8, %v1247_v26, %v1248_v27  ;;  %v1462_v14 = vpack.c.bf16 %v8065_v12, %v7941_v4  ;;  %v1630_v4 = vld [vmem:[#allocation2 + $0x20] sm:$0xfe] }
  0xd5   : > { %1373 = vmatprep.subr.bf16.mxu0 %v7378_v1  ;;  %v1158_v48 = vld [vmem:[#allocation2 + $0xa8] sm:$0xfc]  ;;  %v1641_v24 = vld [vmem:[#allocation2 + $0x78] sm:$0x1]  ;;  %v1694_v27 = vrot.slane %v1630_v4, 1 }
  0xd6   : > { %v1235_v62 = vrot.slane %v1158_v48, 2  ;;  %v1273_v48 = vpack.c.bf16 %v1249_v38, %v1243_v37  ;;  %v1643_v25 = vld [vmem:[#allocation2 + $0x88] sm:$0xfe]  ;;  %v1645_v26 = vld [vmem:[#allocation2 + $0x98] sm:$0x1] }
  0xd7   : > { %v1716_v37 = vrot.slane %v1645_v26, 1  ;;  %v7235_v38 = vld [vmem:[%s9399_s1 + $0x188] sm:$0xff]   ;;  %v1658_v26 = vld [vmem:[#allocation2 + $0x100] sm:$0xfe] }
  0xd8   : > { %1374 = vmatpush1.bf16.msra.mxu0 %v7209_v49  ;;  %v1160_v49 = vld [vmem:[#allocation2 + $0xb8] sm:$0x3] }
  0xd9   : > { %1375 = vmatprep.subr.bf16.mxu0 %v7378_v1  ;;  %v1236_v63 = vrot.slane %v1160_v49, 2  ;;  %v1244_v49 = vrot.slane %v1165_v36, 2  ;;  %v1715_v36 = vrot.slane %v1643_v25, 1 }
  0xdb   : > { %1121 = vmatmul.mubr.bf16.gmra.mrb[8].mxu0 %v680_v59  ;;  %v1221_v59 = vrot.slane %v1151_v41, 2 }
  0xdc   : > { %6234 = vmatprep.mubr.msk.bf16.mxu0 %vm922_vm7, %v683_v60  ;;  %1376 = vmatpush1.bf16.msra.mxu0 %v7210_v52  ;;  %v1266_v52 = vpack.c.bf16 %v1210_v32, %v1204_v30  ;;  %v1229_v60 = vrot.slane %v1154_v46, 2 }
  0xdd   : > { %1377 = vmatprep.subr.bf16.mxu0 %v7378_v1  ;;  %v1222_v5 = vsel %vm1201_vm8, %v1220_v58, %v1221_v59  ;;  %v7222_v58 = vld [vmem:[%s9399_s1 + $0x120] sm:$0xff]  }
  0xe0   : > { %1378 = vmatpush1.bf16.msra.mxu0 %v7211_v2  ;;  %v1216_v2 = vsel %vm1201_vm8, %v1214_v55, %v1215_v57  ;;  %v7221_v55 = vld [vmem:[%s9399_s1 + $0x118] sm:$0xff]  }
  0xe1   : > { %1379 = vmatprep.subr.bf16.mxu0 %v7378_v1  ;;  %v1268_v17 = vpack.c.bf16 %v1222_v5, %v1216_v2  ;;  %v7227_v2 = vld [vmem:[%s9399_s1 + $0x148] sm:$0xff]  }
  0xe2   : > { %v8050_v5 = vld [vmem:[#allocation2 + $0x108] sm:$0xff] }
  0xe3   : > { %1129 = vmatmul.mubr.bf16.gmra.mrb[12].mxu0 %v682_v8  ;;  %v1155_v8 = vld [vmem:[#allocation2 + $0x90] sm:$0x3] }
  0xe4   : > { %1380 = vmatpush1.bf16.msra.mxu0 %v7212_v7  ;;  %6265 = vmatprep.mubr.msk.bf16.mxu0 %vm922_vm7, %v1267_v9  ;;  %v1153_v7 = vld [vmem:[#allocation2 + $0x80] sm:$0xfc]  ;;  %v1231_v9 = vsel %vm1201_vm8, %v1229_v60, %v1230_v61  ;;  %v1227_v21 = vrot.slane %v1155_v8, 2  ;;  %v1457_v60 = vpack.c.bf16 %v7857_v34, %v7823_v18  ;;  %v7223_v61 = vld [vmem:[%s9399_s1 + $0x128] sm:$0xff]   ;;  %v7225_v18 = vld [vmem:[%s9399_s1 + $0x138] sm:$0xff]  }
  0xe5   : > { %1381 = vmatprep.subr.bf16.mxu0 %v7378_v1  ;;  %v1226_v19 = vrot.slane %v1153_v7, 2  ;;  %v7226_v34 = vld [vmem:[%s9399_s1 + $0x140] sm:$0xff]   ;;  %v1631_v7 = vld [vmem:[#allocation2 + $0x28] sm:$0xfe]  ;;  %v1633_v8 = vld [vmem:[#allocation2 + $0x38] sm:$0x1] }
  0xe7   : > { %v1228_v30 = vsel %vm1201_vm8, %v1226_v19, %v1227_v21  ;;  %v7234_v19 = vld [vmem:[%s9399_s1 + $0x180] sm:$0xff]  }
  0xe8   : > { %1382 = vmatpush1.bf16.msra.mxu0 %v7213_v10  ;;  %v1237_v10 = vsel %vm1201_vm8, %v1235_v62, %v1236_v63  ;;  %v7224_v62 = vld [vmem:[%s9399_s1 + $0x130] sm:$0xff]   ;;  %v1456_v63 = vpack.c.bf16 %v7897_v42, %v7855_v31  ;;  %v1458_v42 = vpack.c.bf16 %v7918_v50, %v7899_v43  ;;  %v7230_v43 = vld [vmem:[%s9399_s1 + $0x160] sm:$0xff]   ;;  %v1635_v50 = vld [vmem:[#allocation2 + $0x48] sm:$0xfe] }
  0xe9   : > { %1383 = vmatprep.subr.bf16.mxu0 %v7378_v1  ;;  %v1271_v20 = vpack.c.bf16 %v1237_v10, %v1231_v9  ;;  %v7228_v31 = vld [vmem:[%s9399_s1 + $0x150] sm:$0xff]   ;;  %v1703_v9 = vrot.slane %v1635_v50, 1  ;;  %v1634_v21 = vld [vmem:[#allocation2 + $0x40] sm:$0xfe] }
  0xea   : > { %v1646_v50 = vld [vmem:[#allocation2 + $0xa0] sm:$0xfe] }
  0xec   : > { %1384 = vmatpush1.bf16.msra.mxu0 %v7214_v11  ;;  %v1157_v11 = vld [vmem:[#allocation2 + $0xa0] sm:$0xfc] }
  0xed   : > { %1385 = vmatprep.subr.bf16.mxu0 %v7378_v1  ;;  %v1232_v22 = vrot.slane %v1157_v11, 2  ;;  %v7231_v11 = vld [vmem:[%s9399_s1 + $0x168] sm:$0xff]  }
  0xef   : > { %v1234_v32 = vsel %vm1201_vm8, %v1232_v22, %v1233_v23  ;;  %v1636_v22 = vld [vmem:[#allocation2 + $0x50] sm:$0x1]  ;;  %v1639_v23 = vld [vmem:[#allocation2 + $0x68] sm:$0xfe] }
  0xf0   : > { %1386 = vmatpush1.bf16.msra.mxu0 %v7215_v29  ;;  %v1161_v29 = vld [vmem:[#allocation2 + $0xc0] sm:$0xfc]  ;;  %v1270_v41 = vpack.c.bf16 %v1234_v32, %v1228_v30  ;;  %v1701_v30 = vrot.slane %v1636_v22, 1  ;;  %v1709_v32 = vrot.slane %v1639_v23, 1 }
  0xf1   : > { %1557 = vmatprep.subr.bf16.mxu0 %v7378_v1  ;;  %v1238_v46 = vrot.slane %v1161_v29, 2  ;;  %v1700_v29 = vrot.slane %v1634_v21, 1 }
  0xf3   : > { %1400 = vmatmul.mubr.bf16.vlgmr.msra.gmra.mrb[0].mxu0 %v1266_v52  ;;  %v1245_v52 = vrot.slane %v1167_v39, 2 }
  0xf4   : > { %6266 = vmatprep.mubr.msk.bf16.mxu0 %vm922_vm7, %v1269_v56  ;;  %1558 = vmatpush1.bf16.msra.mxu0 %v7216_v33  ;;  %v1163_v33 = vld [vmem:[#allocation2 + $0xd0] sm:$0x3] }
  0xf5   : > { %1559 = vmatprep.subr.bf16.mxu0 %v7378_v1  ;;  %v1239_v47 = vrot.slane %v1163_v33, 2  ;;  %v1246_v57 = vsel %vm1201_vm8, %v1244_v49, %v1245_v52  ;;  %v1710_v33 = vrot.slane %v1641_v24, 1  ;;  %v1717_v49 = vsel %vm768_vm6, %v1715_v36, %v1716_v37  ;;  %v7236_v52 = vld [vmem:[%s9399_s1 + $0x190] sm:$0xff]   ;;  %v1654_v36 = vld [vmem:[#allocation2 + $0xe0] sm:$0xfe] }
  0xf6   : > { %v1656_v37 = vld [vmem:[#allocation2 + $0xf0] sm:$0x1] }
  0xf7   : > { %v1240_v56 = vsel %vm1201_vm8, %v1238_v46, %v1239_v47  ;;  %v1640_v46 = vld [vmem:[#allocation2 + $0x70] sm:$0x1]  ;;  %v1642_v47 = vld [vmem:[#allocation2 + $0x80] sm:$0xfe] }
  0xf8   : > { %1560 = vmatpush1.bf16.msra.mxu0 %v7217_v0  ;;  %v1272_v59 = vpack.c.bf16 %v1246_v57, %v1240_v56  ;;  %v1459_v0 = vpack.c.bf16 %v7901_v44, %v7859_v35  ;;  %v1461_v35 = vpack.c.bf16 %v7925_v53, %v7903_v45  ;;  %v7229_v44 = vld [vmem:[%s9399_s1 + $0x158] sm:$0xff]   ;;  %v1460_v45 = vpack.c.bf16 %v7939_v3, %v7920_v51  ;;  %v1647_v56 = vld [vmem:[#allocation2 + $0xa8] sm:$0xfe] }
  0xf9   : > { %1561 = vmatprep.subr.bf16.mxu0 %v7378_v1  ;;  %v1463_v53 = vpack.c.bf16 %v8050_v5, %v7927_v54  ;;  %v1697_v51 = vrot.slane %v1631_v7, 1  ;;  %v1698_v3 = vrot.slane %v1633_v8, 1  ;;  %v1649_v57 = vld [vmem:[#allocation2 + $0xb8] sm:$0x1]  ;;  %v1650_v7 = vld [vmem:[#allocation2 + $0xc0] sm:$0xfe] }
  0xfa   : > { %v1652_v8 = vld [vmem:[#allocation2 + $0xd0] sm:$0x1] }
  0xfb   : > { %1408 = vmatmul.mubr.bf16.gmra.mrb[4].mxu0 %v1268_v17  ;;  %v1699_v15 = vsel %vm768_vm6, %v1697_v51, %v1698_v3  ;;  %v7233_v17 = vld [vmem:[%s9399_s1 + $0x178] sm:$0xff]   ;;  %v1718_v3 = vrot.slane %v1646_v50, 1  ;;  %v1945_v50 = vld [vmem:[#allocation2 + $0x88] sm:$0xfc] }
  0xfc   : > { %6267 = vmatprep.mubr.msk.bf16.mxu0 %vm922_vm7, %v1271_v20  ;;  %1562 = vmatpush1.bf16.msra.mxu0 %v7218_v6  ;;  %v1637_v6 = vld [vmem:[#allocation2 + $0x58] sm:$0x1]  ;;  %v1632_v20 = vld [vmem:[#allocation2 + $0x30] sm:$0x1] }
  0xfd   : > { %1563 = vmatprep.subr.bf16.mxu0 %v7378_v1  ;;  %v1704_v10 = vrot.slane %v1637_v6, 1 }
  0xff   : > { %v1705_v54 = vsel %vm768_vm6, %v1703_v9, %v1704_v10  ;;  %v7238_v9 = vld [vmem:[%s9399_s1 + $0x1a0] sm:$0xff]   ;;  %v1659_v10 = vld [vmem:[#allocation2 + $0x108] sm:$0xfe] }
 0x100   : > { %1564 = vmatpush1.bf16.msra.mxu0 %v7219_v28  ;;  %v1759_v16 = vpack.c.bf16 %v1705_v54, %v1699_v15  ;;  %v1695_v28 = vrot.slane %v1632_v20, 1  ;;  %v1655_v54 = vld [vmem:[#allocation2 + $0xe8] sm:$0xfe]  ;;  %v1724_v15 = vrot.slane %v1650_v7, 1 }
 0x101   : > { %1565 = vmatprep.subr.bf16.mxu0 %v7378_v1  ;;  %v7239_v20 = vld [vmem:[%s9399_s1 + $0x1a8] sm:$0xff]   ;;  %v1733_v21 = vrot.slane %v1655_v54, 1 }
 0x102   : > { %v1696_v39 = vsel %vm768_vm6, %v1694_v27, %v1695_v28  ;;  %v1660_v27 = vld [vmem:[#allocation2 + $0x110] sm:$0x1] }
 0x103   : > { %1416 = vmatmul.mubr.bf16.gmra.mrb[8].mxu0 %v1270_v41  ;;  %v1638_v41 = vld [vmem:[#allocation2 + $0x60] sm:$0xfe]  ;;  %v7240_v28 = vld [vmem:[%s9399_s1 + $0x1b0] sm:$0xff]  }
 0x104   : > { %6268 = vmatprep.mubr.msk.bf16.mxu0 %vm922_vm7, %v1273_v48  ;;  %1566 = vmatpush1.bf16.msra.mxu0 %v7220_v40  ;;  %v1702_v40 = vsel %vm768_vm6, %v1700_v29, %v1701_v30  ;;  %v1711_v48 = vsel %vm768_vm6, %v1709_v32, %v1710_v33  ;;  %v1937_v29 = vld [vmem:[#allocation2 + $0x48] sm:$0xfc]  ;;  %v1939_v30 = vld [vmem:[#allocation2 + $0x58] sm:$0x3] }
 0x105   : > { %1567 = vmatprep.subr.bf16.mxu0 %v7378_v1 }
 0x108   : > { %1568 = vmatpush1.bf16.msra.mxu0 %v7221_v55  ;;  %v1644_v55 = vld [vmem:[#allocation2 + $0x90] sm:$0x1] }
 0x109   : > { %1569 = vmatprep.subr.bf16.mxu0 %v7378_v1 }
 0x10b   : > { %1424 = vmatmul.mubr.bf16.gmra.mrb[12].mxu0 %v1272_v59  ;;  %v1653_v59 = vld [vmem:[#allocation2 + $0xd8] sm:$0x1] }
 0x10c   : > { %1570 = vmatpush1.bf16.msra.mxu0 %v7222_v58  ;;  %6299 = vmatprep.mubr.msk.bf16.mxu0 %vm922_vm7, %v1457_v60  ;;  %v1651_v58 = vld [vmem:[#allocation2 + $0xc8] sm:$0xfe]  ;;  %v1758_v60 = vpack.c.bf16 %v1702_v40, %v1696_v39  ;;  %v1736_v39 = vrot.slane %v1658_v26, 1  ;;  %v1737_v40 = vrot.slane %v1660_v27, 1 }
 0x10d   : > { %1571 = vmatprep.subr.bf16.mxu0 %v7378_v1 }
 0x110   : > { %1572 = vmatpush1.bf16.msra.mxu0 %v7223_v61  ;;  %v1706_v61 = vrot.slane %v1638_v41, 1  ;;  %v1933_v41 = vld [vmem:[#allocation2 + $0x28] sm:$0xfc] }
 0x111   : > { %1573 = vmatprep.subr.bf16.mxu0 %v7378_v1 }
 0x114   : > { %1574 = vmatpush1.bf16.msra.mxu0 %v7224_v62  ;;  %v1761_v62 = vpack.c.bf16 %v1717_v49, %v1711_v48  ;;  %v2006_v48 = vrot.slane %v1939_v30, 2  ;;  %v7241_v49 = vld [vmem:[%s9399_s1 + $0x1b8] sm:$0xff]  }
 0x115   : > { %1575 = vmatprep.subr.bf16.mxu0 %v7378_v1 }
 0x118   : > { %1576 = vmatpush1.bf16.msra.mxu0 %v7225_v18  ;;  %v1707_v18 = vrot.slane %v1640_v46, 1  ;;  %v1935_v46 = vld [vmem:[#allocation2 + $0x38] sm:$0x3] }
 0x119   : > { %1859 = vmatprep.subr.bf16.mxu0 %v7378_v1 }
 0x11b   : > { %1590 = vmatmul.mubr.bf16.vlgmr.msra.gmra.mrb[0].mxu0 %v1456_v63  ;;  %v1713_v63 = vrot.slane %v1644_v55, 1  ;;  %v1731_v55 = vrot.slane %v1656_v37, 1 }
 0x11c   : > { %6300 = vmatprep.mubr.msk.bf16.mxu0 %vm922_vm7, %v1459_v0  ;;  %1860 = vmatpush1.bf16.msra.mxu0 %v7226_v34  ;;  %v1712_v34 = vrot.slane %v1642_v47, 1  ;;  %v1721_v0 = vrot.slane %v1647_v56, 1  ;;  %v2005_v47 = vrot.slane %v1937_v29, 2  ;;  %v1999_v56 = vrot.slane %v1933_v41, 2  ;;  %v1948_v41 = vld [vmem:[#allocation2 + $0xa0] sm:$0xfc] }
 0x11d   : > { %1861 = vmatprep.subr.bf16.mxu0 %v7378_v1 }
 0x120   : > { %1862 = vmatpush1.bf16.msra.mxu0 %v7227_v2  ;;  %v1722_v2 = vrot.slane %v1649_v57, 1  ;;  %v2000_v57 = vrot.slane %v1935_v46, 2 }
 0x121   : > { %1863 = vmatprep.subr.bf16.mxu0 %v7378_v1 }
 0x122   : > { %v1723_v6 = vsel %vm768_vm6, %v1721_v0, %v1722_v2  ;;  %v1932_v0 = vld [vmem:[#allocation2 + $0x20] sm:$0xfc]  ;;  %v1934_v2 = vld [vmem:[#allocation2 + $0x30] sm:$0x3] }
 0x123   : > { %1598 = vmatmul.mubr.bf16.gmra.mrb[4].mxu0 %v1458_v42  ;;  %v1728_v42 = vrot.slane %v1653_v59, 1  ;;  %v2007_v59 = vsel %vm1201_vm8, %v2005_v47, %v2006_v48  ;;  %v1950_v48 = vld [vmem:[#allocation2 + $0xb0] sm:$0x3] }
 0x124   : > { %6301 = vmatprep.mubr.msk.bf16.mxu0 %vm922_vm7, %v1461_v35  ;;  %1864 = vmatpush1.bf16.msra.mxu0 %v7228_v31  ;;  %v1727_v31 = vrot.slane %v1651_v58, 1  ;;  %v7237_v35 = vld [vmem:[%s9399_s1 + $0x198] sm:$0xff]   ;;  %v1738_v58 = vsel %vm768_vm6, %v1736_v39, %v1737_v40 }
 0x125   : > { %1865 = vmatprep.subr.bf16.mxu0 %v7378_v1 }
 0x128   : > { %1866 = vmatpush1.bf16.msra.mxu0 %v7229_v44  ;;  %v1708_v44 = vsel %vm768_vm6, %v1706_v61, %v1707_v18  ;;  %v7242_v61 = vld [vmem:[%s9399_s1 + $0x1c0] sm:$0xff]   ;;  %v2001_v18 = vsel %vm1201_vm8, %v1999_v56, %v2000_v57  ;;  %v1961_v56 = vld [vmem:[#allocation2 + $0x108] sm:$0xfc]  ;;  %v1963_v57 = vld [vmem:[#allocation2 + $0x118] sm:$0x3] }
 0x129   : > { %1867 = vmatprep.subr.bf16.mxu0 %v7378_v1 }
 0x12b   : > { %1606 = vmatmul.mubr.bf16.gmra.mrb[8].mxu0 %v1460_v45  ;;  %v1729_v45 = vsel %vm768_vm6, %v1727_v31, %v1728_v42  ;;  %v1936_v31 = vld [vmem:[#allocation2 + $0x40] sm:$0xfc]  ;;  %v1938_v42 = vld [vmem:[#allocation2 + $0x50] sm:$0x3] }
 0x12c   : > { %6302 = vmatprep.mubr.msk.bf16.mxu0 %vm922_vm7, %v1463_v53  ;;  %1868 = vmatpush1.bf16.msra.mxu0 %v7230_v43  ;;  %v1714_v43 = vsel %vm768_vm6, %v1712_v34, %v1713_v63  ;;  %v1648_v53 = vld [vmem:[#allocation2 + $0xb0] sm:$0x1]  ;;  %v2061_v34 = vpack.c.bf16 %v2007_v59, %v2001_v18  ;;  %v7243_v63 = vld [vmem:[%s9399_s1 + $0x1c8] sm:$0xff]   ;;  %v2002_v7 = vrot.slane %v1936_v31, 2  ;;  %v2020_v59 = vrot.slane %v1948_v41, 2  ;;  %v7249_v31 = vld [vmem:[%s9399_s1 + $0x1f8] sm:$0xff]  }
 0x12d   : > { %1869 = vmatprep.subr.bf16.mxu0 %v7378_v1  ;;  %v1760_v51 = vpack.c.bf16 %v1714_v43, %v1708_v44  ;;  %v1943_v44 = vld [vmem:[#allocation2 + $0x78] sm:$0x3]  ;;  %v7244_v43 = vld [vmem:[%s9399_s1 + $0x1d0] sm:$0xff]  }
 0x130   : > { %1870 = vmatpush1.bf16.msra.mxu0 %v7231_v11  ;;  %v1661_v11 = vld [vmem:[#allocation2 + $0x118] sm:$0x1] }
 0x131   : > { %1871 = vmatprep.subr.bf16.mxu0 %v7378_v1  ;;  %v1740_v4 = vrot.slane %v1661_v11, 1  ;;  %v2017_v11 = vrot.slane %v1945_v50, 2 }
 0x133   : > { %1614 = vmatmul.mubr.bf16.gmra.mrb[12].mxu0 %v1462_v14  ;;  %v1719_v14 = vrot.slane %v1648_v53, 1  ;;  %v1997_v53 = vrot.slane %v1934_v2, 2  ;;  %v2042_v2 = vrot.slane %v1963_v57, 2  ;;  %v7260_v57 = vld [vmem:[%s9399_s1 + $0x250] sm:$0xff]  }
 0x134   : > { %1872 = vmatpush1.bf16.msra.mxu0 %v7232_v13  ;;  %6333 = vmatprep.mubr.msk.bf16.mxu0 %vm922_vm7, %v1759_v16  ;;  %v1763_v13 = vpack.c.bf16 %v1729_v45, %v1723_v6  ;;  %v1725_v16 = vrot.slane %v1652_v8, 1  ;;  %v1947_v6 = vld [vmem:[#allocation2 + $0x98] sm:$0x3]  ;;  %v1996_v45 = vrot.slane %v1932_v0, 2  ;;  %v2003_v8 = vrot.slane %v1938_v42, 2 }
 0x135   : > { %1873 = vmatprep.subr.bf16.mxu0 %v7378_v1  ;;  %v1720_v23 = vsel %vm768_vm6, %v1718_v3, %v1719_v14  ;;  %v7245_v3 = vld [vmem:[%s9399_s1 + $0x1d8] sm:$0xff]   ;;  %v1940_v14 = vld [vmem:[#allocation2 + $0x60] sm:$0xfc]  ;;  %v2041_v0 = vrot.slane %v1961_v56, 2 }
 0x136   : > { %v1726_v24 = vsel %vm768_vm6, %v1724_v15, %v1725_v16  ;;  %v1998_v54 = vsel %vm1201_vm8, %v1996_v45, %v1997_v53  ;;  %v1942_v15 = vld [vmem:[#allocation2 + $0x70] sm:$0x3]  ;;  %v1944_v16 = vld [vmem:[#allocation2 + $0x80] sm:$0xfc]  ;;  %v2008_v26 = vrot.slane %v1940_v14, 2 }
 0x137   : > { %v1762_v32 = vpack.c.bf16 %v1726_v24, %v1720_v23  ;;  %v1953_v23 = vld [vmem:[#allocation2 + $0xc8] sm:$0xfc]  ;;  %v1955_v24 = vld [vmem:[#allocation2 + $0xd8] sm:$0x3]  ;;  %v2014_v29 = vrot.slane %v1944_v16, 2  ;;  %v2043_v50 = vsel %vm1201_vm8, %v2041_v0, %v2042_v2  ;;  %v7250_v53 = vld [vmem:[%s9399_s1 + $0x200] sm:$0xff]  }
 0x138   : > { %1874 = vmatpush1.bf16.msra.mxu0 %v7233_v17  ;;  %v1657_v17 = vld [vmem:[#allocation2 + $0xf8] sm:$0x1]  ;;  %v2030_v37 = vrot.slane %v1955_v24, 2  ;;  %v1962_v45 = vld [vmem:[#allocation2 + $0x110] sm:$0x3]  ;;  %v2236_v16 = vld [vmem:[#allocation2 + $0x48] sm:$0xff] }
 0x139   : > { %1875 = vmatprep.subr.bf16.mxu0 %v7378_v1  ;;  %v1734_v22 = vrot.slane %v1657_v17, 1  ;;  %v7255_v24 = vld [vmem:[%s9399_s1 + $0x228] sm:$0xff]   ;;  %v2428_v56 = vld [vmem:[#allocation2 + $0x58] sm:$0x1]  ;;  %v2249_v2 = vld [vmem:[#allocation2 + $0x120] sm:$0xff] }
 0x13a   : > { %v7261_v0 = vld [vmem:[%s9399_s1 + $0x258] sm:$0xff]  }
 0x13b   : > { %v1735_v33 = vsel %vm768_vm6, %v1733_v21, %v1734_v22  ;;  %v1951_v21 = vld [vmem:[#allocation2 + $0xb8] sm:$0x3]  ;;  %v7246_v22 = vld [vmem:[%s9399_s1 + $0x1e0] sm:$0xff]  }
 0x13c   : > { %1876 = vmatpush1.bf16.msra.mxu0 %v7234_v19  ;;  %v1739_v19 = vrot.slane %v1659_v10, 1  ;;  %v2012_v10 = vrot.slane %v1943_v44, 2 }
 0x13d   : > { %1877 = vmatprep.subr.bf16.mxu0 %v7378_v1 }
 0x13e   : > { %v1741_v25 = vsel %vm768_vm6, %v1739_v19, %v1740_v4  ;;  %v1946_v4 = vld [vmem:[#allocation2 + $0x90] sm:$0x3] }
 0x13f   : > { %v2015_v30 = vrot.slane %v1946_v4, 2  ;;  %v7252_v4 = vld [vmem:[%s9399_s1 + $0x210] sm:$0xff]  }
 0x140   : > { %1878 = vmatpush1.bf16.msra.mxu0 %v7235_v38  ;;  %v1765_v38 = vpack.c.bf16 %v1741_v25, %v1735_v33  ;;  %v2024_v33 = vrot.slane %v1951_v21, 2 }
 0x141   : > { %2161 = vmatprep.subr.bf16.mxu0 %v7378_v1  ;;  %v2016_v40 = vsel %vm1201_vm8, %v2014_v29, %v2015_v30  ;;  %v7256_v29 = vld [vmem:[%s9399_s1 + $0x230] sm:$0xff]  }
 0x143   : > { %1892 = vmatmul.mubr.bf16.vlgmr.msra.gmra.mrb[0].mxu0 %v1758_v60 }
 0x144   : > { %6334 = vmatprep.mubr.msk.bf16.mxu0 %vm922_vm7, %v1761_v62  ;;  %2162 = vmatpush1.bf16.msra.mxu0 %v7236_v52  ;;  %v1730_v52 = vrot.slane %v1654_v36, 1  ;;  %v2029_v36 = vrot.slane %v1953_v23, 2  ;;  %v7254_v23 = vld [vmem:[%s9399_s1 + $0x220] sm:$0xff]  }
 0x145   : > { %2163 = vmatprep.subr.bf16.mxu0 %v7378_v1 }
 0x146   : > { %v1732_v60 = vsel %vm768_vm6, %v1730_v52, %v1731_v55  ;;  %v2031_v47 = vsel %vm1201_vm8, %v2029_v36, %v2030_v37  ;;  %v1954_v52 = vld [vmem:[#allocation2 + $0xd0] sm:$0x3]  ;;  %v2239_v36 = vld [vmem:[#allocation2 + $0x80] sm:$0xff] }
 0x147   : > { %v1764_v62 = vpack.c.bf16 %v1738_v58, %v1732_v60  ;;  %v7248_v55 = vld [vmem:[%s9399_s1 + $0x1f0] sm:$0xff]   ;;  %v1957_v60 = vld [vmem:[#allocation2 + $0xe8] sm:$0xfc]  ;;  %v2241_v37 = vld [vmem:[#allocation2 + $0xa0] sm:$0xff] }
 0x148   : > { %2164 = vmatpush1.bf16.msra.mxu0 %v7237_v35  ;;  %v1941_v35 = vld [vmem:[#allocation2 + $0x68] sm:$0xfc]  ;;  %v2035_v42 = vrot.slane %v1957_v60, 2  ;;  %v2253_v41 = vpack.c.bf16 %v2241_v37, %v2239_v36 }
 0x149   : > { %2165 = vmatprep.subr.bf16.mxu0 %v7378_v1 }
 0x14b   : > { %1900 = vmatmul.mubr.bf16.gmra.mrb[4].mxu0 %v1760_v51  ;;  %v2018_v51 = vrot.slane %v1947_v6, 2  ;;  %v1960_v6 = vld [vmem:[#allocation2 + $0x100] sm:$0xfc] }
 0x14c   : > { %6335 = vmatprep.mubr.msk.bf16.mxu0 %vm922_vm7, %v1763_v13  ;;  %2166 = vmatpush1.bf16.msra.mxu0 %v7238_v9  ;;  %v2011_v9 = vrot.slane %v1941_v35, 2  ;;  %v2004_v13 = vsel %vm1201_vm8, %v2002_v7, %v2003_v8 }
 0x14d   : > { %2167 = vmatprep.subr.bf16.mxu0 %v7378_v1  ;;  %v2019_v19 = vsel %vm1201_vm8, %v2017_v11, %v2018_v51  ;;  %v2060_v25 = vpack.c.bf16 %v2004_v13, %v1998_v54  ;;  %v2038_v51 = vrot.slane %v1960_v6, 2  ;;  %v7251_v54 = vld [vmem:[%s9399_s1 + $0x208] sm:$0xff]   ;;  %v2427_v6 = vld [vmem:[#allocation2 + $0x50] sm:$0x1] }
 0x14e   : > { %v2013_v17 = vsel %vm1201_vm8, %v2011_v9, %v2012_v10  ;;  %v1956_v9 = vld [vmem:[#allocation2 + $0xe0] sm:$0xfc]  ;;  %v1958_v10 = vld [vmem:[#allocation2 + $0xf0] sm:$0x3] }
 0x14f   : > { %v2063_v27 = vpack.c.bf16 %v2019_v19, %v2013_v17  ;;  %v2032_v13 = vrot.slane %v1956_v9, 2  ;;  %v2033_v14 = vrot.slane %v1958_v10, 2  ;;  %v2238_v17 = vld [vmem:[#allocation2 + $0x68] sm:$0xff]  ;;  %v2440_v10 = vld [vmem:[#allocation2 + $0xb8] sm:$0x1] }
 0x150   : > { %2168 = vmatpush1.bf16.msra.mxu0 %v7239_v20  ;;  %v1949_v20 = vld [vmem:[#allocation2 + $0xa8] sm:$0xfc]  ;;  %v2252_v21 = vpack.c.bf16 %v2238_v17, %v2236_v16  ;;  %v2511_v16 = vrot.slane %v2440_v10, 1  ;;  %v7265_v17 = vld [vmem:[%s9399_s1 + $0x278] sm:$0xff]  }
 0x151   : > { %2169 = vmatprep.subr.bf16.mxu0 %v7378_v1  ;;  %v2034_v19 = vsel %vm1201_vm8, %v2032_v13, %v2033_v14  ;;  %v2438_v9 = vld [vmem:[#allocation2 + $0xa8] sm:$0xfe] }
 0x153   : > { %1908 = vmatmul.mubr.bf16.gmra.mrb[8].mxu0 %v1762_v32  ;;  %v2023_v32 = vrot.slane %v1949_v20, 2 }
 0x154   : > { %6336 = vmatprep.mubr.msk.bf16.mxu0 %vm922_vm7, %v1765_v38  ;;  %2170 = vmatpush1.bf16.msra.mxu0 %v7240_v28  ;;  %v2009_v28 = vrot.slane %v1942_v15, 2  ;;  %v7247_v38 = vld [vmem:[%s9399_s1 + $0x1e8] sm:$0xff]  }
 0x155   : > { %2171 = vmatprep.subr.bf16.mxu0 %v7378_v1  ;;  %v2025_v46 = vsel %vm1201_vm8, %v2023_v32, %v2024_v33  ;;  %v7257_v33 = vld [vmem:[%s9399_s1 + $0x238] sm:$0xff]  }
 0x156   : > { %v2010_v39 = vsel %vm1201_vm8, %v2008_v26, %v2009_v28  ;;  %v2237_v26 = vld [vmem:[#allocation2 + $0x60] sm:$0xff]  ;;  %v2242_v28 = vld [vmem:[#allocation2 + $0xa8] sm:$0xff] }
 0x157   : > { %v2062_v58 = vpack.c.bf16 %v2016_v40, %v2010_v39  ;;  %v2246_v39 = vld [vmem:[#allocation2 + $0xe8] sm:$0xff]  ;;  %v7258_v40 = vld [vmem:[%s9399_s1 + $0x240] sm:$0xff]  }
 0x158   : > { %2172 = vmatpush1.bf16.msra.mxu0 %v7241_v49  ;;  %v1952_v49 = vld [vmem:[#allocation2 + $0xc0] sm:$0xfc] }
 0x159   : > { %2173 = vmatprep.subr.bf16.mxu0 %v7378_v1  ;;  %v2026_v18 = vrot.slane %v1952_v49, 2  ;;  %v2245_v49 = vld [vmem:[#allocation2 + $0xe0] sm:$0xff] }
 0x15b   : > { %1916 = vmatmul.mubr.bf16.gmra.mrb[12].mxu0 %v1764_v62  ;;  %v2021_v62 = vrot.slane %v1950_v48, 2  ;;  %v2243_v48 = vld [vmem:[#allocation2 + $0xc0] sm:$0xff] }
 0x15c   : > { %2174 = vmatpush1.bf16.msra.mxu0 %v7242_v61  ;;  %6367 = vmatprep.mubr.msk.bf16.mxu0 %vm922_vm7, %v2061_v34  ;;  %v2065_v61 = vpack.c.bf16 %v2031_v47, %v2025_v46  ;;  %v2027_v34 = vrot.slane %v1954_v52, 2  ;;  %v7259_v47 = vld [vmem:[%s9399_s1 + $0x248] sm:$0xff]   ;;  %v2255_v60 = vpack.c.bf16 %v2245_v49, %v2243_v48 }
 0x15d   : > { %2175 = vmatprep.subr.bf16.mxu0 %v7378_v1  ;;  %v2022_v44 = vsel %vm1201_vm8, %v2020_v59, %v2021_v62  ;;  %v2250_v52 = vld [vmem:[#allocation2 + $0x128] sm:$0xff]  ;;  %v2432_v59 = vld [vmem:[#allocation2 + $0x78] sm:$0x1] }
 0x15e   : > { %v7267_v48 = vld [vmem:[%s9399_s1 + $0x288] sm:$0xff]  }
 0x160   : > { %2176 = vmatpush1.bf16.msra.mxu0 %v7243_v63  ;;  %v1959_v63 = vld [vmem:[#allocation2 + $0xf8] sm:$0x3] }
 0x161   : > { %2177 = vmatprep.subr.bf16.mxu0 %v7378_v1  ;;  %v2036_v35 = vrot.slane %v1959_v63, 2  ;;  %v2499_v63 = vrot.slane %v2432_v59, 1 }
 0x163   : > { %v2037_v8 = vsel %vm1201_vm8, %v2035_v42, %v2036_v35  ;;  %v2257_v35 = vpack.c.bf16 %v2249_v2, %v8065_v12  ;;  %v7264_v12 = vld [vmem:[%s9399_s1 + $0x270] sm:$0xff]  }
 0x164   : > { %2178 = vmatpush1.bf16.msra.mxu0 %v7244_v43  ;;  %v2028_v43 = vsel %vm1201_vm8, %v2026_v18, %v2027_v34  ;;  %v2067_v11 = vpack.c.bf16 %v2043_v50, %v2037_v8  ;;  %v2493_v18 = vrot.slane %v2428_v56, 1  ;;  %v2425_v50 = vld [vmem:[#allocation2 + $0x40] sm:$0xfe]  ;;  %v2436_v8 = vld [vmem:[#allocation2 + $0x98] sm:$0x1] }
 0x165   : > { %2179 = vmatprep.subr.bf16.mxu0 %v7378_v1  ;;  %v2064_v7 = vpack.c.bf16 %v2028_v43, %v2022_v44  ;;  %v7263_v43 = vld [vmem:[%s9399_s1 + $0x268] sm:$0xff]   ;;  %v2505_v14 = vrot.slane %v2436_v8, 1  ;;  %v2443_v56 = vld [vmem:[#allocation2 + $0xd0] sm:$0x1]  ;;  %v2449_v8 = vld [vmem:[#allocation2 + $0x100] sm:$0xfe] }
 0x168   : > { %2180 = vmatpush1.bf16.msra.mxu0 %v7245_v3  ;;  %v2039_v3 = vrot.slane %v1962_v45, 2  ;;  %v2429_v45 = vld [vmem:[#allocation2 + $0x60] sm:$0xfe] }
 0x169   : > { %2352 = vmatprep.subr.bf16.mxu0 %v7378_v1 }
 0x16a   : > { %v2040_v15 = vsel %vm1201_vm8, %v2038_v51, %v2039_v3  ;;  %v2490_v51 = vrot.slane %v2427_v6, 1  ;;  %v2495_v3 = vrot.slane %v2429_v45, 1  ;;  %v7269_v45 = vld [vmem:[%s9399_s1 + $0x298] sm:$0xff]  }
 0x16b   : > { %2194 = vmatmul.mubr.bf16.vlgmr.msra.gmra.mrb[0].mxu0 %v2060_v25  ;;  %v2066_v20 = vpack.c.bf16 %v2040_v15, %v2034_v19  ;;  %v2235_v25 = vld [vmem:[#allocation2 + $0x40] sm:$0xff]  ;;  %v2510_v15 = vrot.slane %v2438_v9, 1  ;;  %v2730_v9 = vld [vmem:[#allocation2 + $0x58] sm:$0x3] }
 0x16c   : > { %6368 = vmatprep.mubr.msk.bf16.mxu0 %vm922_vm7, %v2063_v27  ;;  %2353 = vmatpush1.bf16.msra.mxu0 %v7246_v22  ;;  %v7253_v22 = vld [vmem:[%s9399_s1 + $0x218] sm:$0xff]   ;;  %v2240_v27 = vld [vmem:[#allocation2 + $0x88] sm:$0xff]  ;;  %v2251_v30 = vpack.c.bf16 %v2237_v26, %v2235_v25  ;;  %v2439_v25 = vld [vmem:[#allocation2 + $0xb0] sm:$0x1] }
 0x16d   : > { %2354 = vmatprep.subr.bf16.mxu0 %v7378_v1  ;;  %v2254_v32 = vpack.c.bf16 %v2242_v28, %v2240_v27  ;;  %v2442_v26 = vld [vmem:[#allocation2 + $0xc8] sm:$0xfe]  ;;  %v2444_v27 = vld [vmem:[#allocation2 + $0xd8] sm:$0x1]  ;;  %v7266_v28 = vld [vmem:[%s9399_s1 + $0x280] sm:$0xff]  }
 0x170   : > { %2355 = vmatpush1.bf16.msra.mxu0 %v7247_v38  ;;  %v2244_v38 = vld [vmem:[#allocation2 + $0xc8] sm:$0xff] }
 0x171   : > { %2356 = vmatprep.subr.bf16.mxu0 %v7378_v1  ;;  %v2256_v46 = vpack.c.bf16 %v2246_v39, %v2244_v38  ;;  %v2508_v39 = vrot.slane %v2439_v25, 1 }
 0x173   : > { %2202 = vmatmul.mubr.bf16.gmra.mrb[4].mxu0 %v2062_v58  ;;  %v2430_v58 = vld [vmem:[#allocation2 + $0x68] sm:$0xfe] }
 0x174   : > { %6369 = vmatprep.mubr.msk.bf16.mxu0 %vm922_vm7, %v2065_v61  ;;  %2357 = vmatpush1.bf16.msra.mxu0 %v7248_v55  ;;  %v2426_v55 = vld [vmem:[#allocation2 + $0x48] sm:$0xfe]  ;;  %v2258_v61 = vpack.c.bf16 %v2250_v52, %v8050_v5  ;;  %v2498_v34 = vrot.slane %v2430_v58, 1  ;;  %v7262_v5 = vld [vmem:[%s9399_s1 + $0x260] sm:$0xff]  }
 0x175   : > { %2358 = vmatprep.subr.bf16.mxu0 %v7378_v1  ;;  %v2492_v62 = vrot.slane %v2426_v55, 1  ;;  %v2441_v55 = vld [vmem:[#allocation2 + $0xc0] sm:$0xfe] }
 0x176   : > { %v2500_v42 = vsel %vm768_vm6, %v2498_v34, %v2499_v63  ;;  %v2454_v34 = vld [vmem:[#allocation2 + $0x128] sm:$0xfe]  ;;  %v2456_v63 = vld [vmem:[#allocation2 + $0x138] sm:$0x1]  ;;  %v2513_v2 = vrot.slane %v2441_v55, 1 }
 0x177   : > { %v2535_v6 = vrot.slane %v2456_v63, 1 }
 0x178   : > { %2359 = vmatpush1.bf16.msra.mxu0 %v7249_v31  ;;  %v2494_v31 = vsel %vm768_vm6, %v2492_v62, %v2493_v18  ;;  %v2452_v62 = vld [vmem:[#allocation2 + $0x118] sm:$0x1]  ;;  %v7268_v18 = vld [vmem:[%s9399_s1 + $0x290] sm:$0xff]  }
 0x179   : > { %2360 = vmatprep.subr.bf16.mxu0 %v7378_v1  ;;  %v2554_v44 = vpack.c.bf16 %v2500_v42, %v2494_v31  ;;  %v2514_v42 = vrot.slane %v2443_v56, 1 }
 0x17b   : > { %2210 = vmatmul.mubr.bf16.gmra.mrb[8].mxu0 %v2064_v7  ;;  %v2434_v7 = vld [vmem:[#allocation2 + $0x88] sm:$0xfe] }
 0x17c   : > { %6370 = vmatprep.mubr.msk.bf16.mxu0 %vm922_vm7, %v2067_v11  ;;  %2361 = vmatpush1.bf16.msra.mxu0 %v7250_v53  ;;  %v2431_v53 = vld [vmem:[#allocation2 + $0x70] sm:$0x1]  ;;  %v2489_v11 = vrot.slane %v2425_v50, 1  ;;  %v2504_v13 = vrot.slane %v2434_v7, 1  ;;  %v2534_v50 = vrot.slane %v2454_v34, 1 }
 0x17d   : > { %2362 = vmatprep.subr.bf16.mxu0 %v7378_v1 }
 0x17e   : > { %v2491_v19 = vsel %vm768_vm6, %v2489_v11, %v2490_v51  ;;  %v2536_v11 = vsel %vm768_vm6, %v2534_v50, %v2535_v6  ;;  %v2451_v51 = vld [vmem:[#allocation2 + $0x110] sm:$0x1]  ;;  %v2748_v50 = vld [vmem:[#allocation2 + $0xe8] sm:$0xfc]  ;;  %v2750_v6 = vld [vmem:[#allocation2 + $0xf8] sm:$0x3] }
 0x180   : > { %2363 = vmatpush1.bf16.msra.mxu0 %v7251_v54  ;;  %v2496_v54 = vrot.slane %v2431_v53, 1  ;;  %v2515_v53 = vsel %vm768_vm6, %v2513_v2, %v2514_v42  ;;  %v2737_v2 = vld [vmem:[#allocation2 + $0x90] sm:$0x3] }
 0x181   : > { %2364 = vmatprep.subr.bf16.mxu0 %v7378_v1 }
 0x183   : > { %2218 = vmatmul.mubr.bf16.gmra.mrb[12].mxu0 %v2066_v20  ;;  %v2433_v20 = vld [vmem:[#allocation2 + $0x80] sm:$0xfe] }
 0x184   : > { %2365 = vmatpush1.bf16.msra.mxu0 %v7252_v4  ;;  %6401 = vmatprep.mubr.msk.bf16.mxu0 %vm922_vm7, %v2252_v21  ;;  %v2497_v4 = vsel %vm768_vm6, %v2495_v3, %v2496_v54  ;;  %v2435_v21 = vld [vmem:[#allocation2 + $0x90] sm:$0x1]  ;;  %v2453_v3 = vld [vmem:[#allocation2 + $0x120] sm:$0xfe] }
 0x185   : > { %2366 = vmatprep.subr.bf16.mxu0 %v7378_v1  ;;  %v2502_v37 = vrot.slane %v2435_v21, 1  ;;  %v2455_v54 = vld [vmem:[#allocation2 + $0x130] sm:$0x1] }
 0x186   : > { %v2532_v21 = vrot.slane %v2455_v54, 1 }
 0x188   : > { %2367 = vmatpush1.bf16.msra.mxu0 %v7253_v22  ;;  %v2437_v22 = vld [vmem:[#allocation2 + $0xa0] sm:$0xfe] }
 0x189   : > { %2368 = vmatprep.subr.bf16.mxu0 %v7378_v1  ;;  %v2507_v38 = vrot.slane %v2437_v22, 1 }
 0x18b   : > { %v2509_v52 = vsel %vm768_vm6, %v2507_v38, %v2508_v39  ;;  %v2727_v38 = vld [vmem:[#allocation2 + $0x40] sm:$0xfc]  ;;  %v2729_v39 = vld [vmem:[#allocation2 + $0x50] sm:$0x3] }
 0x18c   : > { %2369 = vmatpush1.bf16.msra.mxu0 %v7254_v23  ;;  %v2506_v23 = vsel %vm768_vm6, %v2504_v13, %v2505_v14  ;;  %v7270_v13 = vld [vmem:[%s9399_s1 + $0x2a0] sm:$0xff]   ;;  %v2732_v14 = vld [vmem:[#allocation2 + $0x68] sm:$0xfc]  ;;  %v2791_v55 = vrot.slane %v2727_v38, 2  ;;  %v2792_v56 = vrot.slane %v2729_v39, 2 }
 0x18d   : > { %2370 = vmatprep.subr.bf16.mxu0 %v7378_v1  ;;  %v2751_v39 = vld [vmem:[#allocation2 + $0x100] sm:$0xfc] }
 0x18e   : > { %v2793_v34 = vsel %vm1201_vm8, %v2791_v55, %v2792_v56 }
 0x190   : > { %2371 = vmatpush1.bf16.msra.mxu0 %v7255_v24  ;;  %v2512_v24 = vsel %vm768_vm6, %v2510_v15, %v2511_v16  ;;  %v2734_v15 = vld [vmem:[#allocation2 + $0x78] sm:$0x3] }
 0x191   : > { %2654 = vmatprep.subr.bf16.mxu0 %v7378_v1  ;;  %v2556_v36 = vpack.c.bf16 %v2512_v24, %v2506_v23  ;;  %v2795_v23 = vrot.slane %v2730_v9, 2  ;;  %v2800_v24 = vrot.slane %v2732_v14, 2  ;;  %v2801_v25 = vrot.slane %v2734_v15, 2  ;;  %v2743_v14 = vld [vmem:[#allocation2 + $0xc0] sm:$0xfc] }
 0x192   : > { %v2745_v15 = vld [vmem:[#allocation2 + $0xd0] sm:$0x3] }
 0x193   : > { %2385 = vmatmul.mubr.bf16.vlgmr.msra.gmra.mrb[0].mxu0 %v2251_v30  ;;  %v2448_v30 = vld [vmem:[#allocation2 + $0xf8] sm:$0x1] }
 0x194   : > { %6402 = vmatprep.mubr.msk.bf16.mxu0 %vm922_vm7, %v2254_v32  ;;  %2655 = vmatpush1.bf16.msra.mxu0 %v7256_v29  ;;  %v2446_v29 = vld [vmem:[#allocation2 + $0xe8] sm:$0xfe]  ;;  %v2553_v32 = vpack.c.bf16 %v2497_v4, %v2491_v19  ;;  %v2526_v4 = vrot.slane %v2451_v51, 1  ;;  %v2824_v51 = vrot.slane %v2748_v50, 2  ;;  %v3081_v50 = vld [vmem:[%s9407_s9 + $0x38] sm:$0xff] }
 0x195   : > { %2656 = vmatprep.subr.bf16.mxu0 %v7378_v1 }
 0x198   : > { %2657 = vmatpush1.bf16.msra.mxu0 %v7257_v33  ;;  %v2501_v33 = vrot.slane %v2433_v20, 1  ;;  %v2531_v20 = vrot.slane %v2453_v3, 1  ;;  %v2825_v3 = vrot.slane %v2750_v6, 2 }
 0x199   : > { %2658 = vmatprep.subr.bf16.mxu0 %v7378_v1 }
 0x19a   : > { %v2503_v49 = vsel %vm768_vm6, %v2501_v33, %v2502_v37  ;;  %v7273_v37 = vld [vmem:[%s9399_s1 + $0x2b8] sm:$0xff]  }
 0x19b   : > { %2393 = vmatmul.mubr.bf16.gmra.mrb[4].mxu0 %v2253_v41  ;;  %v2517_v41 = vrot.slane %v2444_v27, 1 }
 0x19c   : > { %6403 = vmatprep.mubr.msk.bf16.mxu0 %vm922_vm7, %v2256_v46  ;;  %2659 = vmatpush1.bf16.msra.mxu0 %v7258_v40  ;;  %v2516_v40 = vrot.slane %v2442_v26, 1  ;;  %v2522_v46 = vrot.slane %v2446_v29, 1  ;;  %v7271_v26 = vld [vmem:[%s9399_s1 + $0x2a8] sm:$0xff]  }
 0x19d   : > { %2660 = vmatprep.subr.bf16.mxu0 %v7378_v1 }
 0x19e   : > { %v2518_v58 = vsel %vm768_vm6, %v2516_v40, %v2517_v41  ;;  %v2731_v40 = vld [vmem:[#allocation2 + $0x60] sm:$0xfc]  ;;  %v2733_v41 = vld [vmem:[#allocation2 + $0x70] sm:$0x3] }
 0x1a0   : > { %2661 = vmatpush1.bf16.msra.mxu0 %v7259_v47  ;;  %v2523_v47 = vrot.slane %v2448_v30, 1  ;;  %v2802_v30 = vsel %vm1201_vm8, %v2800_v24, %v2801_v25  ;;  %v2815_v25 = vrot.slane %v2743_v14, 2 }
 0x1a1   : > { %2662 = vmatprep.subr.bf16.mxu0 %v7378_v1 }
 0x1a2   : > { %v2524_v59 = vsel %vm768_vm6, %v2522_v46, %v2523_v47  ;;  %v2736_v46 = vld [vmem:[#allocation2 + $0x88] sm:$0xfc]  ;;  %v2738_v47 = vld [vmem:[#allocation2 + $0x98] sm:$0x3] }
 0x1a3   : > { %2401 = vmatmul.mubr.bf16.gmra.mrb[8].mxu0 %v2255_v60  ;;  %v2447_v60 = vld [vmem:[#allocation2 + $0xf0] sm:$0x1]  ;;  %v2558_v31 = vpack.c.bf16 %v2524_v59, %v2518_v58  ;;  %v2798_v58 = vrot.slane %v2733_v41, 2  ;;  %v2806_v59 = vrot.slane %v2736_v46, 2 }
 0x1a4   : > { %6404 = vmatprep.mubr.msk.bf16.mxu0 %vm922_vm7, %v2258_v61  ;;  %2663 = vmatpush1.bf16.msra.mxu0 %v7260_v57  ;;  %v2445_v57 = vld [vmem:[#allocation2 + $0xe0] sm:$0xfe]  ;;  %v2450_v61 = vld [vmem:[#allocation2 + $0x108] sm:$0xfe]  ;;  %v2753_v46 = vld [vmem:[#allocation2 + $0x110] sm:$0x3] }
 0x1a5   : > { %2664 = vmatprep.subr.bf16.mxu0 %v7378_v1  ;;  %v2828_v56 = vrot.slane %v2753_v46, 2 }
 0x1a8   : > { %2665 = vmatpush1.bf16.msra.mxu0 %v7261_v0  ;;  %v2555_v0 = vpack.c.bf16 %v2509_v52, %v2503_v49  ;;  %v2740_v49 = vld [vmem:[#allocation2 + $0xa8] sm:$0xfc]  ;;  %v2742_v52 = vld [vmem:[#allocation2 + $0xb8] sm:$0x3] }
 0x1a9   : > { %2666 = vmatprep.subr.bf16.mxu0 %v7378_v1 }
 0x1ab   : > { %2409 = vmatmul.mubr.bf16.gmra.mrb[12].mxu0 %v2257_v35  ;;  %v2520_v35 = vrot.slane %v2447_v60, 1  ;;  %v2807_v60 = vrot.slane %v2738_v47, 2  ;;  %v2755_v47 = vld [vmem:[#allocation2 + $0x120] sm:$0xfc] }
 0x1ac   : > { %2667 = vmatpush1.bf16.msra.mxu0 %v7262_v5  ;;  %6435 = vmatprep.mubr.msk.bf16.mxu0 %vm922_vm7, %v2554_v44  ;;  %v2519_v5 = vrot.slane %v2445_v57, 1  ;;  %v2528_v44 = vrot.slane %v2450_v61, 1  ;;  %v2797_v57 = vrot.slane %v2731_v40, 2  ;;  %v2812_v61 = vrot.slane %v2740_v49, 2 }
 0x1ad   : > { %2668 = vmatprep.subr.bf16.mxu0 %v7378_v1 }
 0x1ae   : > { %v2521_v7 = vsel %vm768_vm6, %v2519_v5, %v2520_v35  ;;  %v2799_v63 = vsel %vm1201_vm8, %v2797_v57, %v2798_v58  ;;  %v2739_v5 = vld [vmem:[#allocation2 + $0xa0] sm:$0xfc]  ;;  %v2741_v35 = vld [vmem:[#allocation2 + $0xb0] sm:$0x3]  ;;  %v2833_v57 = vrot.slane %v2755_v47, 2 }
 0x1af   : > { %v2557_v16 = vpack.c.bf16 %v2521_v7, %v2515_v53  ;;  %v2810_v9 = vrot.slane %v2741_v35, 2  ;;  %v7383_v35 = vmov 0.0  }
 0x1b0   : > { %2669 = vmatpush1.bf16.msra.mxu0 %v7263_v43  ;;  %v2529_v43 = vrot.slane %v2452_v62, 1  ;;  %v2813_v62 = vrot.slane %v2742_v52, 2  ;;  %v2827_v52 = vrot.slane %v2751_v39, 2  ;;  %6829 = vmatprep.mubr.msk.f32.mxu1 %vm7382_vm9, %v7383_v35 }
 0x1b1   : > { %2670 = vmatprep.subr.bf16.mxu0 %v7378_v1 }
 0x1b2   : > { %v2530_v10 = vsel %vm768_vm6, %v2528_v44, %v2529_v43  ;;  %v2814_v42 = vsel %vm1201_vm8, %v2812_v61, %v2813_v62  ;;  %v2744_v44 = vld [vmem:[#allocation2 + $0xc8] sm:$0xfc]  ;;  %v2746_v43 = vld [vmem:[#allocation2 + $0xd8] sm:$0x3]  ;;  %v7381_v62 = vmov 0.0|0.0  }
 0x1b3   : > { %v2560_v19 = vpack.c.bf16 %v2536_v11, %v2530_v10  ;;  %v2818_v10 = vrot.slane %v2744_v44, 2  ;;  %v2819_v11 = vrot.slane %v2746_v43, 2  ;;  %6867 = vmatprep.subr.bf16.mxu1 %v7381_v62  ;;  %v3080_v43 = vld [vmem:[%s9407_s9 + $0x30] sm:$0xff] }
 0x1b4   : > { %2671 = vmatpush1.bf16.msra.mxu0 %v7264_v12  ;;  %v2728_v12 = vld [vmem:[#allocation2 + $0x48] sm:$0xfc]  ;;  %v6877_v6 = vpack.c.bf16 %v3081_v50, %v3080_v43 }
 0x1b5   : > { %2672 = vmatprep.subr.bf16.mxu0 %v7378_v1  ;;  %v2794_v22 = vrot.slane %v2728_v12, 2  ;;  %v2809_v12 = vrot.slane %v2739_v5, 2  ;;  %v3079_v5 = vld [vmem:[%s9407_s9 + $0x28] sm:$0xff] }
 0x1b7   : > { %v2796_v29 = vsel %vm1201_vm8, %v2794_v22, %v2795_v23  ;;  %v2756_v22 = vld [vmem:[#allocation2 + $0x128] sm:$0xfc]  ;;  %v2758_v23 = vld [vmem:[#allocation2 + $0x138] sm:$0x3] }
 0x1b8   : > { %2673 = vmatpush1.bf16.msra.mxu0 %v7265_v17  ;;  %v2525_v17 = vrot.slane %v2449_v8, 1  ;;  %v2804_v8 = vrot.slane %v2737_v2, 2  ;;  %v3077_v2 = vld [vmem:[%s9407_s9 + $0x18] sm:$0xff] }
 0x1b9   : > { %2956 = vmatprep.subr.bf16.mxu0 %v7378_v1 }
 0x1ba   : > { %v2527_v27 = vsel %vm768_vm6, %v2525_v17, %v2526_v4  ;;  %v2826_v17 = vsel %vm1201_vm8, %v2824_v51, %v2825_v3  ;;  %v2749_v4 = vld [vmem:[#allocation2 + $0xf0] sm:$0x3] }
 0x1bb   : > { %2687 = vmatmul.mubr.bf16.vlgmr.msra.gmra.mrb[0].mxu0 %v2553_v32  ;;  %v7272_v32 = vld [vmem:[%s9399_s1 + $0x2b0] sm:$0xff]  }
 0x1bc   : > { %6436 = vmatprep.mubr.msk.bf16.mxu0 %vm922_vm7, %v2556_v36  ;;  %2957 = vmatpush1.bf16.msra.mxu0 %v7266_v28  ;;  %v2533_v28 = vsel %vm768_vm6, %v2531_v20, %v2532_v21  ;;  %v2856_v36 = vpack.c.bf16 %v2802_v30, %v2796_v29  ;;  %v2752_v20 = vld [vmem:[#allocation2 + $0x108] sm:$0xfc]  ;;  %v2754_v21 = vld [vmem:[#allocation2 + $0x118] sm:$0x3]  ;;  %v2822_v29 = vrot.slane %v2749_v4, 2  ;;  %v3088_v3 = vld [vmem:[%s9407_s9 + $0x70] sm:$0xff] }
 0x1bd   : > { %2958 = vmatprep.subr.bf16.mxu0 %v7378_v1  ;;  %v2559_v33 = vpack.c.bf16 %v2533_v28, %v2527_v27  ;;  %v2816_v27 = vrot.slane %v2745_v15, 2  ;;  %v2830_v30 = vrot.slane %v2752_v20, 2 }
 0x1c0   : > { %2959 = vmatpush1.bf16.msra.mxu0 %v7267_v48  ;;  %v7274_v48 = vld [vmem:[%s9399_s1 + $0x2c0] sm:$0xff]  }
 0x1c1   : > { %2960 = vmatprep.subr.bf16.mxu0 %v7378_v1 }
 0x1c3   : > { %2695 = vmatmul.mubr.bf16.gmra.mrb[4].mxu0 %v2555_v0  ;;  %v2735_v0 = vld [vmem:[#allocation2 + $0x80] sm:$0xfc] }
 0x1c4   : > { %6437 = vmatprep.mubr.msk.bf16.mxu0 %vm922_vm7, %v2558_v31  ;;  %2961 = vmatpush1.bf16.msra.mxu0 %v7268_v18  ;;  %v7275_v18 = vld [vmem:[%s9399_s1 + $0x2c8] sm:$0xff]   ;;  %v2808_v31 = vsel %vm1201_vm8, %v2806_v59, %v2807_v60  ;;  %v2803_v53 = vrot.slane %v2735_v0, 2  ;;  %v2829_v59 = vsel %vm1201_vm8, %v2827_v52, %v2828_v56  ;;  %v3076_v0 = vld [vmem:[%s9407_s9 + $0x10] sm:$0xff] }
 0x1c5   : > { %2962 = vmatprep.subr.bf16.mxu0 %v7378_v1  ;;  %v2858_v7 = vpack.c.bf16 %v2814_v42, %v2808_v31  ;;  %v3078_v31 = vld [vmem:[%s9407_s9 + $0x20] sm:$0xff]  ;;  %v6871_v42 = vpack.c.bf16 %v3077_v2, %v3076_v0 }
 0x1c6   : > { %v2805_v54 = vsel %vm1201_vm8, %v2803_v53, %v2804_v8  ;;  %v6874_v44 = vpack.c.bf16 %v3079_v5, %v3078_v31  ;;  %v3083_v53 = vld [vmem:[%s9407_s9 + $0x48] sm:$0xff]  ;;  %v3084_v8 = vld [vmem:[%s9407_s9 + $0x50] sm:$0xff]  ;;  %v8432_v2 = vld [vmem:[%s9400_s2] sm:$0x1] }
 0x1c8   : > { %2963 = vmatpush1.bf16.msra.mxu0 %v7269_v45  ;;  %v2855_v45 = vpack.c.bf16 %v2799_v63, %v2793_v34  ;;  %v3075_v34 = vld [vmem:[%s9407_s9 + $0x8] sm:$0xff] }
 0x1c9   : > { %2964 = vmatprep.subr.bf16.mxu0 %v7378_v1 }
 0x1cb   : > { %2703 = vmatmul.mubr.bf16.gmra.mrb[8].mxu0 %v2557_v16  ;;  %v2820_v16 = vsel %vm1201_vm8, %v2818_v10, %v2819_v11  ;;  %v3086_v10 = vld [vmem:[%s9407_s9 + $0x60] sm:$0xff]  ;;  %v3087_v11 = vld [vmem:[%s9407_s9 + $0x68] sm:$0xff] }
 0x1cc   : > { %6438 = vmatprep.mubr.msk.bf16.mxu0 %vm922_vm7, %v2560_v19  ;;  %2965 = vmatpush1.bf16.msra.mxu0 %v7270_v13  ;;  %v2811_v13 = vsel %vm1201_vm8, %v2809_v12, %v2810_v9  ;;  %v2747_v19 = vld [vmem:[#allocation2 + $0xe0] sm:$0xfc]  ;;  %v3085_v12 = vld [vmem:[%s9407_s9 + $0x58] sm:$0xff]  ;;  %v6886_v51 = vpack.c.bf16 %v3087_v11, %v3086_v10 }
 0x1cd   : > { %2966 = vmatprep.subr.bf16.mxu0 %v7378_v1  ;;  %v2857_v24 = vpack.c.bf16 %v2811_v13, %v2805_v54  ;;  %v2821_v28 = vrot.slane %v2747_v19, 2  ;;  %v6883_v9 = vpack.c.bf16 %v3085_v12, %v3084_v8  ;;  %v3089_v54 = vld [vmem:[%s9407_s9 + $0x78] sm:$0xff] }
 0x1ce   : > { %v6889_v13 = vpack.c.bf16 %v3089_v54, %v3088_v3  ;;  %v7276_v54 = vld [vmem:[%s9403_s5 + $0x50] sm:$0xff]  }
 0x1cf   : > { %v2823_v38 = vsel %vm1201_vm8, %v2821_v28, %v2822_v29 }
 0x1d0   : > { %2967 = vmatpush1.bf16.msra.mxu0 %v7271_v26  ;;  %v2860_v26 = vpack.c.bf16 %v2826_v17, %v2820_v16 }
 0x1d1   : > { %2968 = vmatprep.subr.bf16.mxu0 %v7378_v1 }
 0x1d3   : > { %2711 = vmatmul.mubr.bf16.gmra.mrb[12].mxu0 %v2559_v33  ;;  %v2836_v33 = vrot.slane %v2756_v22, 2 }
 0x1d4   : > { %2969 = vmatpush1.bf16.msra.mxu0 %v7272_v32  ;;  %6469 = vmatprep.mubr.msk.bf16.mxu0 %vm922_vm7, %v2856_v36  ;;  %v2831_v32 = vrot.slane %v2754_v21, 2  ;;  %v2837_v36 = vrot.slane %v2758_v23, 2 }
 0x1d5   : > { %2970 = vmatprep.subr.bf16.mxu0 %v7378_v1 }
 0x1d6   : > { %v2832_v40 = vsel %vm1201_vm8, %v2830_v30, %v2831_v32  ;;  %v2838_v41 = vsel %vm1201_vm8, %v2836_v33, %v2837_v36 }
 0x1d7   : > { %v2862_v55 = vpack.c.bf16 %v2838_v41, %v2832_v40 }
 0x1d8   : > { %2971 = vmatpush1.bf16.msra.mxu0 %v7273_v37  ;;  %v2817_v37 = vsel %vm1201_vm8, %v2815_v25, %v2816_v27 }
 0x1d9   : > { %2972 = vmatprep.subr.bf16.mxu0 %v7378_v1  ;;  %v2859_v49 = vpack.c.bf16 %v2823_v38, %v2817_v37 }
 0x1dc   : > { %2973 = vmatpush1.bf16.msra.mxu0 %v7274_v48  ;;  %v2757_v48 = vld [vmem:[#allocation2 + $0x130] sm:$0x3] }
 0x1dd   : > { %2974 = vmatprep.subr.bf16.mxu0 %v7378_v1  ;;  %v2834_v58 = vrot.slane %v2757_v48, 2 }
 0x1df   : > { %v2835_v60 = vsel %vm1201_vm8, %v2833_v57, %v2834_v58 }
 0x1e0   : > { %2975 = vmatpush1.bf16.msra.mxu0 %v7275_v18  ;;  %v2861_v61 = vpack.c.bf16 %v2835_v60, %v2829_v59  ;;  %v3074_v18 = vld [vmem:[%s9407_s9] sm:$0xff] }
 0x1e1   : > { %6891 = vmatprep.subr.bf16.mxu0 %v7381_v62  ;;  %v6868_v63 = vpack.c.bf16 %v3075_v34, %v3074_v18 }
 0x1e3   : > { %2989 = vmatmul.mubr.bf16.vlgmr.msra.gmra.mrb[0].mxu0 %v2855_v45  ;;  %6869 = vmatpush3.bf16.msra.mxu1 %v6868_v63  ;;  %v3082_v45 = vld [vmem:[%s9407_s9 + $0x40] sm:$0xff] }
 0x1e4   : > { %6470 = vmatprep.mubr.msk.bf16.mxu0 %vm922_vm7, %v2858_v7  ;;  %6870 = vmatprep.subr.bf16.mxu1 %v7381_v62  ;;  %v6880_v7 = vpack.c.bf16 %v3083_v53, %v3082_v45  ;;  %v3069_v45 = vmul.f32 %v8432_v2, %v8432_v2 }
 0x1e6   : > { %v3070_v10 = vmul.f32 64.0, %v3069_v45 }
 0x1e7   : > { %6872 = vmatpush3.bf16.msra.mxu1 %v6871_v42 }
 0x1e8   : > { %6873 = vmatprep.subr.bf16.mxu1 %v7381_v62 }
 0x1eb   : > { %2997 = vmatmul.mubr.bf16.gmra.mrb[4].mxu0 %v2857_v24  ;;  %6875 = vmatpush3.bf16.msra.mxu1 %v6874_v44  ;;  %v3063_v44 = vmul.f32 64.0, %v8432_v2 }
 0x1ec   : > { %6471 = vmatprep.mubr.msk.bf16.mxu0 %vm922_vm7, %v2860_v26  ;;  %6876 = vmatprep.subr.bf16.mxu1 %v7381_v62 }
 0x1ef   : > { %6878 = vmatpush3.bf16.msra.mxu1 %v6877_v6  ;;  %v3066_v6 = vmul.f32 2.0, %v8432_v2 }
 0x1f0   : > { %6879 = vmatprep.subr.bf16.mxu1 %v7381_v62 }
 0x1f3   : > { %3005 = vmatmul.mubr.bf16.gmra.mrb[8].mxu0 %v2859_v49  ;;  %6881 = vmatpush3.bf16.msra.mxu1 %v6880_v7 }
 0x1f4   : > { %6472 = vmatprep.mubr.msk.bf16.mxu0 %vm922_vm7, %v2862_v55  ;;  %6882 = vmatprep.subr.bf16.mxu1 %v7381_v62 }
 0x1f7   : > { %6884 = vmatpush3.bf16.msra.mxu1 %v6883_v9 }
 0x1f8   : > { %6885 = vmatprep.subr.bf16.mxu1 %v7381_v62 }
 0x1fb   : > { %3013 = vmatmul.mubr.bf16.gmra.mrb[12].mxu0 %v2861_v61  ;;  %6887 = vmatpush3.bf16.msra.mxu1 %v6886_v51 }
 0x1fc   : > { %6864 = vmatprep.mubr.msk.f32.mxu0 %vm7382_vm9, %v7383_v35  ;;  %6888 = vmatprep.subr.bf16.mxu1 %v7381_v62 }
 0x1ff   : > { %6890 = vmatpush3.bf16.msra.mxu1 %v6889_v13  ;;  %v7277_v13 = vld [vmem:[%s9403_s5 + $0x58] sm:$0xff]  }
 0x200   : > { %3796 = vmatprep.subr.bf16.mxu1 %v7378_v1 }
 0x2b6   : > { %v8389_v14 = vpop.f32.mrb[0].mxu0 }
 0x2b7   : > { %v2992_v15 = vpop.f32.mrb[1].mxu0  ;;  %v3042_v17 = vmul.f32 %v8389_v14, %v8389_v14 }
 0x2b8   : > { %v8391_v16 = vpop.f32.mrb[2].mxu0  ;;  %v7278_v15 = vld [vmem:[%s9403_s5 + $0x60] sm:$0xff]  }
 0x2b9   : > { %v3029_v19 = vadd.f32 %v8391_v16, %v8389_v14  ;;  %v3043_v4 = vmul.f32 %v8391_v16, %v8391_v16  ;;  %v2995_v20 = vpop.f32.mrb[3].mxu0 }
 0x2ba   : > { %v7282_v20 = vld [vmem:[%s9403_s5 + $0x80] sm:$0xff]  }
 0x2bb   : > { %v3050_v21 = vadd.f32 %v3043_v4, %v3042_v17  ;;  %v7279_v17 = vld [vmem:[%s9403_s5 + $0x68] sm:$0xff]   ;;  %v7281_v4 = vld [vmem:[%s9403_s5 + $0x78] sm:$0xff]  }
 0x2be   : > { %v8399_v22 = vpop.f32.mrb[4].mxu0 }
 0x2bf   : > { %v3030_v23 = vadd.f32 %v3029_v19, %v8399_v22  ;;  %v3044_v24 = vmul.f32 %v8399_v22, %v8399_v22  ;;  %v3000_v25 = vpop.f32.mrb[5].mxu0  ;;  %v7280_v19 = vld [vmem:[%s9403_s5 + $0x70] sm:$0xff]  }
 0x2c0   : > { %v8404_v26 = vpop.f32.mrb[6].mxu0 }
 0x2c1   : > { %v3051_v27 = vadd.f32 %v3050_v21, %v3044_v24  ;;  %v3031_v28 = vadd.f32 %v3030_v23, %v8404_v26  ;;  %v3045_v29 = vmul.f32 %v8404_v26, %v8404_v26  ;;  %v3003_v30 = vpop.f32.mrb[7].mxu0 }
 0x2c3   : > { %v3052_v32 = vadd.f32 %v3051_v27, %v3045_v29  ;;  %v7384_v29 = vmov 1966171168  }
 0x2c4   : > { %v3169_v30 = vunpack.c.l.s4 %v7384_v29 }
 0x2c6   : > { %v8409_v33 = vpop.f32.mrb[8].mxu0 }
 0x2c7   : > { %v3032_v36 = vadd.f32 %v3031_v28, %v8409_v33  ;;  %v3046_v37 = vmul.f32 %v8409_v33, %v8409_v33  ;;  %v3008_v38 = vpop.f32.mrb[9].mxu0 }
 0x2c8   : > { %v8414_v39 = vpop.f32.mrb[10].mxu0 }
 0x2c9   : > { %v3053_v40 = vadd.f32 %v3052_v32, %v3046_v37  ;;  %v3033_v41 = vadd.f32 %v3032_v36, %v8414_v39  ;;  %v3047_v46 = vmul.f32 %v8414_v39, %v8414_v39  ;;  %v3011_v47 = vpop.f32.mrb[11].mxu0  ;;  %v3171_v32 = vlaneseq }
 0x2ca   : > { %v3170_v36 = vunpack.c.0.s8 %v3169_v30  ;;  %v370_v47 = vld [vmem:[%s9401_s3] sm:$0x1] }
 0x2cb   : > { %v3054_v48 = vadd.f32 %v3053_v40, %v3047_v46  ;;  %v3172_v37 = vshrl.u32 %v3171_v32, 7 }
 0x2cd   : > { %v8466_v38 = vsub.s32 %v3170_v36, %v3172_v37 }
 0x2ce   : > { %v8419_v49 = vpop.f32.mrb[12].mxu0 }
 0x2cf   : > { %v3034_v52 = vadd.f32 %v3033_v41, %v8419_v49  ;;  %v3048_v55 = vmul.f32 %v8419_v49, %v8419_v49  ;;  %v3016_v56 = vpop.f32.mrb[13].mxu0 }
 0x2d0   : > { %v8424_v57 = vpop.f32.mrb[14].mxu0 }
 0x2d1   : > { %v3055_v58 = vadd.f32 %v3054_v48, %v3048_v55  ;;  %v3035_v59 = vadd.f32 %v3034_v52, %v8424_v57  ;;  %v3049_v60 = vmul.f32 %v8424_v57, %v8424_v57  ;;  %v3019_v61 = vpop.f32.mrb[15].mxu0  ;;  %v8473_v52 = vsub.s32 0, %v3172_v37 }
 0x2d2   : > { %v7283_v61 = vld [vmem:[%s9403_s5 + $0x88] sm:$0xff]  }
 0x2d3   : > { %v3036_v18 = vrot.slane %v3035_v59, 4  ;;  %v3056_v34 = vadd.f32 %v3055_v58, %v3049_v60  ;;  %v371_v58 = vld [vmem:[%s9402_s4] sm:$0x1] }
 0x2d5   : > { %v3037_v63 = vadd.f32 %v3036_v18, %v3035_v59  ;;  %v3057_v0 = vrot.slane %v3056_v34, 4 }
 0x2d7   : > { %v3038_v31 = vrot.slane %v3037_v63, 2  ;;  %v3058_v42 = vadd.f32 %v3057_v0, %v3056_v34 }
 0x2d9   : > { %v3039_v5 = vadd.f32 %v3038_v31, %v3037_v63  ;;  %v3059_v35 = vrot.slane %v3058_v42, 2 }
 0x2db   : > { %v3040_v43 = vrot.slane %v3039_v5, 1  ;;  %v3060_v50 = vadd.f32 %v3059_v35, %v3058_v42 }
 0x2dd   : > { %v3041_v53 = vadd.f32 %v3040_v43, %v3039_v5  ;;  %v3061_v7 = vrot.slane %v3060_v50, 1 }
 0x2df   : > { %v3062_v8 = vadd.f32 %v3061_v7, %v3060_v50  ;;  %v3064_v12 = vadd.f32 %v3063_v44, %v3041_v53  ;;  %v3067_v9 = vmul.f32 %v3066_v6, %v3041_v53 }
 0x2e1   : > { %3065 = vst [vmem:[#allocation3] sm:$0x1] %v3064_v12  ;;  %v3068_v11 = vadd.f32 %v3067_v9, %v3062_v8  ;;  %v7285_v9 = vld [vmem:[%s9403_s5 + $0x98] sm:$0xff]  }
 0x2e3   : > { %v3071_v51 = vadd.f32 %v3070_v10, %v3068_v11 }
 0x2e5   : > { %3072 = vst [vmem:[#allocation3 + $0x1] sm:$0x1] %v3071_v51 }
 0x2ec   : > { %v3073_v3 = vld [vmem:[#allocation3] sm:$0x3] }
 0x2ed   : > { %6830 = vmatmul.mubr.f32.vlgmr.msra.gmra.mrb[0].mxu1 %v3073_v3 }
 0x2ee   : > { %3797 = vmatpush1.bf16.msra.mxu1 %v7276_v54 }
 0x2ef   : > { %3798 = vmatprep.subr.bf16.mxu1 %v7378_v1 }
 0x2f2   : > { %3799 = vmatpush1.bf16.msra.mxu1 %v7277_v13 }
 0x2f3   : > { %3800 = vmatprep.subr.bf16.mxu1 %v7378_v1 }
 0x2f6   : > { %3801 = vmatpush1.bf16.msra.mxu1 %v7278_v15 }
 0x2f7   : > { %3802 = vmatprep.subr.bf16.mxu1 %v7378_v1 }
 0x2fa   : > { %3803 = vmatpush1.bf16.msra.mxu1 %v7279_v17 }
 0x2fb   : > { %3804 = vmatprep.subr.bf16.mxu1 %v7378_v1 }
 0x2fe   : > { %3805 = vmatpush1.bf16.msra.mxu1 %v7280_v19 }
 0x2ff   : > { %3806 = vmatprep.subr.bf16.mxu1 %v7378_v1 }
 0x302   : > { %3807 = vmatpush1.bf16.msra.mxu1 %v7281_v4 }
 0x303   : > { %3808 = vmatprep.subr.bf16.mxu1 %v7378_v1 }
 0x306   : > { %3809 = vmatpush1.bf16.msra.mxu1 %v7282_v20 }
 0x307   : > { %3810 = vmatprep.subr.bf16.mxu1 %v7378_v1 }
 0x30a   : > { %3811 = vmatpush1.bf16.msra.mxu1 %v7283_v61 }
 0x30b   : > { %3812 = vmatprep.subr.bf16.mxu1 %v7378_v1 }
 0x3c0   : > { %v3156_v21 = vpop.f32.mrb[0].mxu1 }
 0x3c1   : > { %v3160_v23 = vmul.f32 %v3156_v21, %v3156_v21  ;;  %v6831_v24 = vpop.f32.mrb[1].mxu1  ;;  %v3185_v56 = vsub.f32 %v8432_v2, %v3156_v21 }
 0x3c3   : > { %v3162_v25 = vrot.slane %v3160_v23, 7 }
 0x3c5   : > { %v3164_v27 = vsub.f32 %v3156_v21, %v3162_v25 }
 0x3c7   : > { %v3165_v28 = vadd.f32 1e-05, %v3164_v27 }
 0x3c9   : > { %7366 = vrsqrt.f32 %v3165_v28 }
 0x3d3   : > { %v7367_v40 = vpop.eup %7366 }
 0x3d4   : > { %v3174_v41 = vrot.slane %v7367_v40, %v8466_v38 }
 0x3d6   : > { %v3175_v46 = vcombine.high %v3174_v41, %v3174_v41 }
 0x3d8   : > { %v3182_v48 = vrot.slane %v3175_v46, %v8466_v38 }
 0x3da   : > { %v3184_v55 = vmul.f32 %v3182_v48, %v370_v47 }
 0x3dc   : > { %v3186_v59 = vmul.f32 %v3185_v56, %v3184_v55  ;;  %v3192_v60 = vrot.slane %v3184_v55, %v8473_v52 }
 0x3de   : > { %v3187_v18 = vadd.f32 %v3186_v59, %v371_v58  ;;  %v3194_v34 = vmul.f32 %v3192_v60, %v8389_v14  ;;  %v3201_v63 = vmul.f32 %v3192_v60, %v8424_v57  ;;  %v3196_v0 = vmul.f32 %v3192_v60, %v8399_v22  ;;  %v7284_v14 = vld [vmem:[%s9403_s5 + $0x90] sm:$0xff]  }
 0x3df   : > { %v3195_v2 = vmul.f32 %v3192_v60, %v8391_v16  ;;  %v3198_v31 = vmul.f32 %v3192_v60, %v8409_v33  ;;  %v3197_v42 = vmul.f32 %v3192_v60, %v8404_v26  ;;  %v3200_v5 = vmul.f32 %v3192_v60, %v8419_v49  ;;  %3813 = vmatpush1.bf16.msra.mxu1 %v7284_v14 }
 0x3e0   : > { %v3206_v35 = vrot.slane %v3187_v18, %v8473_v52  ;;  %v3199_v44 = vmul.f32 %v3192_v60, %v8414_v39  ;;  %3814 = vmatprep.subr.bf16.mxu1 %v7378_v1 }
 0x3e2   : > { %v3208_v22 = vadd.f32 %v3206_v35, %v3194_v34  ;;  %v8496_v57 = vadd.f32 %v3206_v35, %v3201_v63  ;;  %v3210_v16 = vadd.f32 %v3206_v35, %v3196_v0  ;;  %v3209_v33 = vadd.f32 %v3206_v35, %v3195_v2 }
 0x3e3   : > { %v3212_v43 = vadd.f32 %v3206_v35, %v3198_v31  ;;  %v3211_v26 = vadd.f32 %v3206_v35, %v3197_v42  ;;  %v3214_v50 = vadd.f32 %v3206_v35, %v3200_v5  ;;  %v3213_v49 = vadd.f32 %v3206_v35, %v3199_v44  ;;  %3815 = vmatpush1.bf16.msra.mxu1 %v7285_v9 }
 0x3e4   : > { %vm3216_vm10 = vcmp.ge.f32.partialorder %v3208_v22, 0.0  ;;  %v3224_v6 = vmul.f32 0.01, %v3208_v22  ;;  %vm3218_vm11 = vcmp.ge.f32.partialorder %v3210_v16, 0.0  ;;  %v3226_v39 = vmul.f32 0.01, %v3210_v16  ;;  %3933 = vmatprep.subr.bf16.mxu1 %v7378_v1 }
 0x3e5   : > { %vm3217_vm12 = vcmp.ge.f32.partialorder %v3209_v33, 0.0  ;;  %v3225_v45 = vmul.f32 0.01, %v3209_v33  ;;  %vm3220_vm13 = vcmp.ge.f32.partialorder %v3212_v43, 0.0  ;;  %v3228_v53 = vmul.f32 0.01, %v3212_v43 }
 0x3e6   : > { %v8499_v7 = vsel %vm3216_vm10, %v3208_v22, %v3224_v6  ;;  %v8501_v8 = vsel %vm3218_vm11, %v3210_v16, %v3226_v39  ;;  %vm3219_vm14 = vcmp.ge.f32.partialorder %v3211_v26, 0.0  ;;  %v3227_v12 = vmul.f32 0.01, %v3211_v26 }
 0x3e7   : > { %v3254_v10 = vrot.slane %v8499_v7, 7  ;;  %3243 = vst.msk [vmem:[#allocation2] sm:$0x1] %vm372_vm0, %v8499_v7  ;;  %3274 = vst.msk [vmem:[#allocation2 + $0x20] sm:$0x1] %vm372_vm0, %v8499_v7  ;;  %v8512_v11 = vrot.slane %v8501_v8, 7  ;;  %v8516_v51 = vsel %vm3217_vm12, %v3209_v33, %v3225_v45  ;;  %v8518_v3 = vsel %vm3220_vm13, %v3212_v43, %v3228_v53 }
 0x3e8   : > { %3276 = vst.msk [vmem:[#allocation2 + $0x60] sm:$0x1] %vm372_vm0, %v8501_v8  ;;  %v3355_v54 = vrot.slane %v8516_v51, 7  ;;  %3275 = vst.msk [vmem:[#allocation2 + $0x40] sm:$0x1] %vm372_vm0, %v8516_v51  ;;  %v3358_v13 = vrot.slane %v8518_v3, 7  ;;  %v8526_v15 = vsel %vm3219_vm14, %v3211_v26, %v3227_v12 }
 0x3e9   : > { %3278 = vst.msk [vmem:[#allocation2 + $0xa0] sm:$0x1] %vm372_vm0, %v8518_v3  ;;  %vm3222_vm15 = vcmp.ge.f32.partialorder %v3214_v50, 0.0  ;;  %3265 = vrot.lane.b32.xlu1 %v3254_v10, %s7380_s28  ;;  %3257 = vst.msk [vmem:[#allocation2 + $0x10] sm:$0x1] %vm372_vm0, %v3254_v10  ;;  %3258 = vrot.lane.b32.xlu0 %v3254_v10, %s7379_s25  ;;  %v3357_v17 = vrot.slane %v8526_v15, 7 }
 0x3ea   : > { %3256 = vst.msk [vmem:[#allocation2] sm:$0xfe] %vm388_vm1, %v3254_v10  ;;  %3369 = vst.msk [vmem:[#allocation2 + $0x20] sm:$0xfe] %vm388_vm1, %v3254_v10  ;;  %v3230_v19 = vmul.f32 0.01, %v3214_v50 }
 0x3eb   : > { %3270 = vst.msk [vmem:[#allocation2 + $0x11] sm:$0x1] %vm372_vm0, %v3254_v10  ;;  %3370 = vst.msk [vmem:[#allocation2 + $0x30] sm:$0x1] %vm372_vm0, %v3254_v10  ;;  %vm3221_vm9 = vcmp.ge.f32.partialorder %v3213_v49, 0.0  ;;  %vm3223_vm10 = vcmp.ge.f32.partialorder %v8496_v57, 0.0 }
 0x3ec   : > { %3475 = vst.msk [vmem:[#allocation2 + $0x31] sm:$0x1] %vm372_vm0, %v3254_v10  ;;  %3374 = vst.msk [vmem:[#allocation2 + $0x70] sm:$0x1] %vm372_vm0, %v8512_v11  ;;  %v3229_v4 = vmul.f32 0.01, %v3213_v49  ;;  %v3238_v21 = vsel %vm3222_vm15, %v3214_v50, %v3230_v19 }
 0x3ed   : > { %3373 = vst.msk [vmem:[#allocation2 + $0x60] sm:$0xfe] %vm388_vm1, %v8512_v11  ;;  %3371 = vst.msk [vmem:[#allocation2 + $0x40] sm:$0xfe] %vm388_vm1, %v3355_v54  ;;  %v3231_v20 = vmul.f32 0.01, %v8496_v57  ;;  %3387 = vrot.lane.b32.xlu1 %v8512_v11, %s7379_s25  ;;  %3385 = vrot.lane.b32.xlu0 %v3355_v54, %s7379_s25 }
 0x3ee   : > { %3477 = vst.msk [vmem:[#allocation2 + $0x71] sm:$0x1] %vm372_vm0, %v8512_v11  ;;  %3277 = vst.msk [vmem:[#allocation2 + $0x80] sm:$0x1] %vm372_vm0, %v8526_v15  ;;  %v3237_v23 = vsel %vm3221_vm9, %v3213_v49, %v3229_v4  ;;  %v3360_v24 = vrot.slane %v3238_v21, 7  ;;  %v7286_v50 = vld [vmem:[%s9403_s5] sm:$0xff]  }
 0x3ef   : > { %3372 = vst.msk [vmem:[#allocation2 + $0x50] sm:$0x1] %vm372_vm0, %v3355_v54  ;;  %3476 = vst.msk [vmem:[#allocation2 + $0x51] sm:$0x1] %vm372_vm0, %v3355_v54  ;;  %v3359_v25 = vrot.slane %v3237_v23, 7  ;;  %v3239_v27 = vsel %vm3223_vm10, %v8496_v57, %v3231_v20 }
 0x3f0   : > { %3377 = vst.msk [vmem:[#allocation2 + $0xa0] sm:$0xfe] %vm388_vm1, %v3358_v13  ;;  %3375 = vst.msk [vmem:[#allocation2 + $0x80] sm:$0xfe] %vm388_vm1, %v3357_v17  ;;  %v3361_v28 = vrot.slane %v3239_v27, 7 }
 0x3f1   : > { %3378 = vst.msk [vmem:[#allocation2 + $0xb0] sm:$0x1] %vm372_vm0, %v3358_v13  ;;  %3479 = vst.msk [vmem:[#allocation2 + $0xb1] sm:$0x1] %vm372_vm0, %v3358_v13  ;;  %3440 = vrot.lane.b32.xlu1 %v8512_v11, %s7380_s28  ;;  %3438 = vrot.lane.b32.xlu0 %v3355_v54, %s7380_s28 }
 0x3f2   : > { %3376 = vst.msk [vmem:[#allocation2 + $0x90] sm:$0x1] %vm372_vm0, %v3357_v17  ;;  %3478 = vst.msk [vmem:[#allocation2 + $0x91] sm:$0x1] %vm372_vm0, %v3357_v17 }
 0x3f3   : > { %3280 = vst.msk [vmem:[#allocation2 + $0xe0] sm:$0x1] %vm372_vm0, %v3238_v21  ;;  %3279 = vst.msk [vmem:[#allocation2 + $0xc0] sm:$0x1] %vm372_vm0, %v3237_v23 }
 0x3f4   : > { %3281 = vst.msk [vmem:[#allocation2 + $0x100] sm:$0x1] %vm372_vm0, %v3239_v27  ;;  %3507 = vst.msk [vmem:[#allocation2 + $0x120] sm:$0x1] %vm372_vm0, %v3239_v27 }
 0x3f5   : > { %3381 = vst.msk [vmem:[#allocation2 + $0xe0] sm:$0xfe] %vm388_vm1, %v3360_v24  ;;  %3379 = vst.msk [vmem:[#allocation2 + $0xc0] sm:$0xfe] %vm388_vm1, %v3359_v25  ;;  %3391 = vrot.lane.b32.xlu1 %v3358_v13, %s7379_s25  ;;  %3389 = vrot.lane.b32.xlu0 %v3357_v17, %s7379_s25 }
 0x3f6   : > { %3382 = vst.msk [vmem:[#allocation2 + $0xf0] sm:$0x1] %vm372_vm0, %v3360_v24  ;;  %3481 = vst.msk [vmem:[#allocation2 + $0xf1] sm:$0x1] %vm372_vm0, %v3360_v24 }
 0x3f7   : > { %3380 = vst.msk [vmem:[#allocation2 + $0xd0] sm:$0x1] %vm372_vm0, %v3359_v25  ;;  %3480 = vst.msk [vmem:[#allocation2 + $0xd1] sm:$0x1] %vm372_vm0, %v3359_v25 }
 0x3f8   : > { %3383 = vst.msk [vmem:[#allocation2 + $0x100] sm:$0xfe] %vm388_vm1, %v3361_v28  ;;  %3511 = vst.msk [vmem:[#allocation2 + $0x120] sm:$0xfe] %vm388_vm1, %v3361_v28 }
 0x3f9   : > { %3384 = vst.msk [vmem:[#allocation2 + $0x110] sm:$0x1] %vm372_vm0, %v3361_v28  ;;  %3482 = vst.msk [vmem:[#allocation2 + $0x111] sm:$0x1] %vm372_vm0, %v3361_v28  ;;  %3444 = vrot.lane.b32.xlu1 %v3358_v13, %s7380_s28  ;;  %3442 = vrot.lane.b32.xlu0 %v3357_v17, %s7380_s28  ;;  %v7287_v13 = vld [vmem:[%s9403_s5 + $0x8] sm:$0xff]  }
 0x3fa   : > { %3512 = vst.msk [vmem:[#allocation2 + $0x130] sm:$0x1] %vm372_vm0, %v3361_v28  ;;  %3519 = vst.msk [vmem:[#allocation2 + $0x131] sm:$0x1] %vm372_vm0, %v3361_v28 }
 0x3fd   : > { %3395 = vrot.lane.b32.xlu1 %v3360_v24, %s7379_s25  ;;  %3393 = vrot.lane.b32.xlu0 %v3359_v25, %s7379_s25 }
 0x401   : > { %3448 = vrot.lane.b32.xlu1 %v3360_v24, %s7380_s28  ;;  %3446 = vrot.lane.b32.xlu0 %v3359_v25, %s7380_s28 }
 0x405   : > { %3250 = vrot.lane.b32.xlu1 %v8499_v7, %s7380_s28  ;;  %3245 = vrot.lane.b32.xlu0 %v8499_v7, %s7379_s25 }
 0x409   : > { %3291 = vrot.lane.b32.xlu1 %v8501_v8, %s7379_s25  ;;  %3289 = vrot.lane.b32.xlu0 %v8516_v51, %s7379_s25 }
 0x40d   : > { %3328 = vrot.lane.b32.xlu1 %v8501_v8, %s7380_s28  ;;  %3326 = vrot.lane.b32.xlu0 %v8516_v51, %s7380_s28 }
 0x411   : > { %3295 = vrot.lane.b32.xlu1 %v8518_v3, %s7379_s25  ;;  %3293 = vrot.lane.b32.xlu0 %v8526_v15, %s7379_s25 }
 0x415   : > { %3332 = vrot.lane.b32.xlu1 %v8518_v3, %s7380_s28  ;;  %3330 = vrot.lane.b32.xlu0 %v8526_v15, %s7380_s28 }
 0x419   : > { %3299 = vrot.lane.b32.xlu1 %v3238_v21, %s7379_s25  ;;  %3297 = vrot.lane.b32.xlu0 %v3237_v23, %s7379_s25 }
 0x41d   : > { %3336 = vrot.lane.b32.xlu1 %v3238_v21, %s7380_s28  ;;  %3334 = vrot.lane.b32.xlu0 %v3237_v23, %s7380_s28 }
 0x421   : > { %3397 = vrot.lane.b32.xlu1 %v3361_v28, %s7379_s25  ;;  %3301 = vrot.lane.b32.xlu0 %v3239_v27, %s7379_s25 }
 0x425   : > { %3450 = vrot.lane.b32.xlu1 %v3361_v28, %s7380_s28  ;;  %3338 = vrot.lane.b32.xlu0 %v3239_v27, %s7380_s28 }
 0x45b   : > { %v3266_v29 = vpop.permute.xlu1 %3265  ;;  %v3259_v30 = vpop.permute.xlu0 %3258 }
 0x45c   : > { %3261 = vst.msk [vmem:[#allocation2] sm:$0xfe] %vm394_vm3, %v3259_v30  ;;  %3406 = vst.msk [vmem:[#allocation2 + $0x20] sm:$0xfe] %vm394_vm3, %v3259_v30 }
 0x45d   : > { %3262 = vst.msk [vmem:[#allocation2 + $0x8] sm:$0xfe] %vm388_vm1, %v3259_v30  ;;  %3407 = vst.msk [vmem:[#allocation2 + $0x28] sm:$0xfe] %vm388_vm1, %v3259_v30 }
 0x45e   : > { %3263 = vst.msk [vmem:[#allocation2 + $0x10] sm:$0x1] %vm378_vm2, %v3259_v30  ;;  %3271 = vst.msk [vmem:[#allocation2 + $0x11] sm:$0x1] %vm378_vm2, %v3259_v30 }
 0x45f   : > { %3264 = vst.msk [vmem:[#allocation2 + $0x18] sm:$0x1] %vm372_vm0, %v3259_v30  ;;  %3272 = vst.msk [vmem:[#allocation2 + $0x19] sm:$0x1] %vm372_vm0, %v3259_v30  ;;  %v3388_v32 = vpop.permute.xlu1 %3387  ;;  %v3386_v36 = vpop.permute.xlu0 %3385 }
 0x460   : > { %3408 = vst.msk [vmem:[#allocation2 + $0x30] sm:$0x1] %vm378_vm2, %v3259_v30  ;;  %3483 = vst.msk [vmem:[#allocation2 + $0x31] sm:$0x1] %vm378_vm2, %v3259_v30 }
 0x461   : > { %3409 = vst.msk [vmem:[#allocation2 + $0x38] sm:$0x1] %vm372_vm0, %v3259_v30  ;;  %3484 = vst.msk [vmem:[#allocation2 + $0x39] sm:$0x1] %vm372_vm0, %v3259_v30 }
 0x462   : > { %3268 = vst.msk [vmem:[#allocation2 + $0x8] sm:$0xfe] %vm402_vm5, %v3266_v29  ;;  %3459 = vst.msk [vmem:[#allocation2 + $0x28] sm:$0xfe] %vm402_vm5, %v3266_v29 }
 0x463   : > { %3269 = vst.msk [vmem:[#allocation2 + $0x18] sm:$0x1] %vm384_vm4, %v3266_v29  ;;  %3273 = vst.msk [vmem:[#allocation2 + $0x19] sm:$0x1] %vm384_vm4, %v3266_v29  ;;  %v3441_v37 = vpop.permute.xlu1 %3440  ;;  %v3439_v40 = vpop.permute.xlu0 %3438  ;;  %v3567_v41 = vld [vmem:[#allocation2] sm:$0xfe] }
 0x464   : > { %3460 = vst.msk [vmem:[#allocation2 + $0x38] sm:$0x1] %vm384_vm4, %v3266_v29  ;;  %3499 = vst.msk [vmem:[#allocation2 + $0x39] sm:$0x1] %vm384_vm4, %v3266_v29  ;;  %v3571_v47 = vld [vmem:[#allocation2 + $0x20] sm:$0xfe] }
 0x465   : > { %3414 = vst.msk [vmem:[#allocation2 + $0x60] sm:$0xfe] %vm394_vm3, %v3388_v32  ;;  %3410 = vst.msk [vmem:[#allocation2 + $0x40] sm:$0xfe] %vm394_vm3, %v3386_v36  ;;  %v3569_v46 = vld [vmem:[#allocation2 + $0x10] sm:$0x1] }
 0x466   : > { %3415 = vst.msk [vmem:[#allocation2 + $0x68] sm:$0xfe] %vm388_vm1, %v3388_v32  ;;  %3411 = vst.msk [vmem:[#allocation2 + $0x48] sm:$0xfe] %vm388_vm1, %v3386_v36  ;;  %v3631_v18 = vrot.slane %v3567_v41, 1  ;;  %v3632_v0 = vrot.slane %v3569_v46, 1 }
 0x467   : > { %3416 = vst.msk [vmem:[#allocation2 + $0x70] sm:$0x1] %vm378_vm2, %v3388_v32  ;;  %3487 = vst.msk [vmem:[#allocation2 + $0x71] sm:$0x1] %vm378_vm2, %v3388_v32  ;;  %v3573_v63 = vld [vmem:[#allocation2 + $0x30] sm:$0x1]  ;;  %v3392_v31 = vpop.permute.xlu1 %3391  ;;  %v3390_v42 = vpop.permute.xlu0 %3389 }
 0x468   : > { %3417 = vst.msk [vmem:[#allocation2 + $0x78] sm:$0x1] %vm372_vm0, %v3388_v32  ;;  %3488 = vst.msk [vmem:[#allocation2 + $0x79] sm:$0x1] %vm372_vm0, %v3388_v32  ;;  %v3637_v2 = vrot.slane %v3571_v47, 1  ;;  %v3638_v35 = vrot.slane %v3573_v63, 1  ;;  %v3633_v57 = vsel %vm768_vm6, %v3631_v18, %v3632_v0 }
 0x469   : > { %3412 = vst.msk [vmem:[#allocation2 + $0x50] sm:$0x1] %vm378_vm2, %v3386_v36  ;;  %3485 = vst.msk [vmem:[#allocation2 + $0x51] sm:$0x1] %vm378_vm2, %v3386_v36  ;;  %v3568_v48 = vld [vmem:[#allocation2 + $0x8] sm:$0xfe] }
 0x46a   : > { %3413 = vst.msk [vmem:[#allocation2 + $0x58] sm:$0x1] %vm372_vm0, %v3386_v36  ;;  %3486 = vst.msk [vmem:[#allocation2 + $0x59] sm:$0x1] %vm372_vm0, %v3386_v36  ;;  %v3570_v55 = vld [vmem:[#allocation2 + $0x18] sm:$0x1]  ;;  %v3639_v26 = vsel %vm768_vm6, %v3637_v2, %v3638_v35 }
 0x46b   : > { %3463 = vst.msk [vmem:[#allocation2 + $0x68] sm:$0xfe] %vm402_vm5, %v3441_v37  ;;  %3461 = vst.msk [vmem:[#allocation2 + $0x48] sm:$0xfe] %vm402_vm5, %v3439_v40  ;;  %v3572_v56 = vld [vmem:[#allocation2 + $0x28] sm:$0xfe]  ;;  %v3695_v6 = vpack.c.bf16 %v3639_v26, %v3633_v57  ;;  %v3445_v7 = vpop.permute.xlu1 %3444  ;;  %v3443_v8 = vpop.permute.xlu0 %3442 }
 0x46c   : > { %3464 = vst.msk [vmem:[#allocation2 + $0x78] sm:$0x1] %vm384_vm4, %v3441_v37  ;;  %3501 = vst.msk [vmem:[#allocation2 + $0x79] sm:$0x1] %vm384_vm4, %v3441_v37  ;;  %v3574_v58 = vld [vmem:[#allocation2 + $0x38] sm:$0x1] }
 0x46d   : > { %3462 = vst.msk [vmem:[#allocation2 + $0x58] sm:$0x1] %vm384_vm4, %v3439_v40  ;;  %3500 = vst.msk [vmem:[#allocation2 + $0x59] sm:$0x1] %vm384_vm4, %v3439_v40  ;;  %v3634_v59 = vrot.slane %v3568_v48, 1  ;;  %v3635_v60 = vrot.slane %v3570_v55, 1 }
 0x46e   : > { %v3640_v61 = vrot.slane %v3572_v56, 1  ;;  %v3641_v34 = vrot.slane %v3574_v58, 1  ;;  %v3575_v44 = vld [vmem:[#allocation2 + $0x40] sm:$0xfe]  ;;  %3422 = vst.msk [vmem:[#allocation2 + $0xa0] sm:$0xfe] %vm394_vm3, %v3392_v31 }
 0x46f   : > { %v3636_v5 = vsel %vm768_vm6, %v3634_v59, %v3635_v60  ;;  %3423 = vst.msk [vmem:[#allocation2 + $0xa8] sm:$0xfe] %vm388_vm1, %v3392_v31  ;;  %3419 = vst.msk [vmem:[#allocation2 + $0x88] sm:$0xfe] %vm388_vm1, %v3390_v42  ;;  %v3579_v16 = vld [vmem:[#allocation2 + $0x60] sm:$0xfe]  ;;  %v3396_v20 = vpop.permute.xlu1 %3395  ;;  %v3394_v21 = vpop.permute.xlu0 %3393 }
 0x470   : > { %v3577_v14 = vld [vmem:[#allocation2 + $0x50] sm:$0x1]  ;;  %3424 = vst.msk [vmem:[#allocation2 + $0xb0] sm:$0x1] %vm378_vm2, %v3392_v31  ;;  %3491 = vst.msk [vmem:[#allocation2 + $0xb1] sm:$0x1] %vm378_vm2, %v3392_v31  ;;  %v3642_v22 = vsel %vm768_vm6, %v3640_v61, %v3641_v34 }
 0x471   : > { %3425 = vst.msk [vmem:[#allocation2 + $0xb8] sm:$0x1] %vm372_vm0, %v3392_v31  ;;  %3492 = vst.msk [vmem:[#allocation2 + $0xb9] sm:$0x1] %vm372_vm0, %v3392_v31  ;;  %v3581_v33 = vld [vmem:[#allocation2 + $0x70] sm:$0x1]  ;;  %v3696_v43 = vpack.c.bf16 %v3642_v22, %v3636_v5 }
 0x472   : > { %3418 = vst.msk [vmem:[#allocation2 + $0x80] sm:$0xfe] %vm394_vm3, %v3390_v42  ;;  %v3643_v49 = vrot.slane %v3575_v44, 1  ;;  %v3644_v39 = vrot.slane %v3577_v14, 1  ;;  %v3649_v45 = vrot.slane %v3579_v16, 1  ;;  %v3650_v53 = vrot.slane %v3581_v33, 1 }
 0x473   : > { %3420 = vst.msk [vmem:[#allocation2 + $0x90] sm:$0x1] %vm378_vm2, %v3390_v42  ;;  %3489 = vst.msk [vmem:[#allocation2 + $0x91] sm:$0x1] %vm378_vm2, %v3390_v42  ;;  %6503 = vmatprep.mubr.msk.bf16.mxu1 %vm922_vm7, %v3696_v43  ;;  %v3576_v12 = vld [vmem:[#allocation2 + $0x48] sm:$0xfe]  ;;  %v3449_v46 = vpop.permute.xlu1 %3448  ;;  %v3447_v47 = vpop.permute.xlu0 %3446 }
 0x474   : > { %3421 = vst.msk [vmem:[#allocation2 + $0x98] sm:$0x1] %vm372_vm0, %v3390_v42  ;;  %3490 = vst.msk [vmem:[#allocation2 + $0x99] sm:$0x1] %vm372_vm0, %v3390_v42  ;;  %v3578_v9 = vld [vmem:[#allocation2 + $0x58] sm:$0x1]  ;;  %3829 = vmatmul.mubr.bf16.vlgmr.msra.gmra.mrb[4].mxu1 %v3695_v6  ;;  %v3645_v19 = vsel %vm768_vm6, %v3643_v49, %v3644_v39  ;;  %v3651_v4 = vsel %vm768_vm6, %v3649_v45, %v3650_v53 }
 0x475   : > { %v3580_v10 = vld [vmem:[#allocation2 + $0x68] sm:$0xfe]  ;;  %3467 = vst.msk [vmem:[#allocation2 + $0xa8] sm:$0xfe] %vm402_vm5, %v3445_v7  ;;  %3465 = vst.msk [vmem:[#allocation2 + $0x88] sm:$0xfe] %vm402_vm5, %v3443_v8  ;;  %3934 = vmatpush1.bf16.msra.mxu1 %v7286_v50  ;;  %v3697_v30 = vpack.c.bf16 %v3651_v4, %v3645_v19 }
 0x476   : > { %3468 = vst.msk [vmem:[#allocation2 + $0xb8] sm:$0x1] %vm384_vm4, %v3445_v7  ;;  %3503 = vst.msk [vmem:[#allocation2 + $0xb9] sm:$0x1] %vm384_vm4, %v3445_v7  ;;  %v3582_v11 = vld [vmem:[#allocation2 + $0x78] sm:$0x1]  ;;  %3935 = vmatprep.subr.bf16.mxu1 %v7378_v1 }
 0x477   : > { %3466 = vst.msk [vmem:[#allocation2 + $0x98] sm:$0x1] %vm384_vm4, %v3443_v8  ;;  %3502 = vst.msk [vmem:[#allocation2 + $0x99] sm:$0x1] %vm384_vm4, %v3443_v8  ;;  %v3646_v51 = vrot.slane %v3576_v12, 1  ;;  %v3647_v3 = vrot.slane %v3578_v9, 1  ;;  %v3251_v31 = vpop.permute.xlu1 %3250  ;;  %v3246_v42 = vpop.permute.xlu0 %3245 }
 0x478   : > { %v3652_v54 = vrot.slane %v3580_v10, 1  ;;  %v3653_v15 = vrot.slane %v3582_v11, 1  ;;  %v3587_v27 = vld [vmem:[#allocation2 + $0xa0] sm:$0xfe]  ;;  %3430 = vst.msk [vmem:[#allocation2 + $0xe0] sm:$0xfe] %vm394_vm3, %v3396_v20 }
 0x479   : > { %v3648_v17 = vsel %vm768_vm6, %v3646_v51, %v3647_v3  ;;  %v3583_v24 = vld [vmem:[#allocation2 + $0x80] sm:$0xfe]  ;;  %3431 = vst.msk [vmem:[#allocation2 + $0xe8] sm:$0xfe] %vm388_vm1, %v3396_v20  ;;  %3427 = vst.msk [vmem:[#allocation2 + $0xc8] sm:$0xfe] %vm388_vm1, %v3394_v21  ;;  %3936 = vmatpush1.bf16.msra.mxu1 %v7287_v13 }
 0x47a   : > { %v3654_v23 = vsel %vm768_vm6, %v3652_v54, %v3653_v15  ;;  %v3585_v25 = vld [vmem:[#allocation2 + $0x90] sm:$0x1]  ;;  %3432 = vst.msk [vmem:[#allocation2 + $0xf0] sm:$0x1] %vm378_vm2, %v3396_v20  ;;  %3495 = vst.msk [vmem:[#allocation2 + $0xf1] sm:$0x1] %vm378_vm2, %v3396_v20  ;;  %3937 = vmatprep.subr.bf16.mxu1 %v7378_v1 }
 0x47b   : > { %3433 = vst.msk [vmem:[#allocation2 + $0xf8] sm:$0x1] %vm372_vm0, %v3396_v20  ;;  %3496 = vst.msk [vmem:[#allocation2 + $0xf9] sm:$0x1] %vm372_vm0, %v3396_v20  ;;  %v3698_v28 = vpack.c.bf16 %v3654_v23, %v3648_v17  ;;  %v3589_v29 = vld [vmem:[#allocation2 + $0xb0] sm:$0x1]  ;;  %v3292_v6 = vpop.permute.xlu1 %3291  ;;  %v3290_v39 = vpop.permute.xlu0 %3289 }
 0x47c   : > { %3426 = vst.msk [vmem:[#allocation2 + $0xc0] sm:$0xfe] %vm394_vm3, %v3394_v21  ;;  %v7288_v32 = vld [vmem:[%s9403_s5 + $0x10] sm:$0xff]   ;;  %v3655_v36 = vrot.slane %v3583_v24, 1  ;;  %v3656_v37 = vrot.slane %v3585_v25, 1  ;;  %v3661_v40 = vrot.slane %v3587_v27, 1 }
 0x47d   : > { %3428 = vst.msk [vmem:[#allocation2 + $0xd0] sm:$0x1] %vm378_vm2, %v3394_v21  ;;  %3493 = vst.msk [vmem:[#allocation2 + $0xd1] sm:$0x1] %vm378_vm2, %v3394_v21  ;;  %6504 = vmatprep.mubr.msk.bf16.mxu1 %vm922_vm7, %v3698_v28  ;;  %v3662_v41 = vrot.slane %v3589_v29, 1  ;;  %3938 = vmatpush1.bf16.msra.mxu1 %v7288_v32  ;;  %v7289_v18 = vld [vmem:[%s9403_s5 + $0x18] sm:$0xff]  }
 0x47e   : > { %3429 = vst.msk [vmem:[#allocation2 + $0xd8] sm:$0x1] %vm372_vm0, %v3394_v21  ;;  %3494 = vst.msk [vmem:[#allocation2 + $0xd9] sm:$0x1] %vm372_vm0, %v3394_v21  ;;  %v3584_v48 = vld [vmem:[#allocation2 + $0x88] sm:$0xfe]  ;;  %3837 = vmatmul.mubr.bf16.gmra.mrb[8].mxu1 %v3697_v30  ;;  %3939 = vmatprep.subr.bf16.mxu1 %v7378_v1  ;;  %v3657_v0 = vsel %vm768_vm6, %v3655_v36, %v3656_v37 }
 0x47f   : > { %v3586_v55 = vld [vmem:[#allocation2 + $0x98] sm:$0x1]  ;;  %v3588_v56 = vld [vmem:[#allocation2 + $0xa8] sm:$0xfe]  ;;  %3471 = vst.msk [vmem:[#allocation2 + $0xe8] sm:$0xfe] %vm402_vm5, %v3449_v46  ;;  %v3663_v2 = vsel %vm768_vm6, %v3661_v40, %v3662_v41  ;;  %v3329_v54 = vpop.permute.xlu1 %3328  ;;  %v3327_v13 = vpop.permute.xlu0 %3326 }
 0x480   : > { %3472 = vst.msk [vmem:[#allocation2 + $0xf8] sm:$0x1] %vm384_vm4, %v3449_v46  ;;  %3505 = vst.msk [vmem:[#allocation2 + $0xf9] sm:$0x1] %vm384_vm4, %v3449_v46  ;;  %v3590_v58 = vld [vmem:[#allocation2 + $0xb8] sm:$0x1]  ;;  %v3699_v16 = vpack.c.bf16 %v3663_v2, %v3657_v0 }
 0x481   : > { %3469 = vst.msk [vmem:[#allocation2 + $0xc8] sm:$0xfe] %vm402_vm5, %v3447_v47  ;;  %v3658_v59 = vrot.slane %v3584_v48, 1  ;;  %v3659_v60 = vrot.slane %v3586_v55, 1  ;;  %v3664_v61 = vrot.slane %v3588_v56, 1  ;;  %v3665_v34 = vrot.slane %v3590_v58, 1  ;;  %3940 = vmatpush1.bf16.msra.mxu1 %v7289_v18 }
 0x482   : > { %3470 = vst.msk [vmem:[#allocation2 + $0xd8] sm:$0x1] %vm384_vm4, %v3447_v47  ;;  %3504 = vst.msk [vmem:[#allocation2 + $0xd9] sm:$0x1] %vm384_vm4, %v3447_v47  ;;  %v3595_v14 = vld [vmem:[#allocation2 + $0xe0] sm:$0xfe]  ;;  %3941 = vmatprep.subr.bf16.mxu1 %v7378_v1 }
 0x483   : > { %v3660_v63 = vsel %vm768_vm6, %v3658_v59, %v3659_v60  ;;  %v3666_v5 = vsel %vm768_vm6, %v3664_v61, %v3665_v34  ;;  %v3591_v35 = vld [vmem:[#allocation2 + $0xc0] sm:$0xfe]  ;;  %3248 = vst.msk [vmem:[#allocation2] sm:$0x1] %vm378_vm2, %v3246_v42  ;;  %3310 = vst.msk [vmem:[#allocation2 + $0x20] sm:$0x1] %vm378_vm2, %v3246_v42  ;;  %v3296_v27 = vpop.permute.xlu1 %3295  ;;  %v3294_v28 = vpop.permute.xlu0 %3293 }
 0x484   : > { %v3593_v44 = vld [vmem:[#allocation2 + $0xd0] sm:$0x1]  ;;  %3249 = vst.msk [vmem:[#allocation2 + $0x8] sm:$0x1] %vm372_vm0, %v3246_v42  ;;  %3311 = vst.msk [vmem:[#allocation2 + $0x28] sm:$0x1] %vm372_vm0, %v3246_v42  ;;  %v3700_v22 = vpack.c.bf16 %v3666_v5, %v3660_v63 }
 0x485   : > { %v3597_v57 = vld [vmem:[#allocation2 + $0xf0] sm:$0x1]  ;;  %3253 = vst.msk [vmem:[#allocation2 + $0x8] sm:$0x1] %vm384_vm4, %v3251_v31  ;;  %3347 = vst.msk [vmem:[#allocation2 + $0x28] sm:$0x1] %vm384_vm4, %v3251_v31 }
 0x486   : > { %v7290_v33 = vld [vmem:[%s9403_s5 + $0x20] sm:$0xff]   ;;  %6505 = vmatprep.mubr.msk.bf16.mxu1 %vm922_vm7, %v3700_v22  ;;  %v3667_v43 = vrot.slane %v3591_v35, 1  ;;  %v3668_v26 = vrot.slane %v3593_v44, 1  ;;  %v3673_v50 = vrot.slane %v3595_v14, 1  ;;  %v3674_v49 = vrot.slane %v3597_v57, 1  ;;  %v7291_v11 = vld [vmem:[%s9403_s5 + $0x28] sm:$0xff]  }
 0x487   : > { %v3596_v7 = vld [vmem:[#allocation2 + $0xe8] sm:$0xfe]  ;;  %3314 = vst.msk [vmem:[#allocation2 + $0x60] sm:$0x1] %vm378_vm2, %v3292_v6  ;;  %3312 = vst.msk [vmem:[#allocation2 + $0x40] sm:$0x1] %vm378_vm2, %v3290_v39  ;;  %3845 = vmatmul.mubr.bf16.gmra.mrb[12].mxu1 %v3699_v16  ;;  %v3333_v37 = vpop.permute.xlu1 %3332  ;;  %v3331_v40 = vpop.permute.xlu0 %3330 }
 0x488   : > { %v3592_v45 = vld [vmem:[#allocation2 + $0xc8] sm:$0xfe]  ;;  %3315 = vst.msk [vmem:[#allocation2 + $0x68] sm:$0x1] %vm372_vm0, %v3292_v6  ;;  %3313 = vst.msk [vmem:[#allocation2 + $0x48] sm:$0x1] %vm372_vm0, %v3290_v39  ;;  %3942 = vmatpush1.bf16.msra.mxu1 %v7290_v33  ;;  %v3669_v17 = vsel %vm768_vm6, %v3667_v43, %v3668_v26  ;;  %v3675_v19 = vsel %vm768_vm6, %v3673_v50, %v3674_v49 }
 0x489   : > { %v3594_v53 = vld [vmem:[#allocation2 + $0xd8] sm:$0x1]  ;;  %v3670_v12 = vrot.slane %v3592_v45, 1  ;;  %v3676_v10 = vrot.slane %v3596_v7, 1  ;;  %3943 = vmatprep.subr.bf16.mxu1 %v7378_v1  ;;  %3349 = vst.msk [vmem:[#allocation2 + $0x68] sm:$0x1] %vm384_vm4, %v3329_v54  ;;  %v3701_v25 = vpack.c.bf16 %v3675_v19, %v3669_v17 }
 0x48a   : > { %v3598_v8 = vld [vmem:[#allocation2 + $0xf8] sm:$0x1]  ;;  %v3671_v9 = vrot.slane %v3594_v53, 1  ;;  %3348 = vst.msk [vmem:[#allocation2 + $0x48] sm:$0x1] %vm384_vm4, %v3327_v13  ;;  %v7292_v23 = vld [vmem:[%s9403_s5 + $0x30] sm:$0xff]  }
 0x48b   : > { %v3677_v51 = vrot.slane %v3598_v8, 1  ;;  %v8751_v29 = vld [vmem:[#allocation2 + $0x20] sm:$0xff]  ;;  %3318 = vst.msk [vmem:[#allocation2 + $0xa0] sm:$0x1] %vm378_vm2, %v3296_v27  ;;  %3316 = vst.msk [vmem:[#allocation2 + $0x80] sm:$0x1] %vm378_vm2, %v3294_v28  ;;  %v3300_v48 = vpop.permute.xlu1 %3299  ;;  %v3298_v55 = vpop.permute.xlu0 %3297 }
 0x48c   : > { %v3672_v3 = vsel %vm768_vm6, %v3670_v12, %v3671_v9  ;;  %v3524_v20 = vld [vmem:[#allocation2 + $0x8] sm:$0xff]  ;;  %3944 = vmatpush1.bf16.msra.mxu1 %v7291_v11  ;;  %3319 = vst.msk [vmem:[#allocation2 + $0xa8] sm:$0x1] %vm372_vm0, %v3296_v27  ;;  %3317 = vst.msk [vmem:[#allocation2 + $0x88] sm:$0x1] %vm372_vm0, %v3294_v28  ;;  %v7293_v36 = vld [vmem:[%s9403_s5 + $0x38] sm:$0xff]  }
 0x48d   : > { %v3678_v15 = vsel %vm768_vm6, %v3676_v10, %v3677_v51  ;;  %v8743_v21 = vld [vmem:[#allocation2 + $0x28] sm:$0xff]  ;;  %3945 = vmatprep.subr.bf16.mxu1 %v7378_v1  ;;  %3351 = vst.msk [vmem:[#allocation2 + $0xa8] sm:$0x1] %vm384_vm4, %v3333_v37  ;;  %3350 = vst.msk [vmem:[#allocation2 + $0x88] sm:$0x1] %vm384_vm4, %v3331_v40  ;;  %v7294_v47 = vld [vmem:[%s9403_s5 + $0x40] sm:$0xff]  }
 0x48e   : > { %v3702_v4 = vpack.c.bf16 %v3678_v15, %v3672_v3  ;;  %v3540_v24 = vpack.c.bf16 %v8743_v21, %v3524_v20  ;;  %v8753_v30 = vld [vmem:[#allocation2 + $0x40] sm:$0xff]  ;;  %3322 = vst.msk [vmem:[#allocation2 + $0xe0] sm:$0x1] %vm378_vm2, %v3300_v48  ;;  %3320 = vst.msk [vmem:[#allocation2 + $0xc0] sm:$0x1] %vm378_vm2, %v3298_v55  ;;  %v7295_v60 = vld [vmem:[%s9403_s5 + $0x48] sm:$0xff]  }
 0x48f   : > { %v4316_v32 = vpack.c.bf16 %v8753_v30, %v8751_v29  ;;  %v8776_v56 = vld [vmem:[#allocation2 + $0x60] sm:$0xff]  ;;  %3323 = vst.msk [vmem:[#allocation2 + $0xe8] sm:$0x1] %vm372_vm0, %v3300_v48  ;;  %3321 = vst.msk [vmem:[#allocation2 + $0xc8] sm:$0x1] %vm372_vm0, %v3298_v55  ;;  %v3337_v61 = vpop.permute.xlu1 %3336  ;;  %v3335_v18 = vpop.permute.xlu0 %3334  ;;  %v7297_v16 = vld [vmem:[%s9403_s5 + $0xa8] sm:$0xff]  }
 0x490   : > { %6506 = vmatprep.mubr.msk.bf16.mxu1 %vm922_vm7, %v3702_v4  ;;  %3946 = vmatpush1.bf16.msra.mxu1 %v7292_v23  ;;  %v3523_v34 = vld [vmem:[#allocation2] sm:$0xff]  ;;  %v8790_v63 = vld [vmem:[#allocation2 + $0x68] sm:$0xff]  ;;  %3353 = vst.msk [vmem:[#allocation2 + $0xe8] sm:$0x1] %vm384_vm4, %v3337_v61  ;;  %3352 = vst.msk [vmem:[#allocation2 + $0xc8] sm:$0x1] %vm384_vm4, %v3335_v18  ;;  %v3541_v39 = vpack.c.bf16 %v8776_v56, %v8753_v30 }
 0x491   : > { %3853 = vmatmul.mubr.bf16.gmra.mrb[16].mxu1 %v3701_v25  ;;  %3947 = vmatprep.subr.bf16.mxu1 %v7378_v1  ;;  %v8766_v41 = vld [vmem:[#allocation2 + $0x48] sm:$0xff]  ;;  %v7296_v31 = vld [vmem:[%s9403_s5 + $0xa0] sm:$0xff]   ;;  %v3539_v42 = vpack.c.bf16 %v8751_v29, %v3523_v34  ;;  %v7298_v6 = vld [vmem:[%s9403_s5 + $0xb0] sm:$0xff]  }
 0x492   : > { %6517 = vmatprep.mubr.msk.bf16.mxu1 %vm922_vm7, %v3540_v24  ;;  %v4317_v46 = vpack.c.bf16 %v8766_v41, %v8743_v21  ;;  %v8778_v58 = vld [vmem:[#allocation2 + $0x80] sm:$0xff]  ;;  %v3542_v44 = vpack.c.bf16 %v8790_v63, %v8766_v41  ;;  %v7299_v53 = vld [vmem:[%s9403_s5 + $0xb8] sm:$0xff]   ;;  %v3999_v12 = vld [vmem:[#allocation2 + $0x8] sm:$0xfc] }
 0x493   : > { %v4318_v59 = vpack.c.bf16 %v8778_v58, %v8776_v56  ;;  %v3398_v5 = vpop.permute.xlu1 %3397  ;;  %v3302_v35 = vpop.permute.xlu0 %3301  ;;  %v8805_v14 = vld [vmem:[#allocation2 + $0xa0] sm:$0xff]  ;;  %v4001_v9 = vld [vmem:[#allocation2 + $0x18] sm:$0x3]  ;;  %v4003_v10 = vld [vmem:[#allocation2 + $0x28] sm:$0xfc]  ;;  %v4065_v54 = vrot.slane %v3999_v12, 2 }
 0x494   : > { %3948 = vmatpush1.bf16.msra.mxu1 %v7293_v36  ;;  %v8792_v0 = vld [vmem:[#allocation2 + $0x88] sm:$0xff]  ;;  %3434 = vst.msk [vmem:[#allocation2 + $0x100] sm:$0xfe] %vm394_vm3, %v3398_v5  ;;  %3513 = vst.msk [vmem:[#allocation2 + $0x120] sm:$0xfe] %vm394_vm3, %v3398_v5  ;;  %v7300_v8 = vld [vmem:[%s9403_s5 + $0xc0] sm:$0xff]   ;;  %v3543_v51 = vpack.c.bf16 %v8805_v14, %v8778_v58 }
 0x495   : > { %3949 = vmatprep.subr.bf16.mxu1 %v7378_v1  ;;  %v4319_v2 = vpack.c.bf16 %v8792_v0, %v8790_v63  ;;  %v8807_v22 = vld [vmem:[#allocation2 + $0xc0] sm:$0xff]  ;;  %3435 = vst.msk [vmem:[#allocation2 + $0x108] sm:$0xfe] %vm388_vm1, %v3398_v5  ;;  %3514 = vst.msk [vmem:[#allocation2 + $0x128] sm:$0xfe] %vm388_vm1, %v3398_v5  ;;  %v8832_v26 = vld [vmem:[#allocation2 + $0xa8] sm:$0xff] }
 0x496   : > { %3436 = vst.msk [vmem:[#allocation2 + $0x110] sm:$0x1] %vm378_vm2, %v3398_v5  ;;  %3497 = vst.msk [vmem:[#allocation2 + $0x111] sm:$0x1] %vm378_vm2, %v3398_v5  ;;  %v4320_v57 = vpack.c.bf16 %v8807_v22, %v8805_v14  ;;  %v3544_v45 = vpack.c.bf16 %v8832_v26, %v8792_v0  ;;  %v4005_v11 = vld [vmem:[#allocation2 + $0x38] sm:$0x3] }
 0x497   : > { %3437 = vst.msk [vmem:[#allocation2 + $0x118] sm:$0x1] %vm372_vm0, %v3398_v5  ;;  %3498 = vst.msk [vmem:[#allocation2 + $0x119] sm:$0x1] %vm372_vm0, %v3398_v5  ;;  %v3451_v33 = vpop.permute.xlu1 %3450  ;;  %v3339_v43 = vpop.permute.xlu0 %3338  ;;  %v8834_v50 = vld [vmem:[#allocation2 + $0xc8] sm:$0xff]  ;;  %v4066_v13 = vrot.slane %v4001_v9, 2 }
 0x498   : > { %3950 = vmatpush1.bf16.msra.mxu1 %v7294_v47  ;;  %3515 = vst.msk [vmem:[#allocation2 + $0x130] sm:$0x1] %vm378_vm2, %v3398_v5  ;;  %3520 = vst.msk [vmem:[#allocation2 + $0x131] sm:$0x1] %vm378_vm2, %v3398_v5  ;;  %v4321_v49 = vpack.c.bf16 %v8834_v50, %v8832_v26  ;;  %v8859_v7 = vld [vmem:[#allocation2 + $0xe8] sm:$0xff]  ;;  %v4071_v15 = vrot.slane %v4003_v10, 2 }
 0x499   : > { %3951 = vmatprep.subr.bf16.mxu1 %v7378_v1  ;;  %3516 = vst.msk [vmem:[#allocation2 + $0x138] sm:$0x1] %vm372_vm0, %v3398_v5  ;;  %3521 = vst.msk [vmem:[#allocation2 + $0x139] sm:$0x1] %vm372_vm0, %v3398_v5  ;;  %v3546_v3 = vpack.c.bf16 %v8859_v7, %v8834_v50  ;;  %v4072_v17 = vrot.slane %v4005_v11, 2  ;;  %v7301_v19 = vld [vmem:[%s9403_s5 + $0xc8] sm:$0xff]   ;;  %v4067_v20 = vsel %vm1201_vm8, %v4065_v54, %v4066_v13 }
 0x49a   : > { %3324 = vst.msk [vmem:[#allocation2 + $0x100] sm:$0x1] %vm378_vm2, %v3302_v35  ;;  %3508 = vst.msk [vmem:[#allocation2 + $0x120] sm:$0x1] %vm378_vm2, %v3302_v35  ;;  %v8874_v4 = vld [vmem:[#allocation2 + $0xe0] sm:$0xff]  ;;  %v7302_v24 = vld [vmem:[%s9403_s5 + $0xd0] sm:$0xff]  }
 0x49b   : > { %3325 = vst.msk [vmem:[#allocation2 + $0x108] sm:$0x1] %vm372_vm0, %v3302_v35  ;;  %3509 = vst.msk [vmem:[#allocation2 + $0x128] sm:$0x1] %vm372_vm0, %v3302_v35  ;;  %v4073_v23 = vsel %vm1201_vm8, %v4071_v15, %v4072_v17  ;;  %v3545_v25 = vpack.c.bf16 %v8874_v4, %v8807_v22  ;;  %v7303_v28 = vld [vmem:[%s9403_s5 + $0xd8] sm:$0xff]   ;;  %v7304_v36 = vld [vmem:[%s9403_s5 + $0xe0] sm:$0xff]  }
 0x49c   : > { %3952 = vmatpush1.bf16.msra.mxu1 %v7295_v60  ;;  %3473 = vst.msk [vmem:[#allocation2 + $0x108] sm:$0xfe] %vm402_vm5, %v3451_v33  ;;  %3517 = vst.msk [vmem:[#allocation2 + $0x128] sm:$0xfe] %vm402_vm5, %v3451_v33  ;;  %v4127_v27 = vpack.c.bf16 %v4073_v23, %v4067_v20  ;;  %v3998_v37 = vld [vmem:[#allocation2] sm:$0xfc] }
 0x49d   : > { %4227 = vmatprep.subr.bf16.mxu1 %v7378_v1  ;;  %3474 = vst.msk [vmem:[#allocation2 + $0x118] sm:$0x1] %vm384_vm4, %v3451_v33  ;;  %3506 = vst.msk [vmem:[#allocation2 + $0x119] sm:$0x1] %vm384_vm4, %v3451_v33  ;;  %v4000_v40 = vld [vmem:[#allocation2 + $0x10] sm:$0x3] }
 0x49e   : > { %3518 = vst.msk [vmem:[#allocation2 + $0x138] sm:$0x1] %vm384_vm4, %v3451_v33  ;;  %3522 = vst.msk [vmem:[#allocation2 + $0x139] sm:$0x1] %vm384_vm4, %v3451_v33  ;;  %v4002_v47 = vld [vmem:[#allocation2 + $0x20] sm:$0xfc] }
 0x49f   : > { %3966 = vmatmul.mubr.bf16.vlgmr.msra.gmra.mrb[4].mxu1 %v3539_v42  ;;  %3354 = vst.msk [vmem:[#allocation2 + $0x108] sm:$0x1] %vm384_vm4, %v3339_v43  ;;  %3510 = vst.msk [vmem:[#allocation2 + $0x128] sm:$0x1] %vm384_vm4, %v3339_v43  ;;  %v4004_v48 = vld [vmem:[#allocation2 + $0x30] sm:$0x3] }
 0x4a0   : > { %6518 = vmatprep.mubr.msk.bf16.mxu1 %vm922_vm7, %v3542_v44  ;;  %4228 = vmatpush1.bf16.msra.mxu1 %v7296_v31  ;;  %v4007_v55 = vld [vmem:[#allocation2 + $0x48] sm:$0xfc]  ;;  %v4009_v60 = vld [vmem:[#allocation2 + $0x58] sm:$0x3]  ;;  %v4062_v34 = vrot.slane %v3998_v37, 2  ;;  %v4063_v31 = vrot.slane %v4000_v40, 2 }
 0x4a1   : > { %4229 = vmatprep.subr.bf16.mxu1 %v7378_v1  ;;  %v4011_v61 = vld [vmem:[#allocation2 + $0x68] sm:$0xfc]  ;;  %v4013_v18 = vld [vmem:[#allocation2 + $0x78] sm:$0x3]  ;;  %v4068_v42 = vrot.slane %v4002_v47, 2  ;;  %v4069_v5 = vrot.slane %v4004_v48, 2 }
 0x4a2   : > { %v4077_v35 = vrot.slane %v4007_v55, 2  ;;  %v4078_v44 = vrot.slane %v4009_v60, 2  ;;  %v4084_v33 = vrot.slane %v4013_v18, 2  ;;  %v7305_v43 = vld [vmem:[%s9403_s5 + $0xe8] sm:$0xff]   ;;  %v4010_v10 = vld [vmem:[#allocation2 + $0x60] sm:$0xfc] }
 0x4a3   : > { %v4012_v11 = vld [vmem:[#allocation2 + $0x70] sm:$0x3]  ;;  %v4019_v54 = vld [vmem:[#allocation2 + $0xa8] sm:$0xfc]  ;;  %v4021_v13 = vld [vmem:[#allocation2 + $0xb8] sm:$0x3] }
 0x4a4   : > { %4230 = vmatpush1.bf16.msra.mxu1 %v7297_v16  ;;  %v4083_v16 = vrot.slane %v4011_v61, 2  ;;  %v4079_v12 = vsel %vm1201_vm8, %v4077_v35, %v4078_v44  ;;  %v4080_v23 = vrot.slane %v4010_v10, 2  ;;  %v7307_v37 = vld [vmem:[%s9403_s5 + $0xf8] sm:$0xff]   ;;  %v7308_v48 = vld [vmem:[%s9403_s5 + $0x100] sm:$0xff]   ;;  %v4016_v60 = vld [vmem:[#allocation2 + $0x90] sm:$0x3] }
 0x4a5   : > { %4231 = vmatprep.subr.bf16.mxu1 %v7378_v1  ;;  %v4014_v55 = vld [vmem:[#allocation2 + $0x80] sm:$0xfc]  ;;  %v4027_v35 = vld [vmem:[#allocation2 + $0xe8] sm:$0xfc]  ;;  %v4029_v44 = vld [vmem:[#allocation2 + $0xf8] sm:$0x3] }
 0x4a6   : > { %v4085_v9 = vsel %vm1201_vm8, %v4083_v16, %v4084_v33  ;;  %v4086_v33 = vrot.slane %v4014_v55, 2  ;;  %v7309_v10 = vld [vmem:[%s9403_s5 + $0x108] sm:$0xff]   ;;  %v7315_v21 = vld [vmem:[%s9403_s5 + $0x138] sm:$0xff]   ;;  %v7316_v41 = vld [vmem:[%s9403_s5 + $0x140] sm:$0xff]  }
 0x4a7   : > { %3974 = vmatmul.mubr.bf16.gmra.mrb[8].mxu1 %v3541_v39  ;;  %v4070_v39 = vsel %vm1201_vm8, %v4068_v42, %v4069_v5  ;;  %v4023_v42 = vld [vmem:[#allocation2 + $0xc8] sm:$0xfc]  ;;  %v4025_v5 = vld [vmem:[#allocation2 + $0xd8] sm:$0x3]  ;;  %v7322_v14 = vld [vmem:[%s9403_s5 + $0x170] sm:$0xff]  }
 0x4a8   : > { %6519 = vmatprep.mubr.msk.bf16.mxu1 %vm922_vm7, %v3544_v45  ;;  %4232 = vmatpush1.bf16.msra.mxu1 %v7298_v6  ;;  %v4064_v6 = vsel %vm1201_vm8, %v4062_v34, %v4063_v31  ;;  %v7306_v45 = vld [vmem:[%s9403_s5 + $0xf0] sm:$0xff]   ;;  %v4018_v34 = vld [vmem:[#allocation2 + $0xa0] sm:$0xfc]  ;;  %v7319_v29 = vld [vmem:[%s9403_s5 + $0x158] sm:$0xff]  }
 0x4a9   : > { %4233 = vmatprep.subr.bf16.mxu1 %v7378_v1  ;;  %v4126_v15 = vpack.c.bf16 %v4070_v39, %v4064_v6  ;;  %v4020_v31 = vld [vmem:[#allocation2 + $0xb0] sm:$0x3]  ;;  %v4087_v6 = vrot.slane %v4016_v60, 2  ;;  %v4092_v39 = vrot.slane %v4018_v34, 2  ;;  %v7313_v60 = vld [vmem:[%s9403_s5 + $0x128] sm:$0xff]  }
 0x4aa   : > { %v8988_v30 = vld [vmem:[#allocation2 + $0x108] sm:$0xff]  ;;  %v4497_v58 = vld [vmem:[#allocation2 + $0x58] sm:$0x1] }
 0x4ab   : > { %v4495_v56 = vld [vmem:[#allocation2 + $0x48] sm:$0xfe]  ;;  %v4493_v0 = vld [vmem:[#allocation2 + $0x38] sm:$0x1]  ;;  %v4564_v26 = vrot.slane %v4497_v58, 1 }
 0x4ac   : > { %4234 = vmatpush1.bf16.msra.mxu1 %v7299_v53  ;;  %v4006_v53 = vld [vmem:[#allocation2 + $0x40] sm:$0xfc]  ;;  %v4491_v63 = vld [vmem:[#allocation2 + $0x28] sm:$0xfe]  ;;  %v4558_v34 = vrot.slane %v4493_v0, 1 }
 0x4ad   : > { %4235 = vmatprep.subr.bf16.mxu1 %v7378_v1  ;;  %v4074_v17 = vrot.slane %v4006_v53, 2  ;;  %v4101_v53 = vrot.slane %v4023_v42, 2  ;;  %v7321_v50 = vld [vmem:[%s9403_s5 + $0x168] sm:$0xff]  }
 0x4af   : > { %3982 = vmatmul.mubr.bf16.gmra.mrb[12].mxu1 %v3543_v51  ;;  %v4015_v51 = vld [vmem:[#allocation2 + $0x88] sm:$0xfc] }
 0x4b0   : > { %6520 = vmatprep.mubr.msk.bf16.mxu1 %vm922_vm7, %v3546_v3  ;;  %4236 = vmatpush1.bf16.msra.mxu1 %v7300_v8  ;;  %v4008_v8 = vld [vmem:[#allocation2 + $0x50] sm:$0x3]  ;;  %v4017_v3 = vld [vmem:[#allocation2 + $0x98] sm:$0x3] }
 0x4b1   : > { %4237 = vmatprep.subr.bf16.mxu1 %v7378_v1  ;;  %v4075_v20 = vrot.slane %v4008_v8, 2  ;;  %v4102_v8 = vrot.slane %v4025_v5, 2  ;;  %v7323_v5 = vld [vmem:[%s9403_s5 + $0x178] sm:$0xff]  }
 0x4b3   : > { %v4076_v40 = vsel %vm1201_vm8, %v4074_v17, %v4075_v20  ;;  %v4026_v17 = vld [vmem:[#allocation2 + $0xe0] sm:$0xfc]  ;;  %v7310_v20 = vld [vmem:[%s9403_s5 + $0x110] sm:$0xff]  }
 0x4b4   : > { %4238 = vmatpush1.bf16.msra.mxu1 %v7301_v19  ;;  %v4129_v19 = vpack.c.bf16 %v4085_v9, %v4079_v12  ;;  %v4107_v12 = vrot.slane %v4027_v35, 2  ;;  %v4108_v9 = vrot.slane %v4029_v44, 2  ;;  %v4494_v35 = vld [vmem:[#allocation2 + $0x40] sm:$0xfe]  ;;  %v4496_v44 = vld [vmem:[#allocation2 + $0x50] sm:$0x1] }
 0x4b5   : > { %4239 = vmatprep.subr.bf16.mxu1 %v7378_v1 }
 0x4b7   : > { %3990 = vmatmul.mubr.bf16.gmra.mrb[16].mxu1 %v3545_v25  ;;  %v4089_v25 = vrot.slane %v4015_v51, 2 }
 0x4b8   : > { %4240 = vmatpush1.bf16.msra.mxu1 %v7302_v24  ;;  %6551 = vmatprep.mubr.msk.bf16.mxu1 %vm922_vm7, %v4127_v27  ;;  %v4081_v24 = vrot.slane %v4012_v11, 2  ;;  %v4090_v27 = vrot.slane %v4017_v3, 2  ;;  %v4088_v11 = vsel %vm1201_vm8, %v4086_v33, %v4087_v6  ;;  %v4022_v3 = vld [vmem:[#allocation2 + $0xc0] sm:$0xfc]  ;;  %v4505_v33 = vld [vmem:[#allocation2 + $0x98] sm:$0x1] }
 0x4b9   : > { %4241 = vmatprep.subr.bf16.mxu1 %v7378_v1  ;;  %v4492_v6 = vld [vmem:[#allocation2 + $0x30] sm:$0x1] }
 0x4ba   : > { %v4082_v47 = vsel %vm1201_vm8, %v4080_v23, %v4081_v24  ;;  %v4091_v61 = vsel %vm1201_vm8, %v4089_v25, %v4090_v27  ;;  %v4098_v24 = vrot.slane %v4022_v3, 2 }
 0x4bb   : > { %v4128_v16 = vpack.c.bf16 %v4082_v47, %v4076_v40 }
 0x4bc   : > { %4242 = vmatpush1.bf16.msra.mxu1 %v7303_v28  ;;  %v4095_v28 = vrot.slane %v4019_v54, 2  ;;  %v4103_v54 = vsel %vm1201_vm8, %v4101_v53, %v4102_v8  ;;  %v4499_v53 = vld [vmem:[#allocation2 + $0x68] sm:$0xfe]  ;;  %v4501_v8 = vld [vmem:[#allocation2 + $0x78] sm:$0x1] }
 0x4bd   : > { %4243 = vmatprep.subr.bf16.mxu1 %v7378_v1  ;;  %v4569_v3 = vrot.slane %v4499_v53, 1 }
 0x4c0   : > { %4244 = vmatpush1.bf16.msra.mxu1 %v7304_v36  ;;  %v4096_v36 = vrot.slane %v4021_v13, 2  ;;  %v4109_v13 = vsel %vm1201_vm8, %v4107_v12, %v4108_v9  ;;  %v4576_v9 = vrot.slane %v4505_v33, 1 }
 0x4c1   : > { %4245 = vmatprep.subr.bf16.mxu1 %v7378_v1  ;;  %v4133_v25 = vpack.c.bf16 %v4109_v13, %v4103_v54  ;;  %v4570_v54 = vrot.slane %v4501_v8, 1  ;;  %v4518_v8 = vld [vmem:[#allocation2 + $0x100] sm:$0xfe] }
 0x4c2   : > { %v4097_v18 = vsel %vm1201_vm8, %v4095_v28, %v4096_v36  ;;  %v4104_v28 = vrot.slane %v4026_v17, 2  ;;  %v4502_v17 = vld [vmem:[#allocation2 + $0x80] sm:$0xfe] }
 0x4c4   : > { %4246 = vmatpush1.bf16.msra.mxu1 %v7305_v43  ;;  %v4131_v43 = vpack.c.bf16 %v4097_v18, %v4091_v61  ;;  %v7314_v61 = vld [vmem:[%s9403_s5 + $0x130] sm:$0xff]  }
 0x4c5   : > { %4417 = vmatprep.subr.bf16.mxu1 %v7378_v1  ;;  %v7318_v18 = vld [vmem:[%s9403_s5 + $0x150] sm:$0xff]  }
 0x4c7   : > { %4260 = vmatmul.mubr.bf16.vlgmr.msra.gmra.mrb[4].mxu1 %v4126_v15  ;;  %v4024_v15 = vld [vmem:[#allocation2 + $0xd0] sm:$0x3] }
 0x4c8   : > { %6552 = vmatprep.mubr.msk.bf16.mxu1 %vm922_vm7, %v4129_v19  ;;  %4418 = vmatpush1.bf16.msra.mxu1 %v7306_v45  ;;  %v4093_v45 = vrot.slane %v4020_v31, 2  ;;  %v4028_v19 = vld [vmem:[#allocation2 + $0xf0] sm:$0x3]  ;;  %v4099_v27 = vrot.slane %v4024_v15, 2 }
 0x4c9   : > { %4419 = vmatprep.subr.bf16.mxu1 %v7378_v1  ;;  %v4105_v36 = vrot.slane %v4028_v19, 2  ;;  %v4504_v19 = vld [vmem:[#allocation2 + $0x90] sm:$0x1] }
 0x4ca   : > { %v4094_v51 = vsel %vm1201_vm8, %v4092_v39, %v4093_v45  ;;  %v4100_v40 = vsel %vm1201_vm8, %v4098_v24, %v4099_v27  ;;  %v4560_v39 = vrot.slane %v4494_v35, 1  ;;  %v4561_v45 = vrot.slane %v4496_v44, 1  ;;  %v4511_v24 = vld [vmem:[#allocation2 + $0xc8] sm:$0xfe]  ;;  %v4517_v35 = vld [vmem:[#allocation2 + $0xf8] sm:$0x1] }
 0x4cb   : > { %v4130_v23 = vpack.c.bf16 %v4094_v51, %v4088_v11  ;;  %v4106_v47 = vsel %vm1201_vm8, %v4104_v28, %v4105_v36  ;;  %v4555_v51 = vrot.slane %v4492_v6, 1  ;;  %v4571_v28 = vsel %vm768_vm6, %v4569_v3, %v4570_v54  ;;  %v4498_v36 = vld [vmem:[#allocation2 + $0x60] sm:$0xfe] }
 0x4cc   : > { %4420 = vmatpush1.bf16.msra.mxu1 %v7307_v37  ;;  %v7311_v37 = vld [vmem:[%s9403_s5 + $0x118] sm:$0xff]   ;;  %v4132_v55 = vpack.c.bf16 %v4106_v47, %v4100_v40  ;;  %v4562_v13 = vsel %vm768_vm6, %v4560_v39, %v4561_v45  ;;  %v4572_v47 = vrot.slane %v4502_v17, 1  ;;  %v4594_v39 = vrot.slane %v4517_v35, 1 }
 0x4cd   : > { %4421 = vmatprep.subr.bf16.mxu1 %v7378_v1 }
 0x4cf   : > { %4268 = vmatmul.mubr.bf16.gmra.mrb[8].mxu1 %v4128_v16  ;;  %v4503_v16 = vld [vmem:[#allocation2 + $0x88] sm:$0xfe] }
 0x4d0   : > { %6553 = vmatprep.mubr.msk.bf16.mxu1 %vm922_vm7, %v4131_v43  ;;  %4422 = vmatpush1.bf16.msra.mxu1 %v7308_v48  ;;  %v7312_v48 = vld [vmem:[%s9403_s5 + $0x120] sm:$0xff]   ;;  %v4575_v12 = vrot.slane %v4503_v16, 1  ;;  %v7329_v16 = vld [vmem:[%s9403_s5 + $0x1a8] sm:$0xff]  }
 0x4d1   : > { %4423 = vmatprep.subr.bf16.mxu1 %v7378_v1  ;;  %v4490_v43 = vld [vmem:[#allocation2 + $0x20] sm:$0xfe] }
 0x4d2   : > { %v4554_v11 = vrot.slane %v4490_v43, 1  ;;  %v4577_v15 = vsel %vm768_vm6, %v4575_v12, %v4576_v9  ;;  %v4520_v12 = vld [vmem:[#allocation2 + $0x110] sm:$0x1] }
 0x4d3   : > { %v4621_v40 = vpack.c.bf16 %v4577_v15, %v4571_v28  ;;  %v4516_v15 = vld [vmem:[#allocation2 + $0xf0] sm:$0x1]  ;;  %v7331_v28 = vld [vmem:[%s9403_s5 + $0x1b8] sm:$0xff]  }
 0x4d4   : > { %4424 = vmatpush1.bf16.msra.mxu1 %v7309_v10  ;;  %v7325_v10 = vld [vmem:[%s9403_s5 + $0x188] sm:$0xff]  }
 0x4d5   : > { %4425 = vmatprep.subr.bf16.mxu1 %v7378_v1 }
 0x4d7   : > { %4276 = vmatmul.mubr.bf16.gmra.mrb[12].mxu1 %v4130_v23  ;;  %v7326_v23 = vld [vmem:[%s9403_s5 + $0x190] sm:$0xff]  }
 0x4d8   : > { %6554 = vmatprep.mubr.msk.bf16.mxu1 %vm922_vm7, %v4133_v25  ;;  %4426 = vmatpush1.bf16.msra.mxu1 %v7310_v20  ;;  %v4556_v20 = vsel %vm768_vm6, %v4554_v11, %v4555_v51  ;;  %v4513_v25 = vld [vmem:[#allocation2 + $0xd8] sm:$0x1]  ;;  %v4797_v11 = vld [vmem:[#allocation2 + $0x48] sm:$0xfc] }
 0x4d9   : > { %4427 = vmatprep.subr.bf16.mxu1 %v7378_v1  ;;  %v4618_v27 = vpack.c.bf16 %v4562_v13, %v4556_v20  ;;  %v4799_v51 = vld [vmem:[#allocation2 + $0x58] sm:$0x3]  ;;  %v4514_v13 = vld [vmem:[#allocation2 + $0xe0] sm:$0xfe]  ;;  %v4597_v20 = vrot.slane %v4520_v12, 1 }
 0x4da   : > { %v4802_v12 = vld [vmem:[#allocation2 + $0x70] sm:$0x3] }
 0x4dc   : > { %4428 = vmatpush1.bf16.msra.mxu1 %v7311_v37  ;;  %v4500_v37 = vld [vmem:[#allocation2 + $0x70] sm:$0x1] }
 0x4dd   : > { %4429 = vmatprep.subr.bf16.mxu1 %v7378_v1 }
 0x4df   : > { %4284 = vmatmul.mubr.bf16.gmra.mrb[16].mxu1 %v4132_v55  ;;  %v4507_v55 = vld [vmem:[#allocation2 + $0xa8] sm:$0xfe] }
 0x4e0   : > { %4430 = vmatpush1.bf16.msra.mxu1 %v7312_v48  ;;  %6585 = vmatprep.mubr.msk.bf16.mxu1 %vm922_vm7, %v4317_v46  ;;  %v7317_v46 = vld [vmem:[%s9403_s5 + $0x148] sm:$0xff]   ;;  %v4573_v48 = vrot.slane %v4504_v19, 1  ;;  %v4596_v19 = vrot.slane %v4518_v8, 1  ;;  %v4800_v8 = vld [vmem:[#allocation2 + $0x60] sm:$0xfc] }
 0x4e1   : > { %4431 = vmatprep.subr.bf16.mxu1 %v7378_v1 }
 0x4e4   : > { %4432 = vmatpush1.bf16.msra.mxu1 %v7313_v60  ;;  %v4509_v60 = vld [vmem:[#allocation2 + $0xb8] sm:$0x1] }
 0x4e5   : > { %4433 = vmatprep.subr.bf16.mxu1 %v7378_v1 }
 0x4e8   : > { %4434 = vmatpush1.bf16.msra.mxu1 %v7314_v61  ;;  %v4587_v61 = vrot.slane %v4511_v24, 1  ;;  %v4795_v24 = vld [vmem:[#allocation2 + $0x38] sm:$0x3] }
 0x4e9   : > { %4435 = vmatprep.subr.bf16.mxu1 %v7378_v1 }
 0x4ec   : > { %4436 = vmatpush1.bf16.msra.mxu1 %v7315_v21  ;;  %v4588_v21 = vrot.slane %v4513_v25, 1  ;;  %v4865_v25 = vrot.slane %v4797_v11, 2 }
 0x4ed   : > { %4719 = vmatprep.subr.bf16.mxu1 %v7378_v1 }
 0x4ee   : > { %v4589_v58 = vsel %vm768_vm6, %v4587_v61, %v4588_v21  ;;  %v7332_v61 = vld [vmem:[%s9403_s5 + $0x1c0] sm:$0xff]  }
 0x4ef   : > { %4450 = vmatmul.mubr.bf16.vlgmr.msra.gmra.mrb[4].mxu1 %v4316_v32  ;;  %v7320_v32 = vld [vmem:[%s9403_s5 + $0x160] sm:$0xff]  }
 0x4f0   : > { %6586 = vmatprep.mubr.msk.bf16.mxu1 %vm922_vm7, %v4319_v2  ;;  %4720 = vmatpush1.bf16.msra.mxu1 %v7316_v41  ;;  %v4563_v2 = vrot.slane %v4495_v56, 1  ;;  %v7327_v41 = vld [vmem:[%s9403_s5 + $0x198] sm:$0xff]   ;;  %v4574_v56 = vsel %vm768_vm6, %v4572_v47, %v4573_v48  ;;  %v4860_v47 = vrot.slane %v4795_v24, 2  ;;  %v4598_v48 = vsel %vm768_vm6, %v4596_v19, %v4597_v20 }
 0x4f1   : > { %4721 = vmatprep.subr.bf16.mxu1 %v7378_v1  ;;  %v4869_v19 = vrot.slane %v4802_v12, 2 }
 0x4f2   : > { %v4565_v31 = vsel %vm768_vm6, %v4563_v2, %v4564_v26  ;;  %v7328_v2 = vld [vmem:[%s9403_s5 + $0x1a0] sm:$0xff]   ;;  %v4519_v26 = vld [vmem:[#allocation2 + $0x108] sm:$0xfe] }
 0x4f3   : > { %v4599_v44 = vrot.slane %v4519_v26, 1 }
 0x4f4   : > { %4722 = vmatpush1.bf16.msra.mxu1 %v7317_v46  ;;  %v4566_v46 = vrot.slane %v4498_v36, 1  ;;  %v4590_v36 = vrot.slane %v4514_v13, 1 }
 0x4f5   : > { %4723 = vmatprep.subr.bf16.mxu1 %v7378_v1 }
 0x4f7   : > { %4458 = vmatmul.mubr.bf16.gmra.mrb[8].mxu1 %v4318_v59  ;;  %v4323_v59 = vpack.c.bf16 %v8988_v30, %v8859_v7  ;;  %v9004_v7 = vld [vmem:[#allocation2 + $0x100] sm:$0xff] }
 0x4f8   : > { %6587 = vmatprep.mubr.msk.bf16.mxu1 %vm922_vm7, %v4321_v49  ;;  %4724 = vmatpush1.bf16.msra.mxu1 %v7318_v18  ;;  %v4557_v49 = vrot.slane %v4491_v63, 1  ;;  %v4322_v22 = vpack.c.bf16 %v9004_v7, %v8874_v4  ;;  %v7324_v4 = vld [vmem:[%s9403_s5 + $0x180] sm:$0xff]   ;;  %v4567_v18 = vrot.slane %v4500_v37, 1  ;;  %v4512_v63 = vld [vmem:[#allocation2 + $0xd0] sm:$0x1]  ;;  %v4591_v37 = vrot.slane %v4516_v15, 1 }
 0x4f9   : > { %4725 = vmatprep.subr.bf16.mxu1 %v7378_v1  ;;  %v7337_v15 = vld [vmem:[%s9403_s5 + $0x1e8] sm:$0xff]  }
 0x4fa   : > { %v4568_v0 = vsel %vm768_vm6, %v4566_v46, %v4567_v18  ;;  %v7333_v18 = vld [vmem:[%s9403_s5 + $0x1c8] sm:$0xff]  }
 0x4fc   : > { %4726 = vmatpush1.bf16.msra.mxu1 %v7319_v29  ;;  %v4581_v29 = vrot.slane %v4507_v55, 1 }
 0x4fd   : > { %4727 = vmatprep.subr.bf16.mxu1 %v7378_v1 }
 0x4ff   : > { %4466 = vmatmul.mubr.bf16.gmra.mrb[12].mxu1 %v4320_v57  ;;  %v4559_v57 = vsel %vm768_vm6, %v4557_v49, %v4558_v34  ;;  %v4620_v49 = vpack.c.bf16 %v4574_v56, %v4568_v0  ;;  %v7334_v56 = vld [vmem:[%s9403_s5 + $0x1d0] sm:$0xff]  }
 0x500   : > { %6588 = vmatprep.mubr.msk.bf16.mxu1 %vm922_vm7, %v4323_v59  ;;  %4728 = vmatpush1.bf16.msra.mxu1 %v7320_v32  ;;  %v4619_v42 = vpack.c.bf16 %v4565_v31, %v4559_v57  ;;  %v4582_v32 = vrot.slane %v4509_v60, 1  ;;  %v4510_v59 = vld [vmem:[#allocation2 + $0xc0] sm:$0xfe]  ;;  %v4592_v60 = vsel %vm768_vm6, %v4590_v36, %v4591_v37  ;;  %v4794_v0 = vld [vmem:[#allocation2 + $0x30] sm:$0x3] }
 0x501   : > { %4729 = vmatprep.subr.bf16.mxu1 %v7378_v1  ;;  %v4506_v31 = vld [vmem:[#allocation2 + $0xa0] sm:$0xfe]  ;;  %v4584_v57 = vrot.slane %v4510_v59, 1  ;;  %v4624_v21 = vpack.c.bf16 %v4598_v48, %v4592_v60  ;;  %v4807_v59 = vld [vmem:[#allocation2 + $0x98] sm:$0x3]  ;;  %v7338_v37 = vld [vmem:[%s9403_s5 + $0x1f0] sm:$0xff]  }
 0x502   : > { %v4583_v34 = vsel %vm768_vm6, %v4581_v29, %v4582_v32  ;;  %v4578_v33 = vrot.slane %v4506_v31, 1  ;;  %v4796_v29 = vld [vmem:[#allocation2 + $0x40] sm:$0xfc]  ;;  %v4798_v32 = vld [vmem:[#allocation2 + $0x50] sm:$0x3]  ;;  %v4878_v31 = vrot.slane %v4807_v59, 2 }
 0x503   : > { %v4863_v26 = vrot.slane %v4798_v32, 2  ;;  %v4808_v60 = vld [vmem:[#allocation2 + $0xa0] sm:$0xfc] }
 0x504   : > { %4730 = vmatpush1.bf16.msra.mxu1 %v7321_v50  ;;  %v4521_v50 = vld [vmem:[#allocation2 + $0x118] sm:$0x1]  ;;  %v4880_v59 = vrot.slane %v4808_v60, 2  ;;  %v5109_v60 = vld [vmem:[#allocation2 + $0x128] sm:$0xff] }
 0x505   : > { %4731 = vmatprep.subr.bf16.mxu1 %v7378_v1 }
 0x507   : > { %4474 = vmatmul.mubr.bf16.gmra.mrb[16].mxu1 %v4322_v22  ;;  %v4623_v22 = vpack.c.bf16 %v4589_v58, %v4583_v34  ;;  %v4805_v58 = vld [vmem:[#allocation2 + $0x88] sm:$0xfc] }
 0x508   : > { %4732 = vmatpush1.bf16.msra.mxu1 %v7322_v14  ;;  %6619 = vmatprep.mubr.msk.bf16.mxu1 %vm922_vm7, %v4619_v42  ;;  %v4508_v14 = vld [vmem:[#allocation2 + $0xb0] sm:$0x1]  ;;  %v4585_v42 = vrot.slane %v4512_v63, 1  ;;  %v4792_v63 = vld [vmem:[#allocation2 + $0x20] sm:$0xfc]  ;;  %v4877_v34 = vrot.slane %v4805_v58, 2 }
 0x509   : > { %4733 = vmatprep.subr.bf16.mxu1 %v7378_v1  ;;  %v4579_v43 = vrot.slane %v4508_v14, 1  ;;  %v7335_v14 = vld [vmem:[%s9403_s5 + $0x1d8] sm:$0xff]  }
 0x50a   : > { %v4586_v45 = vsel %vm768_vm6, %v4584_v57, %v4585_v42  ;;  %v4857_v57 = vrot.slane %v4794_v0, 2  ;;  %v7339_v58 = vld [vmem:[%s9403_s5 + $0x1f8] sm:$0xff]  }
 0x50b   : > { %v4580_v9 = vsel %vm768_vm6, %v4578_v33, %v4579_v43  ;;  %v7336_v43 = vld [vmem:[%s9403_s5 + $0x1e0] sm:$0xff]  }
 0x50c   : > { %4734 = vmatpush1.bf16.msra.mxu1 %v7323_v5  ;;  %v4515_v5 = vld [vmem:[#allocation2 + $0xe8] sm:$0xfe]  ;;  %v4622_v3 = vpack.c.bf16 %v4586_v45, %v4580_v9 }
 0x50d   : > { %4735 = vmatprep.subr.bf16.mxu1 %v7378_v1  ;;  %v4593_v6 = vrot.slane %v4515_v5, 1 }
 0x50f   : > { %v4595_v54 = vsel %vm768_vm6, %v4593_v6, %v4594_v39  ;;  %v4813_v6 = vld [vmem:[#allocation2 + $0xc8] sm:$0xfc]  ;;  %v4815_v39 = vld [vmem:[#allocation2 + $0xd8] sm:$0x3] }
 0x510   : > { %4736 = vmatpush1.bf16.msra.mxu1 %v7324_v4  ;;  %v4600_v4 = vrot.slane %v4521_v50, 1  ;;  %v4801_v50 = vld [vmem:[#allocation2 + $0x68] sm:$0xfc]  ;;  %v4890_v13 = vrot.slane %v4815_v39, 2 }
 0x511   : > { %4737 = vmatprep.subr.bf16.mxu1 %v7378_v1  ;;  %v4871_v42 = vrot.slane %v4801_v50, 2  ;;  %v5095_v39 = vld [vmem:[#allocation2 + $0x48] sm:$0xff] }
 0x512   : > { %v4601_v53 = vsel %vm768_vm6, %v4599_v44, %v4600_v4  ;;  %v4879_v44 = vsel %vm1201_vm8, %v4877_v34, %v4878_v31  ;;  %v4804_v4 = vld [vmem:[#allocation2 + $0x80] sm:$0xfc]  ;;  %v4822_v34 = vld [vmem:[#allocation2 + $0x110] sm:$0x3] }
 0x513   : > { %v4625_v17 = vpack.c.bf16 %v4601_v53, %v4595_v54  ;;  %v4889_v54 = vrot.slane %v4813_v6, 2 }
 0x514   : > { %4738 = vmatpush1.bf16.msra.mxu1 %v7325_v10  ;;  %v7330_v10 = vld [vmem:[%s9403_s5 + $0x1b0] sm:$0xff]  }
 0x515   : > { %5021 = vmatprep.subr.bf16.mxu1 %v7378_v1 }
 0x517   : > { %4752 = vmatmul.mubr.bf16.vlgmr.msra.gmra.mrb[4].mxu1 %v4618_v27  ;;  %v4866_v27 = vrot.slane %v4799_v51, 2  ;;  %v4809_v51 = vld [vmem:[#allocation2 + $0xa8] sm:$0xfc] }
 0x518   : > { %6620 = vmatprep.mubr.msk.bf16.mxu1 %vm922_vm7, %v4621_v40  ;;  %5022 = vmatpush1.bf16.msra.mxu1 %v7326_v23  ;;  %v4793_v23 = vld [vmem:[#allocation2 + $0x28] sm:$0xfc]  ;;  %v4883_v20 = vrot.slane %v4809_v51, 2 }
 0x519   : > { %5023 = vmatprep.subr.bf16.mxu1 %v7378_v1  ;;  %v4859_v40 = vrot.slane %v4793_v23, 2  ;;  %v4867_v55 = vsel %vm1201_vm8, %v4865_v25, %v4866_v27  ;;  %v4891_v25 = vsel %vm1201_vm8, %v4889_v54, %v4890_v13  ;;  %v4812_v27 = vld [vmem:[#allocation2 + $0xc0] sm:$0xfc]  ;;  %v7345_v51 = vld [vmem:[%s9403_s5 + $0x228] sm:$0xff]  }
 0x51a   : > { %v5096_v54 = vld [vmem:[#allocation2 + $0x60] sm:$0xff]  ;;  %v5099_v13 = vld [vmem:[#allocation2 + $0x88] sm:$0xff] }
 0x51c   : > { %5024 = vmatpush1.bf16.msra.mxu1 %v7327_v41  ;;  %v4861_v41 = vsel %vm1201_vm8, %v4859_v40, %v4860_v47  ;;  %v4821_v40 = vld [vmem:[#allocation2 + $0x108] sm:$0xfc]  ;;  %v4823_v47 = vld [vmem:[#allocation2 + $0x118] sm:$0x3] }
 0x51d   : > { %5025 = vmatprep.subr.bf16.mxu1 %v7378_v1  ;;  %v4921_v46 = vpack.c.bf16 %v4867_v55, %v4861_v41  ;;  %v4886_v41 = vrot.slane %v4812_v27, 2  ;;  %v4901_v32 = vrot.slane %v4821_v40, 2  ;;  %v5103_v27 = vld [vmem:[#allocation2 + $0xc8] sm:$0xff] }
 0x51f   : > { %4760 = vmatmul.mubr.bf16.gmra.mrb[8].mxu1 %v4620_v49  ;;  %v4803_v49 = vld [vmem:[#allocation2 + $0x78] sm:$0x3] }
 0x520   : > { %6621 = vmatprep.mubr.msk.bf16.mxu1 %vm922_vm7, %v4623_v22  ;;  %5026 = vmatpush1.bf16.msra.mxu1 %v7328_v2  ;;  %v4862_v2 = vrot.slane %v4796_v29, 2  ;;  %v4856_v22 = vrot.slane %v4792_v63, 2  ;;  %v4872_v5 = vrot.slane %v4803_v49, 2  ;;  %v4819_v29 = vld [vmem:[#allocation2 + $0xf8] sm:$0x3] }
 0x521   : > { %5027 = vmatprep.subr.bf16.mxu1 %v7378_v1  ;;  %v4820_v49 = vld [vmem:[#allocation2 + $0x100] sm:$0xfc] }
 0x522   : > { %v4864_v35 = vsel %vm1201_vm8, %v4862_v2, %v4863_v26  ;;  %v4858_v33 = vsel %vm1201_vm8, %v4856_v22, %v4857_v57  ;;  %v4873_v53 = vsel %vm1201_vm8, %v4871_v42, %v4872_v5  ;;  %v4896_v2 = vrot.slane %v4819_v29, 2  ;;  %v4816_v42 = vld [vmem:[#allocation2 + $0xe0] sm:$0xfc]  ;;  %v4818_v5 = vld [vmem:[#allocation2 + $0xf0] sm:$0x3] }
 0x523   : > { %v4920_v45 = vpack.c.bf16 %v4864_v35, %v4858_v33  ;;  %v4923_v9 = vpack.c.bf16 %v4879_v44, %v4873_v53  ;;  %v4898_v44 = vrot.slane %v4820_v49, 2  ;;  %v4892_v33 = vrot.slane %v4816_v42, 2  ;;  %v5290_v42 = vld [vmem:[#allocation2 + $0x70] sm:$0x1] }
 0x524   : > { %5028 = vmatpush1.bf16.msra.mxu1 %v7329_v16  ;;  %v4806_v16 = vld [vmem:[#allocation2 + $0x90] sm:$0x3] }
 0x525   : > { %5029 = vmatprep.subr.bf16.mxu1 %v7378_v1  ;;  %v4875_v11 = vrot.slane %v4806_v16, 2  ;;  %v7341_v16 = vld [vmem:[%s9403_s5 + $0x208] sm:$0xff]  }
 0x527   : > { %4768 = vmatmul.mubr.bf16.gmra.mrb[12].mxu1 %v4622_v3  ;;  %v4811_v3 = vld [vmem:[#allocation2 + $0xb8] sm:$0x3] }
 0x528   : > { %6622 = vmatprep.mubr.msk.bf16.mxu1 %vm922_vm7, %v4625_v17  ;;  %5030 = vmatpush1.bf16.msra.mxu1 %v7330_v10  ;;  %v4874_v10 = vrot.slane %v4804_v4, 2  ;;  %v4868_v17 = vrot.slane %v4800_v8, 2  ;;  %v4884_v23 = vrot.slane %v4811_v3, 2  ;;  %v4899_v4 = vrot.slane %v4822_v34, 2  ;;  %v7342_v8 = vld [vmem:[%s9403_s5 + $0x210] sm:$0xff]   ;;  %v5094_v3 = vld [vmem:[#allocation2 + $0x40] sm:$0xff] }
 0x529   : > { %5031 = vmatprep.subr.bf16.mxu1 %v7378_v1 }
 0x52a   : > { %v4876_v24 = vsel %vm1201_vm8, %v4874_v10, %v4875_v11  ;;  %v4870_v36 = vsel %vm1201_vm8, %v4868_v17, %v4869_v19  ;;  %v4885_v55 = vsel %vm1201_vm8, %v4883_v20, %v4884_v23  ;;  %v4900_v6 = vsel %vm1201_vm8, %v4898_v44, %v4899_v4  ;;  %v7343_v10 = vld [vmem:[%s9403_s5 + $0x218] sm:$0xff]   ;;  %v7344_v11 = vld [vmem:[%s9403_s5 + $0x220] sm:$0xff]   ;;  %v7346_v17 = vld [vmem:[%s9403_s5 + $0x230] sm:$0xff]  }
 0x52b   : > { %v4922_v48 = vpack.c.bf16 %v4876_v24, %v4870_v36  ;;  %v5110_v19 = vpack.c.bf16 %v5096_v54, %v5094_v3  ;;  %v7347_v23 = vld [vmem:[%s9403_s5 + $0x238] sm:$0xff]   ;;  %v5098_v24 = vld [vmem:[#allocation2 + $0x80] sm:$0xff]  ;;  %v5297_v44 = vld [vmem:[#allocation2 + $0xa8] sm:$0xfe] }
 0x52c   : > { %5032 = vmatpush1.bf16.msra.mxu1 %v7331_v28  ;;  %v4814_v28 = vld [vmem:[#allocation2 + $0xd0] sm:$0x3]  ;;  %v7348_v36 = vld [vmem:[%s9403_s5 + $0x240] sm:$0xff]   ;;  %v5299_v4 = vld [vmem:[#allocation2 + $0xb8] sm:$0x1] }
 0x52d   : > { %5033 = vmatprep.subr.bf16.mxu1 %v7378_v1  ;;  %v5296_v3 = vld [vmem:[#allocation2 + $0xa0] sm:$0xfe] }
 0x52f   : > { %4776 = vmatmul.mubr.bf16.gmra.mrb[16].mxu1 %v4624_v21  ;;  %v4925_v21 = vpack.c.bf16 %v4891_v25, %v4885_v55  ;;  %v5100_v25 = vld [vmem:[#allocation2 + $0xa0] sm:$0xff] }
 0x530   : > { %5034 = vmatpush1.bf16.msra.mxu1 %v7332_v61  ;;  %6653 = vmatprep.mubr.msk.bf16.mxu1 %vm922_vm7, %v4921_v46  ;;  %v4810_v61 = vld [vmem:[#allocation2 + $0xb0] sm:$0x3]  ;;  %v4887_v46 = vrot.slane %v4814_v28, 2  ;;  %v5105_v28 = vld [vmem:[#allocation2 + $0xe8] sm:$0xff]  ;;  %v5104_v55 = vld [vmem:[#allocation2 + $0xe0] sm:$0xff] }
 0x531   : > { %5035 = vmatprep.subr.bf16.mxu1 %v7378_v1  ;;  %v4881_v63 = vrot.slane %v4810_v61, 2  ;;  %v5115_v40 = vpack.c.bf16 %v5105_v28, %v5103_v27  ;;  %v5285_v61 = vld [vmem:[#allocation2 + $0x48] sm:$0xfe] }
 0x532   : > { %v4888_v26 = vsel %vm1201_vm8, %v4886_v41, %v4887_v46  ;;  %v7350_v41 = vld [vmem:[%s9403_s5 + $0x250] sm:$0xff]   ;;  %v5289_v46 = vld [vmem:[#allocation2 + $0x68] sm:$0xfe] }
 0x533   : > { %v4882_v31 = vsel %vm1201_vm8, %v4880_v59, %v4881_v63  ;;  %v5357_v59 = vrot.slane %v5289_v46, 1  ;;  %v5300_v46 = vld [vmem:[#allocation2 + $0xc0] sm:$0xfe] }
 0x534   : > { %5036 = vmatpush1.bf16.msra.mxu1 %v7333_v18  ;;  %v4817_v18 = vld [vmem:[#allocation2 + $0xe8] sm:$0xfc]  ;;  %v4924_v22 = vpack.c.bf16 %v4888_v26, %v4882_v31 }
 0x535   : > { %5037 = vmatprep.subr.bf16.mxu1 %v7378_v1  ;;  %v4895_v0 = vrot.slane %v4817_v18, 2  ;;  %v5291_v18 = vld [vmem:[#allocation2 + $0x78] sm:$0x1]  ;;  %v7353_v31 = vld [vmem:[%s9403_s5 + $0x268] sm:$0xff]  }
 0x536   : > { %v5358_v63 = vrot.slane %v5291_v18, 1  ;;  %v5302_v18 = vld [vmem:[#allocation2 + $0xd0] sm:$0x1] }
 0x537   : > { %v4897_v57 = vsel %vm1201_vm8, %v4895_v0, %v4896_v2  ;;  %v7351_v0 = vld [vmem:[%s9403_s5 + $0x258] sm:$0xff]   ;;  %v5108_v2 = vld [vmem:[#allocation2 + $0x120] sm:$0xff] }
 0x538   : > { %5038 = vmatpush1.bf16.msra.mxu1 %v7334_v56  ;;  %v4902_v56 = vrot.slane %v4823_v47, 2  ;;  %v7349_v47 = vld [vmem:[%s9403_s5 + $0x248] sm:$0xff]   ;;  %v5116_v49 = vpack.c.bf16 %v5108_v2, %v9004_v7  ;;  %v7354_v7 = vld [vmem:[%s9403_s5 + $0x270] sm:$0xff]  }
 0x539   : > { %5039 = vmatprep.subr.bf16.mxu1 %v7378_v1  ;;  %v5313_v2 = vld [vmem:[#allocation2 + $0x128] sm:$0xfe] }
 0x53a   : > { %v4903_v50 = vsel %vm1201_vm8, %v4901_v32, %v4902_v56  ;;  %v5117_v32 = vpack.c.bf16 %v5109_v60, %v8988_v30  ;;  %v5351_v56 = vrot.slane %v5285_v61, 1  ;;  %v7352_v30 = vld [vmem:[%s9403_s5 + $0x260] sm:$0xff]   ;;  %v7357_v61 = vld [vmem:[%s9403_s5 + $0x288] sm:$0xff]  }
 0x53b   : > { %v4927_v35 = vpack.c.bf16 %v4903_v50, %v4897_v57  ;;  %v5359_v50 = vsel %vm768_vm6, %v5357_v59, %v5358_v63  ;;  %v5288_v57 = vld [vmem:[#allocation2 + $0x60] sm:$0xfe]  ;;  %v5309_v59 = vld [vmem:[#allocation2 + $0x108] sm:$0xfe]  ;;  %v5311_v63 = vld [vmem:[#allocation2 + $0x118] sm:$0x1] }
 0x53c   : > { %5040 = vmatpush1.bf16.msra.mxu1 %v7335_v14  ;;  %v7340_v14 = vld [vmem:[%s9403_s5 + $0x200] sm:$0xff]  }
 0x53d   : > { %5211 = vmatprep.subr.bf16.mxu1 %v7378_v1 }
 0x53f   : > { %5054 = vmatmul.mubr.bf16.vlgmr.msra.gmra.mrb[4].mxu1 %v4920_v45  ;;  %v5097_v45 = vld [vmem:[#allocation2 + $0x68] sm:$0xff] }
 0x540   : > { %6654 = vmatprep.mubr.msk.bf16.mxu1 %vm922_vm7, %v4923_v9  ;;  %5212 = vmatpush1.bf16.msra.mxu1 %v7336_v43  ;;  %v4893_v43 = vrot.slane %v4818_v5, 2  ;;  %v5111_v9 = vpack.c.bf16 %v5097_v45, %v5095_v39  ;;  %v5293_v5 = vld [vmem:[#allocation2 + $0x88] sm:$0xfe] }
 0x541   : > { %5213 = vmatprep.subr.bf16.mxu1 %v7378_v1  ;;  %v5363_v39 = vrot.slane %v5293_v5, 1 }
 0x542   : > { %v4894_v53 = vsel %vm1201_vm8, %v4892_v33, %v4893_v43  ;;  %v5354_v43 = vrot.slane %v5288_v57, 1  ;;  %v5388_v57 = vrot.slane %v5311_v63, 1 }
 0x543   : > { %v4926_v12 = vpack.c.bf16 %v4900_v6, %v4894_v53  ;;  %v5355_v6 = vrot.slane %v5290_v42, 1  ;;  %v5369_v53 = vrot.slane %v5297_v44, 1  ;;  %v5393_v42 = vrot.slane %v5313_v2, 1 }
 0x544   : > { %5214 = vmatpush1.bf16.msra.mxu1 %v7337_v15  ;;  %v5101_v15 = vld [vmem:[#allocation2 + $0xa8] sm:$0xff] }
 0x545   : > { %5215 = vmatprep.subr.bf16.mxu1 %v7378_v1  ;;  %v5113_v20 = vpack.c.bf16 %v5101_v15, %v5099_v13  ;;  %v5298_v15 = vld [vmem:[#allocation2 + $0xb0] sm:$0x1] }
 0x547   : > { %5062 = vmatmul.mubr.bf16.gmra.mrb[8].mxu1 %v4922_v48  ;;  %v5102_v48 = vld [vmem:[#allocation2 + $0xc0] sm:$0xff] }
 0x548   : > { %6655 = vmatprep.mubr.msk.bf16.mxu1 %vm922_vm7, %v4925_v21  ;;  %5216 = vmatpush1.bf16.msra.mxu1 %v7338_v37  ;;  %v5112_v37 = vpack.c.bf16 %v5100_v25, %v5098_v24  ;;  %v5287_v21 = vld [vmem:[#allocation2 + $0x58] sm:$0x1]  ;;  %v5114_v29 = vpack.c.bf16 %v5104_v55, %v5102_v48 }
 0x549   : > { %5217 = vmatprep.subr.bf16.mxu1 %v7378_v1  ;;  %v5307_v24 = vld [vmem:[#allocation2 + $0xf8] sm:$0x1] }
 0x54a   : > { %v5382_v60 = vrot.slane %v5307_v24, 1 }
 0x54c   : > { %5218 = vmatpush1.bf16.msra.mxu1 %v7339_v58  ;;  %v5352_v58 = vrot.slane %v5287_v21, 1 }
 0x54d   : > { %5219 = vmatprep.subr.bf16.mxu1 %v7378_v1 }
 0x54e   : > { %v5353_v26 = vsel %vm768_vm6, %v5351_v56, %v5352_v58  ;;  %v5306_v58 = vld [vmem:[#allocation2 + $0xf0] sm:$0x1] }
 0x54f   : > { %5070 = vmatmul.mubr.bf16.gmra.mrb[12].mxu1 %v4924_v22  ;;  %v5413_v34 = vpack.c.bf16 %v5359_v50, %v5353_v26  ;;  %v5286_v22 = vld [vmem:[#allocation2 + $0x50] sm:$0x1]  ;;  %v5315_v26 = vld [vmem:[#allocation2 + $0x138] sm:$0x1] }
 0x550   : > { %6656 = vmatprep.mubr.msk.bf16.mxu1 %vm922_vm7, %v4927_v35  ;;  %5220 = vmatpush1.bf16.msra.mxu1 %v7340_v14  ;;  %v5284_v14 = vld [vmem:[#allocation2 + $0x40] sm:$0xfe]  ;;  %v5295_v35 = vld [vmem:[#allocation2 + $0x98] sm:$0x1]  ;;  %v5349_v33 = vrot.slane %v5286_v22, 1  ;;  %v5387_v22 = vrot.slane %v5309_v59, 1 }
 0x551   : > { %5221 = vmatprep.subr.bf16.mxu1 %v7378_v1  ;;  %v5364_v45 = vrot.slane %v5295_v35, 1  ;;  %v5394_v5 = vrot.slane %v5315_v26, 1  ;;  %v7359_v35 = vld [vmem:[%s9403_s5 + $0x298] sm:$0xff]  }
 0x553   : > { %v5365_v54 = vsel %vm768_vm6, %v5363_v39, %v5364_v45  ;;  %v5314_v39 = vld [vmem:[#allocation2 + $0x130] sm:$0x1]  ;;  %v5587_v45 = vld [vmem:[#allocation2 + $0x48] sm:$0xfc] }
 0x554   : > { %5222 = vmatpush1.bf16.msra.mxu1 %v7341_v16  ;;  %v5348_v16 = vrot.slane %v5284_v14, 1  ;;  %v5379_v14 = vrot.slane %v5306_v58, 1 }
 0x555   : > { %5223 = vmatprep.subr.bf16.mxu1 %v7378_v1 }
 0x557   : > { %5078 = vmatmul.mubr.bf16.gmra.mrb[16].mxu1 %v4926_v12  ;;  %v7355_v12 = vld [vmem:[%s9403_s5 + $0x278] sm:$0xff]  }
 0x558   : > { %5224 = vmatpush1.bf16.msra.mxu1 %v7342_v8  ;;  %6687 = vmatprep.mubr.msk.bf16.mxu1 %vm922_vm7, %v5111_v9  ;;  %v5370_v8 = vrot.slane %v5299_v4, 1  ;;  %v5350_v9 = vsel %vm768_vm6, %v5348_v16, %v5349_v33  ;;  %v5308_v4 = vld [vmem:[#allocation2 + $0x100] sm:$0xfe]  ;;  %v5310_v16 = vld [vmem:[#allocation2 + $0x110] sm:$0x1] }
 0x559   : > { %5225 = vmatprep.subr.bf16.mxu1 %v7378_v1  ;;  %v5312_v33 = vld [vmem:[#allocation2 + $0x120] sm:$0xfe] }
 0x55a   : > { %v5371_v13 = vsel %vm768_vm6, %v5369_v53, %v5370_v8  ;;  %v5589_v53 = vld [vmem:[#allocation2 + $0x58] sm:$0x3]  ;;  %v7360_v8 = vld [vmem:[%s9403_s5 + $0x2a0] sm:$0xff]  }
 0x55b   : > { %v5415_v28 = vpack.c.bf16 %v5371_v13, %v5365_v54  ;;  %v5390_v54 = vrot.slane %v5312_v33, 1  ;;  %v5391_v13 = vrot.slane %v5314_v39, 1 }
 0x55c   : > { %5226 = vmatpush1.bf16.msra.mxu1 %v7343_v10  ;;  %v5356_v10 = vsel %vm768_vm6, %v5354_v43, %v5355_v6  ;;  %v5389_v43 = vsel %vm768_vm6, %v5387_v22, %v5388_v57  ;;  %v5395_v6 = vsel %vm768_vm6, %v5393_v42, %v5394_v5  ;;  %v5598_v57 = vld [vmem:[#allocation2 + $0xa0] sm:$0xfc]  ;;  %v5600_v42 = vld [vmem:[#allocation2 + $0xb0] sm:$0x3]  ;;  %v5603_v5 = vld [vmem:[#allocation2 + $0xc8] sm:$0xfc] }
 0x55d   : > { %5227 = vmatprep.subr.bf16.mxu1 %v7378_v1  ;;  %v5412_v25 = vpack.c.bf16 %v5356_v10, %v5350_v9  ;;  %v5593_v9 = vld [vmem:[#allocation2 + $0x78] sm:$0x3]  ;;  %v5677_v39 = vrot.slane %v5603_v5, 2 }
 0x560   : > { %5228 = vmatpush1.bf16.msra.mxu1 %v7344_v11  ;;  %v5292_v11 = vld [vmem:[#allocation2 + $0x80] sm:$0xfe] }
 0x561   : > { %5229 = vmatprep.subr.bf16.mxu1 %v7378_v1  ;;  %v5360_v27 = vrot.slane %v5292_v11, 1  ;;  %v5384_v11 = vrot.slane %v5308_v4, 1 }
 0x564   : > { %5230 = vmatpush1.bf16.msra.mxu1 %v7345_v51  ;;  %v5294_v51 = vld [vmem:[#allocation2 + $0x90] sm:$0x1] }
 0x565   : > { %5513 = vmatprep.subr.bf16.mxu1 %v7378_v1 }
 0x567   : > { %5244 = vmatmul.mubr.bf16.vlgmr.msra.gmra.mrb[4].mxu1 %v5110_v19  ;;  %v5303_v19 = vld [vmem:[#allocation2 + $0xd8] sm:$0x1] }
 0x568   : > { %6688 = vmatprep.mubr.msk.bf16.mxu1 %vm922_vm7, %v5113_v20  ;;  %5514 = vmatpush1.bf16.msra.mxu1 %v7346_v17  ;;  %v5301_v17 = vld [vmem:[#allocation2 + $0xc8] sm:$0xfe]  ;;  %v7356_v20 = vld [vmem:[%s9403_s5 + $0x280] sm:$0xff]   ;;  %v5376_v48 = vrot.slane %v5303_v19, 1 }
 0x569   : > { %5515 = vmatprep.subr.bf16.mxu1 %v7378_v1 }
 0x56c   : > { %5516 = vmatpush1.bf16.msra.mxu1 %v7347_v23  ;;  %v5305_v23 = vld [vmem:[#allocation2 + $0xe8] sm:$0xfe] }
 0x56d   : > { %5517 = vmatprep.subr.bf16.mxu1 %v7378_v1  ;;  %v5381_v55 = vrot.slane %v5305_v23, 1  ;;  %v7361_v23 = vld [vmem:[%s9403_s5 + $0x2a8] sm:$0xff]  }
 0x56f   : > { %5252 = vmatmul.mubr.bf16.gmra.mrb[8].mxu1 %v5112_v37  ;;  %v5366_v37 = vrot.slane %v5296_v3, 1  ;;  %v5383_v56 = vsel %vm768_vm6, %v5381_v55, %v5382_v60  ;;  %v5385_v3 = vrot.slane %v5310_v16, 1  ;;  %v5588_v55 = vld [vmem:[#allocation2 + $0x50] sm:$0x3]  ;;  %v5590_v60 = vld [vmem:[#allocation2 + $0x60] sm:$0xfc] }
 0x570   : > { %6689 = vmatprep.mubr.msk.bf16.mxu1 %vm922_vm7, %v5115_v40  ;;  %5518 = vmatpush1.bf16.msra.mxu1 %v7348_v36  ;;  %v5361_v36 = vrot.slane %v5294_v51, 1  ;;  %v5367_v40 = vrot.slane %v5298_v15, 1  ;;  %v5419_v51 = vpack.c.bf16 %v5395_v6, %v5389_v43  ;;  %v5653_v15 = vrot.slane %v5587_v45, 2 }
 0x571   : > { %5519 = vmatprep.subr.bf16.mxu1 %v7378_v1  ;;  %v5386_v24 = vsel %vm768_vm6, %v5384_v11, %v5385_v3  ;;  %v5656_v58 = vrot.slane %v5590_v60, 2  ;;  %v5668_v43 = vrot.slane %v5598_v57, 2  ;;  %v5669_v6 = vrot.slane %v5600_v42, 2  ;;  %v5604_v11 = vld [vmem:[#allocation2 + $0xd0] sm:$0x3]  ;;  %v5938_v42 = vld [vmem:[%s9407_s9 + $0x28] sm:$0xff] }
 0x572   : > { %v5362_v21 = vsel %vm768_vm6, %v5360_v27, %v5361_v36  ;;  %v7362_v36 = vld [vmem:[%s9403_s5 + $0x2b0] sm:$0xff]  }
 0x574   : > { %5520 = vmatpush1.bf16.msra.mxu1 %v7349_v47  ;;  %v5375_v47 = vrot.slane %v5301_v17, 1  ;;  %v5654_v17 = vrot.slane %v5589_v53, 2 }
 0x575   : > { %5521 = vmatprep.subr.bf16.mxu1 %v7378_v1 }
 0x576   : > { %v5655_v27 = vsel %vm1201_vm8, %v5653_v15, %v5654_v17  ;;  %v5611_v15 = vld [vmem:[#allocation2 + $0x108] sm:$0xfc]  ;;  %v5613_v17 = vld [vmem:[#allocation2 + $0x118] sm:$0x3] }
 0x577   : > { %5260 = vmatmul.mubr.bf16.gmra.mrb[12].mxu1 %v5114_v29  ;;  %v5304_v29 = vld [vmem:[#allocation2 + $0xe0] sm:$0xfe] }
 0x578   : > { %6690 = vmatprep.mubr.msk.bf16.mxu1 %vm922_vm7, %v5117_v32  ;;  %5522 = vmatpush1.bf16.msra.mxu1 %v7350_v41  ;;  %v5368_v41 = vsel %vm768_vm6, %v5366_v37, %v5367_v40  ;;  %v5377_v32 = vsel %vm768_vm6, %v5375_v47, %v5376_v48  ;;  %v7363_v47 = vld [vmem:[%s9403_s5 + $0x2b8] sm:$0xff]   ;;  %v5586_v48 = vld [vmem:[#allocation2 + $0x40] sm:$0xfc] }
 0x579   : > { %5523 = vmatprep.subr.bf16.mxu1 %v7378_v1  ;;  %v5414_v50 = vpack.c.bf16 %v5368_v41, %v5362_v21  ;;  %v5595_v21 = vld [vmem:[#allocation2 + $0x88] sm:$0xfc]  ;;  %v5597_v41 = vld [vmem:[#allocation2 + $0x98] sm:$0x3] }
 0x57a   : > { %v5665_v63 = vrot.slane %v5595_v21, 2 }
 0x57c   : > { %5524 = vmatpush1.bf16.msra.mxu1 %v7351_v0  ;;  %v7358_v0 = vld [vmem:[%s9403_s5 + $0x290] sm:$0xff]  }
 0x57d   : > { %5525 = vmatprep.subr.bf16.mxu1 %v7378_v1 }
 0x57f   : > { %5268 = vmatmul.mubr.bf16.gmra.mrb[16].mxu1 %v5116_v49  ;;  %v5417_v49 = vpack.c.bf16 %v5383_v56, %v5377_v32  ;;  %v5650_v32 = vrot.slane %v5586_v48, 2  ;;  %v5651_v56 = vrot.slane %v5588_v55, 2 }
 0x580   : > { %5526 = vmatpush1.bf16.msra.mxu1 %v7352_v30  ;;  %6721 = vmatprep.mubr.msk.bf16.mxu1 %vm922_vm7, %v5413_v34  ;;  %v5372_v30 = vrot.slane %v5300_v46, 1  ;;  %v5373_v34 = vrot.slane %v5302_v18, 1  ;;  %v7364_v46 = vld [vmem:[%s9403_s5 + $0x2c0] sm:$0xff]   ;;  %v5599_v18 = vld [vmem:[#allocation2 + $0xa8] sm:$0xfc] }
 0x581   : > { %5527 = vmatprep.subr.bf16.mxu1 %v7378_v1  ;;  %v5671_v2 = vrot.slane %v5599_v18, 2  ;;  %v5614_v18 = vld [vmem:[#allocation2 + $0x120] sm:$0xfc] }
 0x584   : > { %5528 = vmatpush1.bf16.msra.mxu1 %v7353_v31  ;;  %v5378_v31 = vrot.slane %v5304_v29, 1  ;;  %v5601_v29 = vld [vmem:[#allocation2 + $0xb8] sm:$0x3] }
 0x585   : > { %5529 = vmatprep.subr.bf16.mxu1 %v7378_v1  ;;  %v5672_v26 = vrot.slane %v5601_v29, 2  ;;  %v5616_v29 = vld [vmem:[#allocation2 + $0x130] sm:$0x3] }
 0x586   : > { %v5380_v44 = vsel %vm768_vm6, %v5378_v31, %v5379_v14  ;;  %v5596_v31 = vld [vmem:[#allocation2 + $0x90] sm:$0x3] }
 0x587   : > { %v5673_v22 = vsel %vm1201_vm8, %v5671_v2, %v5672_v26  ;;  %v5663_v33 = vrot.slane %v5596_v31, 2  ;;  %v5935_v31 = vld [vmem:[%s9407_s9 + $0x10] sm:$0xff] }
 0x588   : > { %5530 = vmatpush1.bf16.msra.mxu1 %v7354_v7  ;;  %v5374_v7 = vsel %vm768_vm6, %v5372_v30, %v5373_v34  ;;  %v5652_v30 = vsel %vm1201_vm8, %v5650_v32, %v5651_v56  ;;  %v5594_v34 = vld [vmem:[#allocation2 + $0x80] sm:$0xfc] }
 0x589   : > { %5531 = vmatprep.subr.bf16.mxu1 %v7378_v1  ;;  %v5416_v10 = vpack.c.bf16 %v5380_v44, %v5374_v7  ;;  %v5607_v7 = vld [vmem:[#allocation2 + $0xe8] sm:$0xfc]  ;;  %v5609_v44 = vld [vmem:[#allocation2 + $0xf8] sm:$0x3]  ;;  %v5662_v16 = vrot.slane %v5594_v34, 2 }
 0x58a   : > { %v5683_v53 = vrot.slane %v5607_v7, 2  ;;  %v5940_v7 = vld [vmem:[%s9407_s9 + $0x38] sm:$0xff] }
 0x58c   : > { %5532 = vmatpush1.bf16.msra.mxu1 %v7355_v12  ;;  %v5591_v12 = vld [vmem:[#allocation2 + $0x68] sm:$0xfc] }
 0x58d   : > { %5815 = vmatprep.subr.bf16.mxu1 %v7378_v1  ;;  %v5659_v19 = vrot.slane %v5591_v12, 2  ;;  %v5664_v12 = vsel %vm1201_vm8, %v5662_v16, %v5663_v33  ;;  %v5942_v16 = vld [vmem:[%s9407_s9 + $0x48] sm:$0xff]  ;;  %v5943_v33 = vld [vmem:[%s9407_s9 + $0x50] sm:$0xff] }
 0x58f   : > { %5546 = vmatmul.mubr.bf16.vlgmr.msra.gmra.mrb[4].mxu1 %v5412_v25  ;;  %v5392_v25 = vsel %vm768_vm6, %v5390_v54, %v5391_v13  ;;  %v5606_v54 = vld [vmem:[#allocation2 + $0xe0] sm:$0xfc]  ;;  %v5608_v13 = vld [vmem:[#allocation2 + $0xf0] sm:$0x3] }
 0x590   : > { %6722 = vmatprep.mubr.msk.bf16.mxu1 %vm922_vm7, %v5415_v28  ;;  %5816 = vmatpush1.bf16.msra.mxu1 %v7356_v20  ;;  %v5660_v20 = vrot.slane %v5593_v9, 2  ;;  %v5418_v37 = vpack.c.bf16 %v5392_v25, %v5386_v24  ;;  %v5670_v9 = vsel %vm1201_vm8, %v5668_v43, %v5669_v6  ;;  %v5944_v43 = vld [vmem:[%s9407_s9 + $0x58] sm:$0xff] }
 0x591   : > { %5817 = vmatprep.subr.bf16.mxu1 %v7378_v1  ;;  %v6907_v6 = vpack.c.bf16 %v5944_v43, %v5943_v33 }
 0x592   : > { %v5661_v28 = vsel %vm1201_vm8, %v5659_v19, %v5660_v20  ;;  %v5615_v19 = vld [vmem:[#allocation2 + $0x128] sm:$0xfc]  ;;  %v5617_v20 = vld [vmem:[#allocation2 + $0x138] sm:$0x3] }
 0x593   : > { %v5715_v40 = vpack.c.bf16 %v5661_v28, %v5655_v27  ;;  %v5675_v27 = vrot.slane %v5604_v11, 2  ;;  %v5680_v28 = vrot.slane %v5606_v54, 2  ;;  %v5696_v48 = vrot.slane %v5617_v20, 2 }
 0x594   : > { %5818 = vmatpush1.bf16.msra.mxu1 %v7357_v61  ;;  %v5592_v61 = vld [vmem:[#allocation2 + $0x70] sm:$0x3] }
 0x595   : > { %5819 = vmatprep.subr.bf16.mxu1 %v7378_v1  ;;  %v5657_v59 = vrot.slane %v5592_v61, 2  ;;  %v5610_v61 = vld [vmem:[#allocation2 + $0x100] sm:$0xfc] }
 0x596   : > { %v5686_v56 = vrot.slane %v5610_v61, 2 }
 0x597   : > { %5554 = vmatmul.mubr.bf16.gmra.mrb[8].mxu1 %v5414_v50  ;;  %v7365_v50 = vld [vmem:[%s9403_s5 + $0x2c8] sm:$0xff]  }
 0x598   : > { %6723 = vmatprep.mubr.msk.bf16.mxu1 %vm922_vm7, %v5417_v49  ;;  %5820 = vmatpush1.bf16.msra.mxu1 %v7358_v0  ;;  %v5666_v0 = vrot.slane %v5597_v41, 2  ;;  %v5658_v49 = vsel %vm1201_vm8, %v5656_v58, %v5657_v59 }
 0x599   : > { %5821 = vmatprep.subr.bf16.mxu1 %v7378_v1  ;;  %v5714_v4 = vpack.c.bf16 %v5658_v49, %v5652_v30  ;;  %v5933_v30 = vld [vmem:[%s9407_s9] sm:$0xff]  ;;  %v5934_v49 = vld [vmem:[%s9407_s9 + $0x8] sm:$0xff] }
 0x59a   : > { %v5667_v14 = vsel %vm1201_vm8, %v5665_v63, %v5666_v0  ;;  %v5692_v63 = vrot.slane %v5614_v18, 2  ;;  %v5693_v0 = vrot.slane %v5616_v29, 2  ;;  %v6892_v34 = vpack.c.bf16 %v5934_v49, %v5933_v30 }
 0x59c   : > { %5822 = vmatpush1.bf16.msra.mxu1 %v7359_v35  ;;  %v5605_v35 = vld [vmem:[#allocation2 + $0xd8] sm:$0x3]  ;;  %v5694_v26 = vsel %vm1201_vm8, %v5692_v63, %v5693_v0  ;;  %6893 = vmatpush3.bf16.msra.mxu0 %v6892_v34 }
 0x59d   : > { %5823 = vmatprep.subr.bf16.mxu1 %v7378_v1  ;;  %v5678_v45 = vrot.slane %v5605_v35, 2  ;;  %6894 = vmatprep.subr.bf16.mxu0 %v7381_v62  ;;  %v5939_v35 = vld [vmem:[%s9407_s9 + $0x30] sm:$0xff] }
 0x59f   : > { %5562 = vmatmul.mubr.bf16.gmra.mrb[12].mxu1 %v5416_v10  ;;  %v5602_v10 = vld [vmem:[#allocation2 + $0xc0] sm:$0xfc] }
 0x5a0   : > { %6724 = vmatprep.mubr.msk.bf16.mxu1 %vm922_vm7, %v5419_v51  ;;  %5824 = vmatpush1.bf16.msra.mxu1 %v7360_v8  ;;  %v5684_v8 = vrot.slane %v5609_v44, 2  ;;  %v5679_v51 = vsel %vm1201_vm8, %v5677_v39, %v5678_v45  ;;  %v5674_v24 = vrot.slane %v5602_v10, 2  ;;  %v6901_v44 = vpack.c.bf16 %v5940_v7, %v5939_v35  ;;  %v5945_v39 = vld [vmem:[%s9407_s9 + $0x60] sm:$0xff]  ;;  %v5946_v45 = vld [vmem:[%s9407_s9 + $0x68] sm:$0xff] }
 0x5a1   : > { %5825 = vmatprep.subr.bf16.mxu1 %v7378_v1 }
 0x5a2   : > { %v5685_v3 = vsel %vm1201_vm8, %v5683_v53, %v5684_v8  ;;  %v5676_v55 = vsel %vm1201_vm8, %v5674_v24, %v5675_v27  ;;  %v6910_v53 = vpack.c.bf16 %v5946_v45, %v5945_v39  ;;  %v5947_v8 = vld [vmem:[%s9407_s9 + $0x70] sm:$0xff] }
 0x5a3   : > { %v5719_v25 = vpack.c.bf16 %v5685_v3, %v5679_v51 }
 0x5a4   : > { %5826 = vmatpush1.bf16.msra.mxu1 %v7361_v23  ;;  %v5716_v23 = vpack.c.bf16 %v5670_v9, %v5664_v12  ;;  %v5948_v12 = vld [vmem:[%s9407_s9 + $0x78] sm:$0xff] }
 0x5a5   : > { %5827 = vmatprep.subr.bf16.mxu1 %v7378_v1  ;;  %v6913_v9 = vpack.c.bf16 %v5948_v12, %v5947_v8 }
 0x5a7   : > { %5570 = vmatmul.mubr.bf16.gmra.mrb[16].mxu1 %v5418_v37  ;;  %v5689_v37 = vrot.slane %v5611_v15, 2 }
 0x5a8   : > { %5828 = vmatpush1.bf16.msra.mxu1 %v7362_v36  ;;  %6755 = vmatprep.mubr.msk.bf16.mxu1 %vm922_vm7, %v5715_v40  ;;  %v5681_v36 = vrot.slane %v5608_v13, 2  ;;  %v5690_v40 = vrot.slane %v5613_v17, 2 }
 0x5a9   : > { %5829 = vmatprep.subr.bf16.mxu1 %v7378_v1 }
 0x5aa   : > { %v5682_v60 = vsel %vm1201_vm8, %v5680_v28, %v5681_v36  ;;  %v5691_v21 = vsel %vm1201_vm8, %v5689_v37, %v5690_v40 }
 0x5ab   : > { %v5718_v32 = vpack.c.bf16 %v5682_v60, %v5676_v55 }
 0x5ac   : > { %5830 = vmatpush1.bf16.msra.mxu1 %v7363_v47  ;;  %v5695_v47 = vrot.slane %v5615_v19, 2 }
 0x5ad   : > { %5831 = vmatprep.subr.bf16.mxu1 %v7378_v1 }
 0x5ae   : > { %v5697_v41 = vsel %vm1201_vm8, %v5695_v47, %v5696_v48 }
 0x5af   : > { %v5721_v58 = vpack.c.bf16 %v5697_v41, %v5691_v21 }
 0x5b0   : > { %5832 = vmatpush1.bf16.msra.mxu1 %v7364_v46  ;;  %v5612_v46 = vld [vmem:[#allocation2 + $0x110] sm:$0x3] }
 0x5b1   : > { %5833 = vmatprep.subr.bf16.mxu1 %v7378_v1  ;;  %v5717_v1 = vpack.c.bf16 %v5673_v22, %v5667_v14  ;;  %v5687_v59 = vrot.slane %v5612_v46, 2  ;;  %v5936_v14 = vld [vmem:[%s9407_s9 + $0x18] sm:$0xff]  ;;  %v5937_v22 = vld [vmem:[%s9407_s9 + $0x20] sm:$0xff] }
 0x5b2   : > { %v6895_v57 = vpack.c.bf16 %v5936_v14, %v5935_v31  ;;  %v6898_v5 = vpack.c.bf16 %v5938_v42, %v5937_v22  ;;  %v3240_v31 = vld [vmem:[%s9404_s6] sm:$0x1] }
 0x5b3   : > { %v5688_v2 = vsel %vm1201_vm8, %v5686_v56, %v5687_v59 }
 0x5b4   : > { %5834 = vmatpush1.bf16.msra.mxu1 %v7365_v50  ;;  %v5720_v50 = vpack.c.bf16 %v5694_v26, %v5688_v2  ;;  %6896 = vmatpush3.bf16.msra.mxu0 %v6895_v57 }
 0x5b5   : > { %6897 = vmatprep.subr.bf16.mxu0 %v7381_v62 }
 0x5b7   : > { %5848 = vmatmul.mubr.bf16.vlgmr.msra.gmra.mrb[4].mxu1 %v5714_v4  ;;  %v5941_v4 = vld [vmem:[%s9407_s9 + $0x40] sm:$0xff] }
 0x5b8   : > { %6756 = vmatprep.mubr.msk.bf16.mxu1 %vm922_vm7, %v5717_v1  ;;  %6899 = vmatpush3.bf16.msra.mxu0 %v6898_v5  ;;  %v6904_v1 = vpack.c.bf16 %v5942_v16, %v5941_v4  ;;  %v5922_v5 = vmul.f32 64.0, %v3240_v31  ;;  %v5928_v4 = vmul.f32 %v3240_v31, %v3240_v31 }
 0x5b9   : > { %6900 = vmatprep.subr.bf16.mxu0 %v7381_v62 }
 0x5ba   : > { %v5929_v39 = vmul.f32 64.0, %v5928_v4  ;;  %v6105_v4 = vld [vmem:[%s7464_s22 + $0x30] sm:$0xff] }
 0x5bc   : > { %6902 = vmatpush3.bf16.msra.mxu0 %v6901_v44  ;;  %v5925_v44 = vmul.f32 2.0, %v3240_v31 }
 0x5bd   : > { %6903 = vmatprep.subr.bf16.mxu0 %v7381_v62 }
 0x5bf   : > { %5856 = vmatmul.mubr.bf16.gmra.mrb[8].mxu1 %v5716_v23 }
 0x5c0   : > { %6757 = vmatprep.mubr.msk.bf16.mxu1 %vm922_vm7, %v5719_v25  ;;  %6905 = vmatpush3.bf16.msra.mxu0 %v6904_v1 }
 0x5c1   : > { %6906 = vmatprep.subr.bf16.mxu0 %v7381_v62 }
 0x5c4   : > { %6908 = vmatpush3.bf16.msra.mxu0 %v6907_v6 }
 0x5c5   : > { %6909 = vmatprep.subr.bf16.mxu0 %v7381_v62 }
 0x5c7   : > { %5864 = vmatmul.mubr.bf16.gmra.mrb[12].mxu1 %v5718_v32 }
 0x5c8   : > { %6758 = vmatprep.mubr.msk.bf16.mxu1 %vm922_vm7, %v5721_v58  ;;  %6911 = vmatpush3.bf16.msra.mxu0 %v6910_v53 }
 0x5c9   : > { %6912 = vmatprep.subr.bf16.mxu0 %v7381_v62 }
 0x5cc   : > { %6914 = vmatpush3.bf16.msra.mxu0 %v6913_v9 }
 0x5cf   : > { %5872 = vmatmul.mubr.bf16.gmra.mrb[16].mxu1 %v5720_v50 }
 0x68a   : > { %v9325_v10 = vpop.f32.mrb[4].mxu1 }
 0x68b   : > { %v5851_v11 = vpop.f32.mrb[5].mxu1  ;;  %v5901_v3 = vmul.f32 %v9325_v10, %v9325_v10 }
 0x68c   : > { %v9327_v51 = vpop.f32.mrb[6].mxu1 }
 0x68d   : > { %v5888_v54 = vadd.f32 %v9327_v51, %v9325_v10  ;;  %v5902_v13 = vmul.f32 %v9327_v51, %v9327_v51  ;;  %v5854_v15 = vpop.f32.mrb[7].mxu1 }
 0x68f   : > { %v5909_v17 = vadd.f32 %v5902_v13, %v5901_v3 }
 0x692   : > { %v9335_v19 = vpop.f32.mrb[8].mxu1 }
 0x693   : > { %v5889_v62 = vadd.f32 %v5888_v54, %v9335_v19  ;;  %v5903_v20 = vmul.f32 %v9335_v19, %v9335_v19  ;;  %v5859_v23 = vpop.f32.mrb[9].mxu1 }
 0x694   : > { %v9340_v24 = vpop.f32.mrb[10].mxu1 }
 0x695   : > { %v5910_v25 = vadd.f32 %v5909_v17, %v5903_v20  ;;  %v5890_v27 = vadd.f32 %v5889_v62, %v9340_v24  ;;  %v5904_v28 = vmul.f32 %v9340_v24, %v9340_v24  ;;  %v5862_v36 = vpop.f32.mrb[11].mxu1  ;;  %v3241_v20 = vld [vmem:[%s9405_s7] sm:$0x1] }
 0x697   : > { %v5911_v37 = vadd.f32 %v5910_v25, %v5904_v28  ;;  %v3242_v28 = vld [vmem:[%s9406_s8] sm:$0x1] }
 0x69a   : > { %v9345_v40 = vpop.f32.mrb[12].mxu1 }
 0x69b   : > { %v5891_v47 = vadd.f32 %v5890_v27, %v9345_v40  ;;  %v5905_v48 = vmul.f32 %v9345_v40, %v9345_v40  ;;  %v5867_v55 = vpop.f32.mrb[13].mxu1 }
 0x69c   : > { %v9350_v60 = vpop.f32.mrb[14].mxu1 }
 0x69d   : > { %v5912_v61 = vadd.f32 %v5911_v37, %v5905_v48  ;;  %v5892_v21 = vadd.f32 %v5891_v47, %v9350_v60  ;;  %v5906_v41 = vmul.f32 %v9350_v60, %v9350_v60  ;;  %v5870_v46 = vpop.f32.mrb[15].mxu1 }
 0x69f   : > { %v5913_v18 = vadd.f32 %v5912_v61, %v5906_v41 }
 0x6a2   : > { %v5873_v29 = vpop.f32.mrb[16].mxu1 }
 0x6a3   : > { %v5893_v32 = vadd.f32 %v5892_v21, %v5873_v29  ;;  %v5907_v56 = vmul.f32 %v5873_v29, %v5873_v29  ;;  %v5875_v58 = vpop.f32.mrb[17].mxu1 }
 0x6a4   : > { %v5876_v59 = vpop.f32.mrb[18].mxu1 }
 0x6a5   : > { %v5914_v63 = vadd.f32 %v5913_v18, %v5907_v56  ;;  %v5894_v0 = vadd.f32 %v5893_v32, %v5876_v59  ;;  %v5908_v2 = vmul.f32 %v5876_v59, %v5876_v59  ;;  %v5878_v26 = vpop.f32.mrb[19].mxu1 }
 0x6a6   : > { %v6102_v26 = vld [vmem:[%s7464_s22 + $0x18] sm:$0xff] }
 0x6a7   : > { %v5895_v50 = vrot.slane %v5894_v0, 4  ;;  %v5915_v30 = vadd.f32 %v5914_v63, %v5908_v2  ;;  %v6101_v2 = vld [vmem:[%s7464_s22 + $0x10] sm:$0xff] }
 0x6a9   : > { %v5896_v49 = vadd.f32 %v5895_v50, %v5894_v0  ;;  %v5916_v34 = vrot.slane %v5915_v30, 4 }
 0x6ab   : > { %v5897_v14 = vrot.slane %v5896_v49, 2  ;;  %v5917_v22 = vadd.f32 %v5916_v34, %v5915_v30 }
 0x6ad   : > { %v5898_v57 = vadd.f32 %v5897_v14, %v5896_v49  ;;  %v5918_v42 = vrot.slane %v5917_v22, 2 }
 0x6af   : > { %v5899_v35 = vrot.slane %v5898_v57, 1  ;;  %v5919_v7 = vadd.f32 %v5918_v42, %v5917_v22  ;;  %v6104_v42 = vld [vmem:[%s7464_s22 + $0x28] sm:$0xff] }
 0x6b1   : > { %v5900_v16 = vadd.f32 %v5899_v35, %v5898_v57  ;;  %v5920_v1 = vrot.slane %v5919_v7, 1  ;;  %v6103_v57 = vld [vmem:[%s7464_s22 + $0x20] sm:$0xff] }
 0x6b3   : > { %v5921_v33 = vadd.f32 %v5920_v1, %v5919_v7  ;;  %v5923_v43 = vadd.f32 %v5922_v5, %v5900_v16  ;;  %v5926_v6 = vmul.f32 %v5925_v44, %v5900_v16  ;;  %v6106_v16 = vld [vmem:[%s7464_s22 + $0x38] sm:$0xff] }
 0x6b5   : > { %5924 = vst [vmem:[#allocation3] sm:$0x1] %v5923_v43  ;;  %v5927_v45 = vadd.f32 %v5926_v6, %v5921_v33 }
 0x6b7   : > { %v5930_v53 = vadd.f32 %v5929_v39, %v5927_v45 }
 0x6b9   : > { %5931 = vst [vmem:[#allocation3 + $0x1] sm:$0x1] %v5930_v53 }
 0x6c0   : > { %v5932_v8 = vld [vmem:[#allocation3] sm:$0x3] }
 0x6c1   : > { %6865 = vmatmul.mubr.f32.vlgmr.msra.gmra.mrb[16].mxu0 %v5932_v8 }
 0x794   : > { %v6015_v12 = vpop.f32.mrb[16].mxu0 }
 0x795   : > { %v6019_v9 = vmul.f32 %v6015_v12, %v6015_v12  ;;  %v6866_v11 = vpop.f32.mrb[17].mxu0  ;;  %v6044_v27 = vsub.f32 %v3240_v31, %v6015_v12 }
 0x797   : > { %v6021_v3 = vrot.slane %v6019_v9, 7 }
 0x799   : > { %v6023_v54 = vsub.f32 %v6015_v12, %v6021_v3 }
 0x79b   : > { %v6024_v13 = vadd.f32 1e-05, %v6023_v54 }
 0x79d   : > { %7368 = vrsqrt.f32 %v6024_v13 }
 0x7a7   : > { %v7369_v15 = vpop.eup %7368 }
 0x7a8   : > { %v6033_v17 = vrot.slane %v7369_v15, %v8466_v38 }
 0x7aa   : > { %v6034_v62 = vcombine.high %v6033_v17, %v6033_v17 }
 0x7ac   : > { %v6041_v23 = vrot.slane %v6034_v62, %v8466_v38 }
 0x7ae   : > { %v6043_v25 = vmul.f32 %v6041_v23, %v3241_v20 }
 0x7b0   : > { %v6045_v36 = vmul.f32 %v6044_v27, %v6043_v25  ;;  %v6051_v37 = vrot.slane %v6043_v25, %v8473_v52 }
 0x7b2   : > { %v6046_v47 = vadd.f32 %v6045_v36, %v3242_v28  ;;  %v6053_v48 = vmul.f32 %v6051_v37, %v9325_v10  ;;  %v6054_v55 = vmul.f32 %v6051_v37, %v9327_v51  ;;  %v6055_v61 = vmul.f32 %v6051_v37, %v9335_v19 }
 0x7b3   : > { %v6056_v21 = vmul.f32 %v6051_v37, %v9340_v24  ;;  %v6057_v38 = vmul.f32 %v6051_v37, %v9345_v40  ;;  %v6058_v41 = vmul.f32 %v6051_v37, %v9350_v60  ;;  %v6059_v46 = vmul.f32 %v6051_v37, %v5873_v29  ;;  %v6100_v40 = vld [vmem:[%s7464_s22 + $0x8] sm:$0xff] }
 0x7b4   : > { %v6060_v18 = vmul.f32 %v6051_v37, %v5876_v59  ;;  %v6065_v32 = vrot.slane %v6046_v47, %v8473_v52  ;;  %v6099_v52 = vld [vmem:[%s7464_s22] sm:$0xff] }
 0x7b6   : > { %v6067_v56 = vadd.f32 %v6065_v32, %v6053_v48  ;;  %v6068_v58 = vadd.f32 %v6065_v32, %v6054_v55  ;;  %v6069_v63 = vadd.f32 %v6065_v32, %v6055_v61  ;;  %v6070_v10 = vadd.f32 %v6065_v32, %v6056_v21 }
 0x7b7   : > { %v6071_v0 = vadd.f32 %v6065_v32, %v6057_v38  ;;  %v6072_v51 = vadd.f32 %v6065_v32, %v6058_v41  ;;  %v6073_v19 = vadd.f32 %v6065_v32, %v6059_v46  ;;  %v6074_v24 = vadd.f32 %v6065_v32, %v6060_v18 }
 0x7b8   : > { %vm6075_vm0 = vcmp.ge.f32.partialorder %v6067_v56, 0.0  ;;  %vm6076_vm1 = vcmp.ge.f32.partialorder %v6068_v58, 0.0  ;;  %vm6077_vm2 = vcmp.ge.f32.partialorder %v6069_v63, 0.0  ;;  %vm6078_vm3 = vcmp.ge.f32.partialorder %v6070_v10, 0.0 }
 0x7b9   : > { %vm6079_vm4 = vcmp.ge.f32.partialorder %v6071_v0, 0.0  ;;  %vm6080_vm5 = vcmp.ge.f32.partialorder %v6072_v51, 0.0  ;;  %vm6081_vm6 = vcmp.ge.f32.partialorder %v6073_v19, 0.0  ;;  %vm6082_vm7 = vcmp.ge.f32.partialorder %v6074_v24, 0.0 }
 0x7ba   : > { %v6083_v60 = vmul.f32 0.01, %v6067_v56  ;;  %v6084_v29 = vmul.f32 0.01, %v6068_v58  ;;  %v6085_v59 = vmul.f32 0.01, %v6069_v63 }
 0x7bb   : > { %v6086_v50 = vmul.f32 0.01, %v6070_v10  ;;  %v6087_v30 = vmul.f32 0.01, %v6071_v0  ;;  %v6088_v49 = vmul.f32 0.01, %v6072_v51 }
 0x7bc   : > { %v6089_v34 = vmul.f32 0.01, %v6073_v19  ;;  %v6090_v31 = vmul.f32 0.01, %v6074_v24  ;;  %v6091_v14 = vsel %vm6075_vm0, %v6067_v56, %v6083_v60  ;;  %v6092_v22 = vsel %vm6076_vm1, %v6068_v58, %v6084_v29 }
 0x7bd   : > { %v6093_v5 = vsel %vm6077_vm2, %v6069_v63, %v6085_v59  ;;  %v6094_v35 = vsel %vm6078_vm3, %v6070_v10, %v6086_v50  ;;  %v6095_v7 = vsel %vm6079_vm4, %v6071_v0, %v6087_v30  ;;  %v6096_v44 = vsel %vm6080_vm5, %v6072_v51, %v6088_v49 }
 0x7be   : > { %v6097_v1 = vsel %vm6081_vm6, %v6073_v19, %v6089_v34  ;;  %v6098_v33 = vsel %vm6082_vm7, %v6074_v24, %v6090_v31  ;;  %v6107_v43 = vadd.f32 %v6099_v52, %v6091_v14  ;;  %v6108_v6 = vadd.f32 %v6100_v40, %v6092_v22 }
 0x7bf   : > { %v6109_v39 = vadd.f32 %v6101_v2, %v6093_v5  ;;  %v6110_v45 = vadd.f32 %v6102_v26, %v6094_v35  ;;  %v6111_v53 = vadd.f32 %v6103_v57, %v6095_v7  ;;  %v6112_v8 = vadd.f32 %v6104_v42, %v6096_v44 }
 0x7c0   : > { %v6113_v12 = vadd.f32 %v6105_v4, %v6097_v1  ;;  %v6114_v9 = vadd.f32 %v6106_v16, %v6098_v33  ;;  %6115 = vst [vmem:[%s359_s26] sm:$0xff] %v6107_v43  ;;  %6116 = vst [vmem:[%s359_s26 + $0x8] sm:$0xff] %v6108_v6 }
 0x7c1   : > { %6117 = vst [vmem:[%s359_s26 + $0x10] sm:$0xff] %v6109_v39  ;;  %6118 = vst [vmem:[%s359_s26 + $0x18] sm:$0xff] %v6110_v45 }
 0x7c2   : > { %6119 = vst [vmem:[%s359_s26 + $0x20] sm:$0xff] %v6111_v53  ;;  %6120 = vst [vmem:[%s359_s26 + $0x28] sm:$0xff] %v6112_v8 }
 0x7c3   : > { %6121 = vst [vmem:[%s359_s26 + $0x30] sm:$0xff] %v6113_v12  ;;  %6122 = vst [vmem:[%s359_s26 + $0x38] sm:$0xff] %v6114_v9 }
 0x7c4 PF: > { %s20_s13 = sadd.s32 1, %s7376_s13  }
 0x7c5   : > { %p17_p4 = scmp.ge.s32.totalorder %s20_s13, 4  }
 0x7c7   :  { %19 = sbr.rel (!%p17_p4) target bundleno = 1 (0x1), region = 109 }

</bundles_post_ra>
